<compile_context>
chip_gen: v7x
topology: tpu7x:2x2x1
jax: 0.10.0
libtpu: 0.0.40
codegen_flags: <defaults>
</compile_context>

<pallas_src>
import jax
import jax.numpy as jnp
import numpy as np
from jax import lax
from jax.experimental import pallas as pl
from jax.experimental.pallas import tpu as pltpu


def lstm_fc_kernel(
    xp_ref,      # (T, Bp, 4Hp)  precomputed layer-0 input projection, bf16
    h0_ref,      # (L, Bp, Hp)   initial hidden state, f32 (aliased to h_out)
    c0_ref,      # (L, Bp, Hp)   initial cell state, f32 (aliased to c_out)
    b0_ref,      # (1, 4Hp)      layer-0 combined bias (b_ih + b_hh), f32
    w_hh0_ref,   # (Hp, 4Hp)     layer-0 hidden->gates, bf16
    w_ih1_ref,   # (Hp, 4Hp)     layer-1 input->gates, bf16
    w_hh1_ref,   # (Hp, 4Hp)     layer-1 hidden->gates, bf16
    b1_ref,      # (1, 4Hp)      layer-1 combined bias, f32
    w_fc_ref,    # (Hp, Vp)      final linear weight (transposed, padded), bf16
    b_fc_ref,    # (1, Vp)       final linear bias (padded), f32
    out_ref,     # (Bp, Vp)      logits for last timestep
    h_out_ref,   # (L, Bp, Hp)   final hidden state
    c_out_ref,   # (L, Bp, Hp)   final cell state
):
    T = xp_ref.shape[0]
    B = xp_ref.shape[1]
    H = h0_ref.shape[-1]
    G = xp_ref.shape[2]          # 4*Hp

    # Hoist (1,4Hp)->(Bp,4Hp) bias broadcasts out of the loop (not CSE'd by JAX).
    b0 = jnp.broadcast_to(b0_ref[...], (B, G))
    b1 = jnp.broadcast_to(b1_ref[...], (B, G))

    def sigmoid1(x):
        # Exact identity: sigmoid(x) = 0.5*tanh(x/2) + 0.5 -> one EUP push.
        return 0.5 * jnp.tanh(0.5 * x) + 0.5

    def gates_to_hc(gates, c_prev):
        # PyTorch gate order: i, f, g, o.  Slices are 128-lane aligned (Hp=128).
        i = sigmoid1(gates[:, 0:H])
        f = sigmoid1(gates[:, H:2 * H])
        g = jnp.tanh(gates[:, 2 * H:3 * H])
        o = sigmoid1(gates[:, 3 * H:4 * H])
        c_new = f * c_prev + i * g
        h_new = o * jnp.tanh(c_new)
        return h_new, c_new

    def step(t, carry):
        h0_p, c0_p, h1_p, c1_p = carry

        # Layer-1 recurrent dot depends only on the PREVIOUS step's h1 -> it can
        # issue before layer-0 of this step finishes (shortens dependent chain).
        r1 = jnp.dot(h1_p.astype(jnp.bfloat16), w_hh1_ref[...],
                     preferred_element_type=jnp.float32)

        # ----- layer 0: input projection hoisted, only the recurrent matmul -----
        g0 = (xp_ref[t].astype(jnp.float32) + b0
              + jnp.dot(h0_p.astype(jnp.bfloat16), w_hh0_ref[...],
                        preferred_element_type=jnp.float32))
        h0_n, c0_n = gates_to_hc(g0, c0_p)

        # ----- layer 1: two accumulating dots, no lane-axis concat -----
        g1 = (jnp.dot(h0_n.astype(jnp.bfloat16), w_ih1_ref[...],
                      preferred_element_type=jnp.float32)
              + r1 + b1)
        h1_n, c1_n = gates_to_hc(g1, c1_p)

        return (h0_n, c0_n, h1_n, c1_n)

    init = (h0_ref[0], c0_ref[0], h0_ref[1], c0_ref[1])
    # State lives in registers (loop carry). Full unroll only for small T.
    unroll = True if T <= 64 else 8
    h0_f, c0_f, h1_f, c1_f = lax.fori_loop(0, T, step, init, unroll=unroll)

    # Final hidden tuple (matches nn.LSTM's returned `hidden`); Hp=128 -> lane-dense.
    h_out_ref[0] = h0_f
    h_out_ref[1] = h1_f
    c_out_ref[0] = c0_f
    c_out_ref[1] = c1_f

    # fc(out[:, -1, :]) == Linear applied to last-layer hidden at final timestep.
    out_ref[...] = (
        jnp.dot(h1_f.astype(jnp.bfloat16), w_fc_ref[...],
                preferred_element_type=jnp.float32)
        + b_fc_ref[...]
    )


def shakespeare_forward(x, hidden, params):
    """x: (B, T, V) batch_first; hidden: (h0, c0) each (L, B, H). Returns (logits, (h, c))."""
    h0, c0 = hidden
    B, T, V = x.shape
    L, _, H = h0.shape
    assert L == 2, "kernel is specialized for num_layers=2"

    (w_ih0, w_hh0, b_ih0, b_hh0,
     w_ih1, w_hh1, b_ih1, b_hh1,
     w_fc, b_fc) = params

    bf16 = jnp.bfloat16
    LANE, SUB = 128, 8
    Hp = ((H + LANE - 1) // LANE) * LANE
    Bp = ((B + SUB - 1) // SUB) * SUB
    Vp = ((V + LANE - 1) // LANE) * LANE

    # --- padding helpers: pad each H-wide gate block to Hp (zeros) -------------
    def pad_gate_cols(w_t):                      # (in, 4H) -> (in, 4Hp)
        n_in = w_t.shape[0]
        w4 = w_t.reshape(n_in, 4, H)
        return (jnp.zeros((n_in, 4, Hp), w_t.dtype).at[:, :, :H].set(w4)
                .reshape(n_in, 4 * Hp))

    def pad_rows(w, rows_p):                     # zero-pad leading dim
        return jnp.zeros((rows_p,) + w.shape[1:], w.dtype).at[:w.shape[0]].set(w)

    def pad_bias(b):                             # (4H,) -> (1, 4Hp)
        b4 = b.reshape(4, H)
        return (jnp.zeros((4, Hp), jnp.float32).at[:, :H].set(b4.astype(jnp.float32))
                .reshape(1, 4 * Hp))

    # Combined biases (PyTorch adds b_ih + b_hh); padded positions stay 0 so the
    # padded hidden lanes remain exactly zero through the recursion.
    b0p = pad_bias(b_ih0 + b_hh0)
    b1p = pad_bias(b_ih1 + b_hh1)

    # Pre-transpose weights to (in_features, 4Hp) and cast matmul operands to bf16.
    w_ih0_tp = pad_gate_cols(jnp.transpose(w_ih0).astype(bf16))               # (V, 4Hp)
    w_hh0_tp = pad_rows(pad_gate_cols(jnp.transpose(w_hh0).astype(bf16)), Hp)  # (Hp, 4Hp)
    w_ih1_tp = pad_rows(pad_gate_cols(jnp.transpose(w_ih1).astype(bf16)), Hp)  # (Hp, 4Hp)
    w_hh1_tp = pad_rows(pad_gate_cols(jnp.transpose(w_hh1).astype(bf16)), Hp)  # (Hp, 4Hp)

    # Lane-dense fc output: pad vocab dim to a multiple of 128, hidden rows to Hp.
    w_fc_p = jnp.zeros((Hp, Vp), bf16).at[:H, :V].set(jnp.transpose(w_fc).astype(bf16))
    b_fc_p = jnp.zeros((1, Vp), jnp.float32).at[:, :V].set(
        b_fc.reshape(1, V).astype(jnp.float32))

    # Padded initial state (padded batch rows / hidden lanes are sliced off later).
    h0p = jnp.zeros((L, Bp, Hp), jnp.float32).at[:, :B, :H].set(h0.astype(jnp.float32))
    c0p = jnp.zeros((L, Bp, Hp), jnp.float32).at[:, :B, :H].set(c0.astype(jnp.float32))

    # Hoisted layer-0 input projection: one (T*Bp, V) x (V, 4Hp) matmul instead of
    # T tiny matmuls on the recurrent chain. Stored bf16 (bias added in-kernel, f32).
    x_tm = jnp.transpose(x, (1, 0, 2))                                     # (T, B, V)
    x_pad = jnp.zeros((T, Bp, V), jnp.float32).at[:, :B, :].set(x_tm)
    xproj = jnp.dot(
        x_pad.reshape(T * Bp, V).astype(bf16), w_ih0_tp,
        preferred_element_type=jnp.float32,
    ).reshape(T, Bp, 4 * Hp).astype(bf16)

    args = (xproj, h0p, c0p, b0p, w_hh0_tp, w_ih1_tp, w_hh1_tp, b1p, w_fc_p, b_fc_p)

    vmem = pltpu.MemorySpace.VMEM
    out_p, h_out, c_out = pl.pallas_call(
        lstm_fc_kernel,
        out_shape=(
            jax.ShapeDtypeStruct((Bp, Vp), jnp.float32),
            jax.ShapeDtypeStruct((L, Bp, Hp), jnp.float32),
            jax.ShapeDtypeStruct((L, Bp, Hp), jnp.float32),
        ),
        in_specs=[pl.BlockSpec(memory_space=vmem) for _ in args],
        out_specs=(
            pl.BlockSpec(memory_space=vmem),
            pl.BlockSpec(memory_space=vmem),
            pl.BlockSpec(memory_space=vmem),
        ),
        # h0/c0 buffers are reused as the final-state outputs (no extra buffers).
        input_output_aliases={1: 1, 2: 2},
        compiler_params=pltpu.CompilerParams(vmem_limit_bytes=64 << 20),
    )(*args)

    return out_p[:B, :V], (h_out[:, :B, :H], c_out[:, :B, :H])


def init_params(key, vocab_size, hidden_size):
    """Deterministic init matching nn.LSTM / nn.Linear shapes (uniform +-1/sqrt(H))."""
    H, V = hidden_size, vocab_size
    k = 1.0 / jnp.sqrt(jnp.float32(H))
    keys = jax.random.split(key, 10)

    def u(kk, shape):
        return jax.random.uniform(kk, shape, jnp.float32, -k, k)

    w_ih0 = u(keys[0], (4 * H, V))   # layer 0 weight_ih
    w_hh0 = u(keys[1], (4 * H, H))   # layer 0 weight_hh
    b_ih0 = u(keys[2], (4 * H,))
    b_hh0 = u(keys[3], (4 * H,))
    w_ih1 = u(keys[4], (4 * H, H))   # layer 1 weight_ih
    w_hh1 = u(keys[5], (4 * H, H))
    b_ih1 = u(keys[6], (4 * H,))
    b_hh1 = u(keys[7], (4 * H,))
    w_fc = u(keys[8], (V, H))        # fc weight (out_features, in_features)
    b_fc = u(keys[9], (V,))
    return (w_ih0, w_hh0, b_ih0, b_hh0,
            w_ih1, w_hh1, b_ih1, b_hh1,
            w_fc, b_fc)


def reference_forward(x, hidden, params):
    """Pure-JAX f32 reference matching nn.LSTM(batch_first=True) + nn.Linear."""
    h0, c0 = hidden
    B, T, V = x.shape
    H = h0.shape[-1]
    (w_ih0, w_hh0, b_ih0, b_hh0,
     w_ih1, w_hh1, b_ih1, b_hh1,
     w_fc, b_fc) = params

    def cell(x_t, h, c, w_ih, w_hh, b_ih, b_hh):
        g = x_t @ w_ih.T + h @ w_hh.T + b_ih + b_hh
        i = jax.nn.sigmoid(g[:, 0:H])
        f = jax.nn.sigmoid(g[:, H:2 * H])
        gg = jnp.tanh(g[:, 2 * H:3 * H])
        o = jax.nn.sigmoid(g[:, 3 * H:4 * H])
        c_new = f * c + i * gg
        h_new = o * jnp.tanh(c_new)
        return h_new, c_new

    h0_, c0_ = h0[0], c0[0]
    h1_, c1_ = h0[1], c0[1]
    for t in range(T):
        x_t = x[:, t, :]
        h0_, c0_ = cell(x_t, h0_, c0_, w_ih0, w_hh0, b_ih0, b_hh0)
        h1_, c1_ = cell(h0_, h1_, c1_, w_ih1, w_hh1, b_ih1, b_hh1)
    logits = h1_ @ w_fc.T + b_fc
    return logits, (jnp.stack([h0_, h1_]), jnp.stack([c0_, c1_]))


if __name__ == "__main__":
    # Small shapes consistent with the module's forward:
    #   x: (batch=2, seq=8, vocab=16) one-hot sequence; hidden: (2, 2, 32) pair.
    B, T, V, H, L = 2, 8, 16, 32, 2

    key = jax.random.PRNGKey(0)
    k_tok, k_par = jax.random.split(key)

    tokens = jax.random.randint(k_tok, (B, T), 0, V)
    x = jax.nn.one_hot(tokens, V, dtype=jnp.float32)          # (B, T, V)
    h0 = jnp.zeros((L, B, H), jnp.float32)                    # model.init_hidden
    c0 = jnp.zeros((L, B, H), jnp.float32)

    params = init_params(k_par, V, H)

    fwd = jax.jit(shakespeare_forward)
    logits, (h_n, c_n) = fwd(x, (h0, c0), params)
    jax.block_until_ready((logits, h_n, c_n))

    assert logits.shape == (B, V)
    assert h_n.shape == (L, B, H) and c_n.shape == (L, B, H)

    # Correctness vs f32 pure-JAX reference (bf16 MXU inputs -> loose tolerance).
    ref_logits, (ref_h, ref_c) = reference_forward(x, (h0, c0), params)
    np.testing.assert_allclose(np.asarray(logits), np.asarray(ref_logits),
                               rtol=5e-2, atol=5e-2)
    np.testing.assert_allclose(np.asarray(h_n), np.asarray(ref_h),
                               rtol=5e-2, atol=5e-2)
    np.testing.assert_allclose(np.asarray(c_n), np.asarray(ref_c),
                               rtol=5e-2, atol=5e-2)

    print("KERNEL_OK")
</pallas_src>

<mosaic_0001>
module attributes {stable_mosaic.version = 11 : i64} {
  func.func @lstm_fc_kernel(%arg0: memref<8x8x512xbf16, #tpu.memory_space<vmem>>, %arg1: memref<2x8x128xf32, #tpu.memory_space<vmem>>, %arg2: memref<2x8x128xf32, #tpu.memory_space<vmem>>, %arg3: memref<1x512xf32, #tpu.memory_space<vmem>>, %arg4: memref<128x512xbf16, #tpu.memory_space<vmem>>, %arg5: memref<128x512xbf16, #tpu.memory_space<vmem>>, %arg6: memref<128x512xbf16, #tpu.memory_space<vmem>>, %arg7: memref<1x512xf32, #tpu.memory_space<vmem>>, %arg8: memref<128x128xbf16, #tpu.memory_space<vmem>>, %arg9: memref<1x128xf32, #tpu.memory_space<vmem>>, %arg10: memref<8x128xf32, #tpu.memory_space<vmem>>, %arg11: memref<2x8x128xf32, #tpu.memory_space<vmem>>, %arg12: memref<2x8x128xf32, #tpu.memory_space<vmem>>) attributes {dimension_semantics = [], scalar_prefetch = 0 : i64, scratch_operands = 0 : i64, tpu.core_type = #tpu.core_type<tc>} {
    %c0 = arith.constant 0 : index
    %c0_0 = arith.constant 0 : index
    %0 = vector.load %arg3[%c0, %c0_0] : memref<1x512xf32, #tpu.memory_space<vmem>>, vector<1x512xf32>
    %1 = vector.shape_cast %0 : vector<1x512xf32> to vector<1x512xf32>
    %2 = vector.broadcast %1 : vector<1x512xf32> to vector<8x512xf32>
    %c0_1 = arith.constant 0 : index
    %c0_2 = arith.constant 0 : index
    %3 = vector.load %arg7[%c0_1, %c0_2] : memref<1x512xf32, #tpu.memory_space<vmem>>, vector<1x512xf32>
    %4 = vector.shape_cast %3 : vector<1x512xf32> to vector<1x512xf32>
    %5 = vector.broadcast %4 : vector<1x512xf32> to vector<8x512xf32>
    %c0_3 = arith.constant 0 : index
    %c0_4 = arith.constant 0 : index
    %c0_5 = arith.constant 0 : index
    %6 = vector.load %arg1[%c0_3, %c0_4, %c0_5] : memref<2x8x128xf32, #tpu.memory_space<vmem>>, vector<1x8x128xf32>
    %7 = vector.shape_cast %6 : vector<1x8x128xf32> to vector<8x128xf32>
    %c0_6 = arith.constant 0 : index
    %c0_7 = arith.constant 0 : index
    %c0_8 = arith.constant 0 : index
    %8 = vector.load %arg2[%c0_6, %c0_7, %c0_8] : memref<2x8x128xf32, #tpu.memory_space<vmem>>, vector<1x8x128xf32>
    %9 = vector.shape_cast %8 : vector<1x8x128xf32> to vector<8x128xf32>
    %c1 = arith.constant 1 : index
    %c0_9 = arith.constant 0 : index
    %c0_10 = arith.constant 0 : index
    %10 = vector.load %arg1[%c1, %c0_9, %c0_10] : memref<2x8x128xf32, #tpu.memory_space<vmem>>, vector<1x8x128xf32>
    %11 = vector.shape_cast %10 : vector<1x8x128xf32> to vector<8x128xf32>
    %c1_11 = arith.constant 1 : index
    %c0_12 = arith.constant 0 : index
    %c0_13 = arith.constant 0 : index
    %12 = vector.load %arg2[%c1_11, %c0_12, %c0_13] : memref<2x8x128xf32, #tpu.memory_space<vmem>>, vector<1x8x128xf32>
    %13 = vector.shape_cast %12 : vector<1x8x128xf32> to vector<8x128xf32>
    %c0_i32 = arith.constant 0 : i32
    %14 = arith.truncf %11 : vector<8x128xf32> to vector<8x128xbf16>
    %c0_14 = arith.constant 0 : index
    %c0_15 = arith.constant 0 : index
    %15 = vector.load %arg6[%c0_14, %c0_15] : memref<128x512xbf16, #tpu.memory_space<vmem>>, vector<128x512xbf16>
    %cst = arith.constant dense<0.000000e+00> : vector<8x512xf32>
    %16 = tpu.matmul %14, %15, %cst {dimension_numbers = #tpu.dot_dimension_numbers<[1], [0], [0], [1], [0, 0, 1, 1], [], []>} : vector<8x128xbf16>, vector<128x512xbf16>, vector<8x512xf32> -> vector<8x512xf32>
    %17 = arith.index_cast %c0_i32 : i32 to index
    %c0_16 = arith.constant 0 : index
    %c0_17 = arith.constant 0 : index
    %18 = vector.load %arg0[%17, %c0_16, %c0_17] : memref<8x8x512xbf16, #tpu.memory_space<vmem>>, vector<1x8x512xbf16>
    %19 = vector.shape_cast %18 : vector<1x8x512xbf16> to vector<8x512xbf16>
    %20 = arith.extf %19 : vector<8x512xbf16> to vector<8x512xf32>
    %21 = arith.addf %20, %2 : vector<8x512xf32>
    %22 = arith.truncf %7 : vector<8x128xf32> to vector<8x128xbf16>
    %c0_18 = arith.constant 0 : index
    %c0_19 = arith.constant 0 : index
    %23 = vector.load %arg4[%c0_18, %c0_19] : memref<128x512xbf16, #tpu.memory_space<vmem>>, vector<128x512xbf16>
    %cst_20 = arith.constant dense<0.000000e+00> : vector<8x512xf32>
    %24 = tpu.matmul %22, %23, %cst_20 {dimension_numbers = #tpu.dot_dimension_numbers<[1], [0], [0], [1], [0, 0, 1, 1], [], []>} : vector<8x128xbf16>, vector<128x512xbf16>, vector<8x512xf32> -> vector<8x512xf32>
    %25 = arith.addf %21, %24 : vector<8x512xf32>
    %26 = vector.extract_strided_slice %25 {offsets = [0, 0], sizes = [8, 128], strides = [1, 1]} : vector<8x512xf32> to vector<8x128xf32>
    %cst_21 = arith.constant 5.000000e-01 : f32
    %27 = vector.broadcast %cst_21 : f32 to vector<8x128xf32>
    %28 = arith.mulf %27, %26 : vector<8x128xf32>
    %29 = math.tanh %28 : vector<8x128xf32>
    %cst_22 = arith.constant 5.000000e-01 : f32
    %30 = vector.broadcast %cst_22 : f32 to vector<8x128xf32>
    %31 = arith.mulf %30, %29 : vector<8x128xf32>
    %cst_23 = arith.constant 5.000000e-01 : f32
    %32 = vector.broadcast %cst_23 : f32 to vector<8x128xf32>
    %33 = arith.addf %31, %32 : vector<8x128xf32>
    %34 = vector.extract_strided_slice %25 {offsets = [0, 128], sizes = [8, 128], strides = [1, 1]} : vector<8x512xf32> to vector<8x128xf32>
    %cst_24 = arith.constant 5.000000e-01 : f32
    %35 = vector.broadcast %cst_24 : f32 to vector<8x128xf32>
    %36 = arith.mulf %35, %34 : vector<8x128xf32>
    %37 = math.tanh %36 : vector<8x128xf32>
    %cst_25 = arith.constant 5.000000e-01 : f32
    %38 = vector.broadcast %cst_25 : f32 to vector<8x128xf32>
    %39 = arith.mulf %38, %37 : vector<8x128xf32>
    %cst_26 = arith.constant 5.000000e-01 : f32
    %40 = vector.broadcast %cst_26 : f32 to vector<8x128xf32>
    %41 = arith.addf %39, %40 : vector<8x128xf32>
    %42 = vector.extract_strided_slice %25 {offsets = [0, 256], sizes = [8, 128], strides = [1, 1]} : vector<8x512xf32> to vector<8x128xf32>
    %43 = math.tanh %42 : vector<8x128xf32>
    %44 = vector.extract_strided_slice %25 {offsets = [0, 384], sizes = [8, 128], strides = [1, 1]} : vector<8x512xf32> to vector<8x128xf32>
    %cst_27 = arith.constant 5.000000e-01 : f32
    %45 = vector.broadcast %cst_27 : f32 to vector<8x128xf32>
    %46 = arith.mulf %45, %44 : vector<8x128xf32>
    %47 = math.tanh %46 : vector<8x128xf32>
    %cst_28 = arith.constant 5.000000e-01 : f32
    %48 = vector.broadcast %cst_28 : f32 to vector<8x128xf32>
    %49 = arith.mulf %48, %47 : vector<8x128xf32>
    %cst_29 = arith.constant 5.000000e-01 : f32
    %50 = vector.broadcast %cst_29 : f32 to vector<8x128xf32>
    %51 = arith.addf %49, %50 : vector<8x128xf32>
    %52 = arith.mulf %41, %9 : vector<8x128xf32>
    %53 = arith.mulf %33, %43 : vector<8x128xf32>
    %54 = arith.addf %52, %53 : vector<8x128xf32>
    %55 = math.tanh %54 : vector<8x128xf32>
    %56 = arith.mulf %51, %55 : vector<8x128xf32>
    %57 = arith.truncf %56 : vector<8x128xf32> to vector<8x128xbf16>
    %c0_30 = arith.constant 0 : index
    %c0_31 = arith.constant 0 : index
    %58 = vector.load %arg5[%c0_30, %c0_31] : memref<128x512xbf16, #tpu.memory_space<vmem>>, vector<128x512xbf16>
    %cst_32 = arith.constant dense<0.000000e+00> : vector<8x512xf32>
    %59 = tpu.matmul %57, %58, %cst_32 {dimension_numbers = #tpu.dot_dimension_numbers<[1], [0], [0], [1], [0, 0, 1, 1], [], []>} : vector<8x128xbf16>, vector<128x512xbf16>, vector<8x512xf32> -> vector<8x512xf32>
    %60 = arith.addf %59, %16 : vector<8x512xf32>
    %61 = arith.addf %60, %5 : vector<8x512xf32>
    %62 = vector.extract_strided_slice %61 {offsets = [0, 0], sizes = [8, 128], strides = [1, 1]} : vector<8x512xf32> to vector<8x128xf32>
    %cst_33 = arith.constant 5.000000e-01 : f32
    %63 = vector.broadcast %cst_33 : f32 to vector<8x128xf32>
    %64 = arith.mulf %63, %62 : vector<8x128xf32>
    %65 = math.tanh %64 : vector<8x128xf32>
    %cst_34 = arith.constant 5.000000e-01 : f32
    %66 = vector.broadcast %cst_34 : f32 to vector<8x128xf32>
    %67 = arith.mulf %66, %65 : vector<8x128xf32>
    %cst_35 = arith.constant 5.000000e-01 : f32
    %68 = vector.broadcast %cst_35 : f32 to vector<8x128xf32>
    %69 = arith.addf %67, %68 : vector<8x128xf32>
    %70 = vector.extract_strided_slice %61 {offsets = [0, 128], sizes = [8, 128], strides = [1, 1]} : vector<8x512xf32> to vector<8x128xf32>
    %cst_36 = arith.constant 5.000000e-01 : f32
    %71 = vector.broadcast %cst_36 : f32 to vector<8x128xf32>
    %72 = arith.mulf %71, %70 : vector<8x128xf32>
    %73 = math.tanh %72 : vector<8x128xf32>
    %cst_37 = arith.constant 5.000000e-01 : f32
    %74 = vector.broadcast %cst_37 : f32 to vector<8x128xf32>
    %75 = arith.mulf %74, %73 : vector<8x128xf32>
    %cst_38 = arith.constant 5.000000e-01 : f32
    %76 = vector.broadcast %cst_38 : f32 to vector<8x128xf32>
    %77 = arith.addf %75, %76 : vector<8x128xf32>
    %78 = vector.extract_strided_slice %61 {offsets = [0, 256], sizes = [8, 128], strides = [1, 1]} : vector<8x512xf32> to vector<8x128xf32>
    %79 = math.tanh %78 : vector<8x128xf32>
    %80 = vector.extract_strided_slice %61 {offsets = [0, 384], sizes = [8, 128], strides = [1, 1]} : vector<8x512xf32> to vector<8x128xf32>
    %cst_39 = arith.constant 5.000000e-01 : f32
    %81 = vector.broadcast %cst_39 : f32 to vector<8x128xf32>
    %82 = arith.mulf %81, %80 : vector<8x128xf32>
    %83 = math.tanh %82 : vector<8x128xf32>
    %cst_40 = arith.constant 5.000000e-01 : f32
    %84 = vector.broadcast %cst_40 : f32 to vector<8x128xf32>
    %85 = arith.mulf %84, %83 : vector<8x128xf32>
    %cst_41 = arith.constant 5.000000e-01 : f32
    %86 = vector.broadcast %cst_41 : f32 to vector<8x128xf32>
    %87 = arith.addf %85, %86 : vector<8x128xf32>
    %88 = arith.mulf %77, %13 : vector<8x128xf32>
    %89 = arith.mulf %69, %79 : vector<8x128xf32>
    %90 = arith.addf %88, %89 : vector<8x128xf32>
    %91 = math.tanh %90 : vector<8x128xf32>
    %92 = arith.mulf %87, %91 : vector<8x128xf32>
    %c1_i32 = arith.constant 1 : i32
    %93 = arith.truncf %92 : vector<8x128xf32> to vector<8x128xbf16>
    %c0_42 = arith.constant 0 : index
    %c0_43 = arith.constant 0 : index
    %94 = vector.load %arg6[%c0_42, %c0_43] : memref<128x512xbf16, #tpu.memory_space<vmem>>, vector<128x512xbf16>
    %cst_44 = arith.constant dense<0.000000e+00> : vector<8x512xf32>
    %95 = tpu.matmul %93, %94, %cst_44 {dimension_numbers = #tpu.dot_dimension_numbers<[1], [0], [0], [1], [0, 0, 1, 1], [], []>} : vector<8x128xbf16>, vector<128x512xbf16>, vector<8x512xf32> -> vector<8x512xf32>
    %96 = arith.index_cast %c1_i32 : i32 to index
    %c0_45 = arith.constant 0 : index
    %c0_46 = arith.constant 0 : index
    %97 = vector.load %arg0[%96, %c0_45, %c0_46] : memref<8x8x512xbf16, #tpu.memory_space<vmem>>, vector<1x8x512xbf16>
    %98 = vector.shape_cast %97 : vector<1x8x512xbf16> to vector<8x512xbf16>
    %99 = arith.extf %98 : vector<8x512xbf16> to vector<8x512xf32>
    %100 = arith.addf %99, %2 : vector<8x512xf32>
    %101 = arith.truncf %56 : vector<8x128xf32> to vector<8x128xbf16>
    %c0_47 = arith.constant 0 : index
    %c0_48 = arith.constant 0 : index
    %102 = vector.load %arg4[%c0_47, %c0_48] : memref<128x512xbf16, #tpu.memory_space<vmem>>, vector<128x512xbf16>
    %cst_49 = arith.constant dense<0.000000e+00> : vector<8x512xf32>
    %103 = tpu.matmul %101, %102, %cst_49 {dimension_numbers = #tpu.dot_dimension_numbers<[1], [0], [0], [1], [0, 0, 1, 1], [], []>} : vector<8x128xbf16>, vector<128x512xbf16>, vector<8x512xf32> -> vector<8x512xf32>
    %104 = arith.addf %100, %103 : vector<8x512xf32>
    %105 = vector.extract_strided_slice %104 {offsets = [0, 0], sizes = [8, 128], strides = [1, 1]} : vector<8x512xf32> to vector<8x128xf32>
    %cst_50 = arith.constant 5.000000e-01 : f32
    %106 = vector.broadcast %cst_50 : f32 to vector<8x128xf32>
    %107 = arith.mulf %106, %105 : vector<8x128xf32>
    %108 = math.tanh %107 : vector<8x128xf32>
    %cst_51 = arith.constant 5.000000e-01 : f32
    %109 = vector.broadcast %cst_51 : f32 to vector<8x128xf32>
    %110 = arith.mulf %109, %108 : vector<8x128xf32>
    %cst_52 = arith.constant 5.000000e-01 : f32
    %111 = vector.broadcast %cst_52 : f32 to vector<8x128xf32>
    %112 = arith.addf %110, %111 : vector<8x128xf32>
    %113 = vector.extract_strided_slice %104 {offsets = [0, 128], sizes = [8, 128], strides = [1, 1]} : vector<8x512xf32> to vector<8x128xf32>
    %cst_53 = arith.constant 5.000000e-01 : f32
    %114 = vector.broadcast %cst_53 : f32 to vector<8x128xf32>
    %115 = arith.mulf %114, %113 : vector<8x128xf32>
    %116 = math.tanh %115 : vector<8x128xf32>
    %cst_54 = arith.constant 5.000000e-01 : f32
    %117 = vector.broadcast %cst_54 : f32 to vector<8x128xf32>
    %118 = arith.mulf %117, %116 : vector<8x128xf32>
    %cst_55 = arith.constant 5.000000e-01 : f32
    %119 = vector.broadcast %cst_55 : f32 to vector<8x128xf32>
    %120 = arith.addf %118, %119 : vector<8x128xf32>
    %121 = vector.extract_strided_slice %104 {offsets = [0, 256], sizes = [8, 128], strides = [1, 1]} : vector<8x512xf32> to vector<8x128xf32>
    %122 = math.tanh %121 : vector<8x128xf32>
    %123 = vector.extract_strided_slice %104 {offsets = [0, 384], sizes = [8, 128], strides = [1, 1]} : vector<8x512xf32> to vector<8x128xf32>
    %cst_56 = arith.constant 5.000000e-01 : f32
    %124 = vector.broadcast %cst_56 : f32 to vector<8x128xf32>
    %125 = arith.mulf %124, %123 : vector<8x128xf32>
    %126 = math.tanh %125 : vector<8x128xf32>
    %cst_57 = arith.constant 5.000000e-01 : f32
    %127 = vector.broadcast %cst_57 : f32 to vector<8x128xf32>
    %128 = arith.mulf %127, %126 : vector<8x128xf32>
    %cst_58 = arith.constant 5.000000e-01 : f32
    %129 = vector.broadcast %cst_58 : f32 to vector<8x128xf32>
    %130 = arith.addf %128, %129 : vector<8x128xf32>
    %131 = arith.mulf %120, %54 : vector<8x128xf32>
    %132 = arith.mulf %112, %122 : vector<8x128xf32>
    %133 = arith.addf %131, %132 : vector<8x128xf32>
    %134 = math.tanh %133 : vector<8x128xf32>
    %135 = arith.mulf %130, %134 : vector<8x128xf32>
    %136 = arith.truncf %135 : vector<8x128xf32> to vector<8x128xbf16>
    %c0_59 = arith.constant 0 : index
    %c0_60 = arith.constant 0 : index
    %137 = vector.load %arg5[%c0_59, %c0_60] : memref<128x512xbf16, #tpu.memory_space<vmem>>, vector<128x512xbf16>
    %cst_61 = arith.constant dense<0.000000e+00> : vector<8x512xf32>
    %138 = tpu.matmul %136, %137, %cst_61 {dimension_numbers = #tpu.dot_dimension_numbers<[1], [0], [0], [1], [0, 0, 1, 1], [], []>} : vector<8x128xbf16>, vector<128x512xbf16>, vector<8x512xf32> -> vector<8x512xf32>
    %139 = arith.addf %138, %95 : vector<8x512xf32>
    %140 = arith.addf %139, %5 : vector<8x512xf32>
    %141 = vector.extract_strided_slice %140 {offsets = [0, 0], sizes = [8, 128], strides = [1, 1]} : vector<8x512xf32> to vector<8x128xf32>
    %cst_62 = arith.constant 5.000000e-01 : f32
    %142 = vector.broadcast %cst_62 : f32 to vector<8x128xf32>
    %143 = arith.mulf %142, %141 : vector<8x128xf32>
    %144 = math.tanh %143 : vector<8x128xf32>
    %cst_63 = arith.constant 5.000000e-01 : f32
    %145 = vector.broadcast %cst_63 : f32 to vector<8x128xf32>
    %146 = arith.mulf %145, %144 : vector<8x128xf32>
    %cst_64 = arith.constant 5.000000e-01 : f32
    %147 = vector.broadcast %cst_64 : f32 to vector<8x128xf32>
    %148 = arith.addf %146, %147 : vector<8x128xf32>
    %149 = vector.extract_strided_slice %140 {offsets = [0, 128], sizes = [8, 128], strides = [1, 1]} : vector<8x512xf32> to vector<8x128xf32>
    %cst_65 = arith.constant 5.000000e-01 : f32
    %150 = vector.broadcast %cst_65 : f32 to vector<8x128xf32>
    %151 = arith.mulf %150, %149 : vector<8x128xf32>
    %152 = math.tanh %151 : vector<8x128xf32>
    %cst_66 = arith.constant 5.000000e-01 : f32
    %153 = vector.broadcast %cst_66 : f32 to vector<8x128xf32>
    %154 = arith.mulf %153, %152 : vector<8x128xf32>
    %cst_67 = arith.constant 5.000000e-01 : f32
    %155 = vector.broadcast %cst_67 : f32 to vector<8x128xf32>
    %156 = arith.addf %154, %155 : vector<8x128xf32>
    %157 = vector.extract_strided_slice %140 {offsets = [0, 256], sizes = [8, 128], strides = [1, 1]} : vector<8x512xf32> to vector<8x128xf32>
    %158 = math.tanh %157 : vector<8x128xf32>
    %159 = vector.extract_strided_slice %140 {offsets = [0, 384], sizes = [8, 128], strides = [1, 1]} : vector<8x512xf32> to vector<8x128xf32>
    %cst_68 = arith.constant 5.000000e-01 : f32
    %160 = vector.broadcast %cst_68 : f32 to vector<8x128xf32>
    %161 = arith.mulf %160, %159 : vector<8x128xf32>
    %162 = math.tanh %161 : vector<8x128xf32>
    %cst_69 = arith.constant 5.000000e-01 : f32
    %163 = vector.broadcast %cst_69 : f32 to vector<8x128xf32>
    %164 = arith.mulf %163, %162 : vector<8x128xf32>
    %cst_70 = arith.constant 5.000000e-01 : f32
    %165 = vector.broadcast %cst_70 : f32 to vector<8x128xf32>
    %166 = arith.addf %164, %165 : vector<8x128xf32>
    %167 = arith.mulf %156, %90 : vector<8x128xf32>
    %168 = arith.mulf %148, %158 : vector<8x128xf32>
    %169 = arith.addf %167, %168 : vector<8x128xf32>
    %170 = math.tanh %169 : vector<8x128xf32>
    %171 = arith.mulf %166, %170 : vector<8x128xf32>
    %c2_i32 = arith.constant 2 : i32
    %172 = arith.truncf %171 : vector<8x128xf32> to vector<8x128xbf16>
    %c0_71 = arith.constant 0 : index
    %c0_72 = arith.constant 0 : index
    %173 = vector.load %arg6[%c0_71, %c0_72] : memref<128x512xbf16, #tpu.memory_space<vmem>>, vector<128x512xbf16>
    %cst_73 = arith.constant dense<0.000000e+00> : vector<8x512xf32>
    %174 = tpu.matmul %172, %173, %cst_73 {dimension_numbers = #tpu.dot_dimension_numbers<[1], [0], [0], [1], [0, 0, 1, 1], [], []>} : vector<8x128xbf16>, vector<128x512xbf16>, vector<8x512xf32> -> vector<8x512xf32>
    %175 = arith.index_cast %c2_i32 : i32 to index
    %c0_74 = arith.constant 0 : index
    %c0_75 = arith.constant 0 : index
    %176 = vector.load %arg0[%175, %c0_74, %c0_75] : memref<8x8x512xbf16, #tpu.memory_space<vmem>>, vector<1x8x512xbf16>
    %177 = vector.shape_cast %176 : vector<1x8x512xbf16> to vector<8x512xbf16>
    %178 = arith.extf %177 : vector<8x512xbf16> to vector<8x512xf32>
    %179 = arith.addf %178, %2 : vector<8x512xf32>
    %180 = arith.truncf %135 : vector<8x128xf32> to vector<8x128xbf16>
    %c0_76 = arith.constant 0 : index
    %c0_77 = arith.constant 0 : index
    %181 = vector.load %arg4[%c0_76, %c0_77] : memref<128x512xbf16, #tpu.memory_space<vmem>>, vector<128x512xbf16>
    %cst_78 = arith.constant dense<0.000000e+00> : vector<8x512xf32>
    %182 = tpu.matmul %180, %181, %cst_78 {dimension_numbers = #tpu.dot_dimension_numbers<[1], [0], [0], [1], [0, 0, 1, 1], [], []>} : vector<8x128xbf16>, vector<128x512xbf16>, vector<8x512xf32> -> vector<8x512xf32>
    %183 = arith.addf %179, %182 : vector<8x512xf32>
    %184 = vector.extract_strided_slice %183 {offsets = [0, 0], sizes = [8, 128], strides = [1, 1]} : vector<8x512xf32> to vector<8x128xf32>
    %cst_79 = arith.constant 5.000000e-01 : f32
    %185 = vector.broadcast %cst_79 : f32 to vector<8x128xf32>
    %186 = arith.mulf %185, %184 : vector<8x128xf32>
    %187 = math.tanh %186 : vector<8x128xf32>
    %cst_80 = arith.constant 5.000000e-01 : f32
    %188 = vector.broadcast %cst_80 : f32 to vector<8x128xf32>
    %189 = arith.mulf %188, %187 : vector<8x128xf32>
    %cst_81 = arith.constant 5.000000e-01 : f32
    %190 = vector.broadcast %cst_81 : f32 to vector<8x128xf32>
    %191 = arith.addf %189, %190 : vector<8x128xf32>
    %192 = vector.extract_strided_slice %183 {offsets = [0, 128], sizes = [8, 128], strides = [1, 1]} : vector<8x512xf32> to vector<8x128xf32>
    %cst_82 = arith.constant 5.000000e-01 : f32
    %193 = vector.broadcast %cst_82 : f32 to vector<8x128xf32>
    %194 = arith.mulf %193, %192 : vector<8x128xf32>
    %195 = math.tanh %194 : vector<8x128xf32>
    %cst_83 = arith.constant 5.000000e-01 : f32
    %196 = vector.broadcast %cst_83 : f32 to vector<8x128xf32>
    %197 = arith.mulf %196, %195 : vector<8x128xf32>
    %cst_84 = arith.constant 5.000000e-01 : f32
    %198 = vector.broadcast %cst_84 : f32 to vector<8x128xf32>
    %199 = arith.addf %197, %198 : vector<8x128xf32>
    %200 = vector.extract_strided_slice %183 {offsets = [0, 256], sizes = [8, 128], strides = [1, 1]} : vector<8x512xf32> to vector<8x128xf32>
    %201 = math.tanh %200 : vector<8x128xf32>
    %202 = vector.extract_strided_slice %183 {offsets = [0, 384], sizes = [8, 128], strides = [1, 1]} : vector<8x512xf32> to vector<8x128xf32>
    %cst_85 = arith.constant 5.000000e-01 : f32
    %203 = vector.broadcast %cst_85 : f32 to vector<8x128xf32>
    %204 = arith.mulf %203, %202 : vector<8x128xf32>
    %205 = math.tanh %204 : vector<8x128xf32>
    %cst_86 = arith.constant 5.000000e-01 : f32
    %206 = vector.broadcast %cst_86 : f32 to vector<8x128xf32>
    %207 = arith.mulf %206, %205 : vector<8x128xf32>
    %cst_87 = arith.constant 5.000000e-01 : f32
    %208 = vector.broadcast %cst_87 : f32 to vector<8x128xf32>
    %209 = arith.addf %207, %208 : vector<8x128xf32>
    %210 = arith.mulf %199, %133 : vector<8x128xf32>
    %211 = arith.mulf %191, %201 : vector<8x128xf32>
    %212 = arith.addf %210, %211 : vector<8x128xf32>
    %213 = math.tanh %212 : vector<8x128xf32>
    %214 = arith.mulf %209, %213 : vector<8x128xf32>
    %215 = arith.truncf %214 : vector<8x128xf32> to vector<8x128xbf16>
    %c0_88 = arith.constant 0 : index
    %c0_89 = arith.constant 0 : index
    %216 = vector.load %arg5[%c0_88, %c0_89] : memref<128x512xbf16, #tpu.memory_space<vmem>>, vector<128x512xbf16>
    %cst_90 = arith.constant dense<0.000000e+00> : vector<8x512xf32>
    %217 = tpu.matmul %215, %216, %cst_90 {dimension_numbers = #tpu.dot_dimension_numbers<[1], [0], [0], [1], [0, 0, 1, 1], [], []>} : vector<8x128xbf16>, vector<128x512xbf16>, vector<8x512xf32> -> vector<8x512xf32>
    %218 = arith.addf %217, %174 : vector<8x512xf32>
    %219 = arith.addf %218, %5 : vector<8x512xf32>
    %220 = vector.extract_strided_slice %219 {offsets = [0, 0], sizes = [8, 128], strides = [1, 1]} : vector<8x512xf32> to vector<8x128xf32>
    %cst_91 = arith.constant 5.000000e-01 : f32
    %221 = vector.broadcast %cst_91 : f32 to vector<8x128xf32>
    %222 = arith.mulf %221, %220 : vector<8x128xf32>
    %223 = math.tanh %222 : vector<8x128xf32>
    %cst_92 = arith.constant 5.000000e-01 : f32
    %224 = vector.broadcast %cst_92 : f32 to vector<8x128xf32>
    %225 = arith.mulf %224, %223 : vector<8x128xf32>
    %cst_93 = arith.constant 5.000000e-01 : f32
    %226 = vector.broadcast %cst_93 : f32 to vector<8x128xf32>
    %227 = arith.addf %225, %226 : vector<8x128xf32>
    %228 = vector.extract_strided_slice %219 {offsets = [0, 128], sizes = [8, 128], strides = [1, 1]} : vector<8x512xf32> to vector<8x128xf32>
    %cst_94 = arith.constant 5.000000e-01 : f32
    %229 = vector.broadcast %cst_94 : f32 to vector<8x128xf32>
    %230 = arith.mulf %229, %228 : vector<8x128xf32>
    %231 = math.tanh %230 : vector<8x128xf32>
    %cst_95 = arith.constant 5.000000e-01 : f32
    %232 = vector.broadcast %cst_95 : f32 to vector<8x128xf32>
    %233 = arith.mulf %232, %231 : vector<8x128xf32>
    %cst_96 = arith.constant 5.000000e-01 : f32
    %234 = vector.broadcast %cst_96 : f32 to vector<8x128xf32>
    %235 = arith.addf %233, %234 : vector<8x128xf32>
    %236 = vector.extract_strided_slice %219 {offsets = [0, 256], sizes = [8, 128], strides = [1, 1]} : vector<8x512xf32> to vector<8x128xf32>
    %237 = math.tanh %236 : vector<8x128xf32>
    %238 = vector.extract_strided_slice %219 {offsets = [0, 384], sizes = [8, 128], strides = [1, 1]} : vector<8x512xf32> to vector<8x128xf32>
    %cst_97 = arith.constant 5.000000e-01 : f32
    %239 = vector.broadcast %cst_97 : f32 to vector<8x128xf32>
    %240 = arith.mulf %239, %238 : vector<8x128xf32>
    %241 = math.tanh %240 : vector<8x128xf32>
    %cst_98 = arith.constant 5.000000e-01 : f32
    %242 = vector.broadcast %cst_98 : f32 to vector<8x128xf32>
    %243 = arith.mulf %242, %241 : vector<8x128xf32>
    %cst_99 = arith.constant 5.000000e-01 : f32
    %244 = vector.broadcast %cst_99 : f32 to vector<8x128xf32>
    %245 = arith.addf %243, %244 : vector<8x128xf32>
    %246 = arith.mulf %235, %169 : vector<8x128xf32>
    %247 = arith.mulf %227, %237 : vector<8x128xf32>
    %248 = arith.addf %246, %247 : vector<8x128xf32>
    %249 = math.tanh %248 : vector<8x128xf32>
    %250 = arith.mulf %245, %249 : vector<8x128xf32>
    %c3_i32 = arith.constant 3 : i32
    %251 = arith.truncf %250 : vector<8x128xf32> to vector<8x128xbf16>
    %c0_100 = arith.constant 0 : index
    %c0_101 = arith.constant 0 : index
    %252 = vector.load %arg6[%c0_100, %c0_101] : memref<128x512xbf16, #tpu.memory_space<vmem>>, vector<128x512xbf16>
    %cst_102 = arith.constant dense<0.000000e+00> : vector<8x512xf32>
    %253 = tpu.matmul %251, %252, %cst_102 {dimension_numbers = #tpu.dot_dimension_numbers<[1], [0], [0], [1], [0, 0, 1, 1], [], []>} : vector<8x128xbf16>, vector<128x512xbf16>, vector<8x512xf32> -> vector<8x512xf32>
    %254 = arith.index_cast %c3_i32 : i32 to index
    %c0_103 = arith.constant 0 : index
    %c0_104 = arith.constant 0 : index
    %255 = vector.load %arg0[%254, %c0_103, %c0_104] : memref<8x8x512xbf16, #tpu.memory_space<vmem>>, vector<1x8x512xbf16>
    %256 = vector.shape_cast %255 : vector<1x8x512xbf16> to vector<8x512xbf16>
    %257 = arith.extf %256 : vector<8x512xbf16> to vector<8x512xf32>
    %258 = arith.addf %257, %2 : vector<8x512xf32>
    %259 = arith.truncf %214 : vector<8x128xf32> to vector<8x128xbf16>
    %c0_105 = arith.constant 0 : index
    %c0_106 = arith.constant 0 : index
    %260 = vector.load %arg4[%c0_105, %c0_106] : memref<128x512xbf16, #tpu.memory_space<vmem>>, vector<128x512xbf16>
    %cst_107 = arith.constant dense<0.000000e+00> : vector<8x512xf32>
    %261 = tpu.matmul %259, %260, %cst_107 {dimension_numbers = #tpu.dot_dimension_numbers<[1], [0], [0], [1], [0, 0, 1, 1], [], []>} : vector<8x128xbf16>, vector<128x512xbf16>, vector<8x512xf32> -> vector<8x512xf32>
    %262 = arith.addf %258, %261 : vector<8x512xf32>
    %263 = vector.extract_strided_slice %262 {offsets = [0, 0], sizes = [8, 128], strides = [1, 1]} : vector<8x512xf32> to vector<8x128xf32>
    %cst_108 = arith.constant 5.000000e-01 : f32
    %264 = vector.broadcast %cst_108 : f32 to vector<8x128xf32>
    %265 = arith.mulf %264, %263 : vector<8x128xf32>
    %266 = math.tanh %265 : vector<8x128xf32>
    %cst_109 = arith.constant 5.000000e-01 : f32
    %267 = vector.broadcast %cst_109 : f32 to vector<8x128xf32>
    %268 = arith.mulf %267, %266 : vector<8x128xf32>
    %cst_110 = arith.constant 5.000000e-01 : f32
    %269 = vector.broadcast %cst_110 : f32 to vector<8x128xf32>
    %270 = arith.addf %268, %269 : vector<8x128xf32>
    %271 = vector.extract_strided_slice %262 {offsets = [0, 128], sizes = [8, 128], strides = [1, 1]} : vector<8x512xf32> to vector<8x128xf32>
    %cst_111 = arith.constant 5.000000e-01 : f32
    %272 = vector.broadcast %cst_111 : f32 to vector<8x128xf32>
    %273 = arith.mulf %272, %271 : vector<8x128xf32>
    %274 = math.tanh %273 : vector<8x128xf32>
    %cst_112 = arith.constant 5.000000e-01 : f32
    %275 = vector.broadcast %cst_112 : f32 to vector<8x128xf32>
    %276 = arith.mulf %275, %274 : vector<8x128xf32>
    %cst_113 = arith.constant 5.000000e-01 : f32
    %277 = vector.broadcast %cst_113 : f32 to vector<8x128xf32>
    %278 = arith.addf %276, %277 : vector<8x128xf32>
    %279 = vector.extract_strided_slice %262 {offsets = [0, 256], sizes = [8, 128], strides = [1, 1]} : vector<8x512xf32> to vector<8x128xf32>
    %280 = math.tanh %279 : vector<8x128xf32>
    %281 = vector.extract_strided_slice %262 {offsets = [0, 384], sizes = [8, 128], strides = [1, 1]} : vector<8x512xf32> to vector<8x128xf32>
    %cst_114 = arith.constant 5.000000e-01 : f32
    %282 = vector.broadcast %cst_114 : f32 to vector<8x128xf32>
    %283 = arith.mulf %282, %281 : vector<8x128xf32>
    %284 = math.tanh %283 : vector<8x128xf32>
    %cst_115 = arith.constant 5.000000e-01 : f32
    %285 = vector.broadcast %cst_115 : f32 to vector<8x128xf32>
    %286 = arith.mulf %285, %284 : vector<8x128xf32>
    %cst_116 = arith.constant 5.000000e-01 : f32
    %287 = vector.broadcast %cst_116 : f32 to vector<8x128xf32>
    %288 = arith.addf %286, %287 : vector<8x128xf32>
    %289 = arith.mulf %278, %212 : vector<8x128xf32>
    %290 = arith.mulf %270, %280 : vector<8x128xf32>
    %291 = arith.addf %289, %290 : vector<8x128xf32>
    %292 = math.tanh %291 : vector<8x128xf32>
    %293 = arith.mulf %288, %292 : vector<8x128xf32>
    %294 = arith.truncf %293 : vector<8x128xf32> to vector<8x128xbf16>
    %c0_117 = arith.constant 0 : index
    %c0_118 = arith.constant 0 : index
    %295 = vector.load %arg5[%c0_117, %c0_118] : memref<128x512xbf16, #tpu.memory_space<vmem>>, vector<128x512xbf16>
    %cst_119 = arith.constant dense<0.000000e+00> : vector<8x512xf32>
    %296 = tpu.matmul %294, %295, %cst_119 {dimension_numbers = #tpu.dot_dimension_numbers<[1], [0], [0], [1], [0, 0, 1, 1], [], []>} : vector<8x128xbf16>, vector<128x512xbf16>, vector<8x512xf32> -> vector<8x512xf32>
    %297 = arith.addf %296, %253 : vector<8x512xf32>
    %298 = arith.addf %297, %5 : vector<8x512xf32>
    %299 = vector.extract_strided_slice %298 {offsets = [0, 0], sizes = [8, 128], strides = [1, 1]} : vector<8x512xf32> to vector<8x128xf32>
    %cst_120 = arith.constant 5.000000e-01 : f32
    %300 = vector.broadcast %cst_120 : f32 to vector<8x128xf32>
    %301 = arith.mulf %300, %299 : vector<8x128xf32>
    %302 = math.tanh %301 : vector<8x128xf32>
    %cst_121 = arith.constant 5.000000e-01 : f32
    %303 = vector.broadcast %cst_121 : f32 to vector<8x128xf32>
    %304 = arith.mulf %303, %302 : vector<8x128xf32>
    %cst_122 = arith.constant 5.000000e-01 : f32
    %305 = vector.broadcast %cst_122 : f32 to vector<8x128xf32>
    %306 = arith.addf %304, %305 : vector<8x128xf32>
    %307 = vector.extract_strided_slice %298 {offsets = [0, 128], sizes = [8, 128], strides = [1, 1]} : vector<8x512xf32> to vector<8x128xf32>
    %cst_123 = arith.constant 5.000000e-01 : f32
    %308 = vector.broadcast %cst_123 : f32 to vector<8x128xf32>
    %309 = arith.mulf %308, %307 : vector<8x128xf32>
    %310 = math.tanh %309 : vector<8x128xf32>
    %cst_124 = arith.constant 5.000000e-01 : f32
    %311 = vector.broadcast %cst_124 : f32 to vector<8x128xf32>
    %312 = arith.mulf %311, %310 : vector<8x128xf32>
    %cst_125 = arith.constant 5.000000e-01 : f32
    %313 = vector.broadcast %cst_125 : f32 to vector<8x128xf32>
    %314 = arith.addf %312, %313 : vector<8x128xf32>
    %315 = vector.extract_strided_slice %298 {offsets = [0, 256], sizes = [8, 128], strides = [1, 1]} : vector<8x512xf32> to vector<8x128xf32>
    %316 = math.tanh %315 : vector<8x128xf32>
    %317 = vector.extract_strided_slice %298 {offsets = [0, 384], sizes = [8, 128], strides = [1, 1]} : vector<8x512xf32> to vector<8x128xf32>
    %cst_126 = arith.constant 5.000000e-01 : f32
    %318 = vector.broadcast %cst_126 : f32 to vector<8x128xf32>
    %319 = arith.mulf %318, %317 : vector<8x128xf32>
    %320 = math.tanh %319 : vector<8x128xf32>
    %cst_127 = arith.constant 5.000000e-01 : f32
    %321 = vector.broadcast %cst_127 : f32 to vector<8x128xf32>
    %322 = arith.mulf %321, %320 : vector<8x128xf32>
    %cst_128 = arith.constant 5.000000e-01 : f32
    %323 = vector.broadcast %cst_128 : f32 to vector<8x128xf32>
    %324 = arith.addf %322, %323 : vector<8x128xf32>
    %325 = arith.mulf %314, %248 : vector<8x128xf32>
    %326 = arith.mulf %306, %316 : vector<8x128xf32>
    %327 = arith.addf %325, %326 : vector<8x128xf32>
    %328 = math.tanh %327 : vector<8x128xf32>
    %329 = arith.mulf %324, %328 : vector<8x128xf32>
    %c4_i32 = arith.constant 4 : i32
    %330 = arith.truncf %329 : vector<8x128xf32> to vector<8x128xbf16>
    %c0_129 = arith.constant 0 : index
    %c0_130 = arith.constant 0 : index
    %331 = vector.load %arg6[%c0_129, %c0_130] : memref<128x512xbf16, #tpu.memory_space<vmem>>, vector<128x512xbf16>
    %cst_131 = arith.constant dense<0.000000e+00> : vector<8x512xf32>
    %332 = tpu.matmul %330, %331, %cst_131 {dimension_numbers = #tpu.dot_dimension_numbers<[1], [0], [0], [1], [0, 0, 1, 1], [], []>} : vector<8x128xbf16>, vector<128x512xbf16>, vector<8x512xf32> -> vector<8x512xf32>
    %333 = arith.index_cast %c4_i32 : i32 to index
    %c0_132 = arith.constant 0 : index
    %c0_133 = arith.constant 0 : index
    %334 = vector.load %arg0[%333, %c0_132, %c0_133] : memref<8x8x512xbf16, #tpu.memory_space<vmem>>, vector<1x8x512xbf16>
    %335 = vector.shape_cast %334 : vector<1x8x512xbf16> to vector<8x512xbf16>
    %336 = arith.extf %335 : vector<8x512xbf16> to vector<8x512xf32>
    %337 = arith.addf %336, %2 : vector<8x512xf32>
    %338 = arith.truncf %293 : vector<8x128xf32> to vector<8x128xbf16>
    %c0_134 = arith.constant 0 : index
    %c0_135 = arith.constant 0 : index
    %339 = vector.load %arg4[%c0_134, %c0_135] : memref<128x512xbf16, #tpu.memory_space<vmem>>, vector<128x512xbf16>
    %cst_136 = arith.constant dense<0.000000e+00> : vector<8x512xf32>
    %340 = tpu.matmul %338, %339, %cst_136 {dimension_numbers = #tpu.dot_dimension_numbers<[1], [0], [0], [1], [0, 0, 1, 1], [], []>} : vector<8x128xbf16>, vector<128x512xbf16>, vector<8x512xf32> -> vector<8x512xf32>
    %341 = arith.addf %337, %340 : vector<8x512xf32>
    %342 = vector.extract_strided_slice %341 {offsets = [0, 0], sizes = [8, 128], strides = [1, 1]} : vector<8x512xf32> to vector<8x128xf32>
    %cst_137 = arith.constant 5.000000e-01 : f32
    %343 = vector.broadcast %cst_137 : f32 to vector<8x128xf32>
    %344 = arith.mulf %343, %342 : vector<8x128xf32>
    %345 = math.tanh %344 : vector<8x128xf32>
    %cst_138 = arith.constant 5.000000e-01 : f32
    %346 = vector.broadcast %cst_138 : f32 to vector<8x128xf32>
    %347 = arith.mulf %346, %345 : vector<8x128xf32>
    %cst_139 = arith.constant 5.000000e-01 : f32
    %348 = vector.broadcast %cst_139 : f32 to vector<8x128xf32>
    %349 = arith.addf %347, %348 : vector<8x128xf32>
    %350 = vector.extract_strided_slice %341 {offsets = [0, 128], sizes = [8, 128], strides = [1, 1]} : vector<8x512xf32> to vector<8x128xf32>
    %cst_140 = arith.constant 5.000000e-01 : f32
    %351 = vector.broadcast %cst_140 : f32 to vector<8x128xf32>
    %352 = arith.mulf %351, %350 : vector<8x128xf32>
    %353 = math.tanh %352 : vector<8x128xf32>
    %cst_141 = arith.constant 5.000000e-01 : f32
    %354 = vector.broadcast %cst_141 : f32 to vector<8x128xf32>
    %355 = arith.mulf %354, %353 : vector<8x128xf32>
    %cst_142 = arith.constant 5.000000e-01 : f32
    %356 = vector.broadcast %cst_142 : f32 to vector<8x128xf32>
    %357 = arith.addf %355, %356 : vector<8x128xf32>
    %358 = vector.extract_strided_slice %341 {offsets = [0, 256], sizes = [8, 128], strides = [1, 1]} : vector<8x512xf32> to vector<8x128xf32>
    %359 = math.tanh %358 : vector<8x128xf32>
    %360 = vector.extract_strided_slice %341 {offsets = [0, 384], sizes = [8, 128], strides = [1, 1]} : vector<8x512xf32> to vector<8x128xf32>
    %cst_143 = arith.constant 5.000000e-01 : f32
    %361 = vector.broadcast %cst_143 : f32 to vector<8x128xf32>
    %362 = arith.mulf %361, %360 : vector<8x128xf32>
    %363 = math.tanh %362 : vector<8x128xf32>
    %cst_144 = arith.constant 5.000000e-01 : f32
    %364 = vector.broadcast %cst_144 : f32 to vector<8x128xf32>
    %365 = arith.mulf %364, %363 : vector<8x128xf32>
    %cst_145 = arith.constant 5.000000e-01 : f32
    %366 = vector.broadcast %cst_145 : f32 to vector<8x128xf32>
    %367 = arith.addf %365, %366 : vector<8x128xf32>
    %368 = arith.mulf %357, %291 : vector<8x128xf32>
    %369 = arith.mulf %349, %359 : vector<8x128xf32>
    %370 = arith.addf %368, %369 : vector<8x128xf32>
    %371 = math.tanh %370 : vector<8x128xf32>
    %372 = arith.mulf %367, %371 : vector<8x128xf32>
    %373 = arith.truncf %372 : vector<8x128xf32> to vector<8x128xbf16>
    %c0_146 = arith.constant 0 : index
    %c0_147 = arith.constant 0 : index
    %374 = vector.load %arg5[%c0_146, %c0_147] : memref<128x512xbf16, #tpu.memory_space<vmem>>, vector<128x512xbf16>
    %cst_148 = arith.constant dense<0.000000e+00> : vector<8x512xf32>
    %375 = tpu.matmul %373, %374, %cst_148 {dimension_numbers = #tpu.dot_dimension_numbers<[1], [0], [0], [1], [0, 0, 1, 1], [], []>} : vector<8x128xbf16>, vector<128x512xbf16>, vector<8x512xf32> -> vector<8x512xf32>
    %376 = arith.addf %375, %332 : vector<8x512xf32>
    %377 = arith.addf %376, %5 : vector<8x512xf32>
    %378 = vector.extract_strided_slice %377 {offsets = [0, 0], sizes = [8, 128], strides = [1, 1]} : vector<8x512xf32> to vector<8x128xf32>
    %cst_149 = arith.constant 5.000000e-01 : f32
    %379 = vector.broadcast %cst_149 : f32 to vector<8x128xf32>
    %380 = arith.mulf %379, %378 : vector<8x128xf32>
    %381 = math.tanh %380 : vector<8x128xf32>
    %cst_150 = arith.constant 5.000000e-01 : f32
    %382 = vector.broadcast %cst_150 : f32 to vector<8x128xf32>
    %383 = arith.mulf %382, %381 : vector<8x128xf32>
    %cst_151 = arith.constant 5.000000e-01 : f32
    %384 = vector.broadcast %cst_151 : f32 to vector<8x128xf32>
    %385 = arith.addf %383, %384 : vector<8x128xf32>
    %386 = vector.extract_strided_slice %377 {offsets = [0, 128], sizes = [8, 128], strides = [1, 1]} : vector<8x512xf32> to vector<8x128xf32>
    %cst_152 = arith.constant 5.000000e-01 : f32
    %387 = vector.broadcast %cst_152 : f32 to vector<8x128xf32>
    %388 = arith.mulf %387, %386 : vector<8x128xf32>
    %389 = math.tanh %388 : vector<8x128xf32>
    %cst_153 = arith.constant 5.000000e-01 : f32
    %390 = vector.broadcast %cst_153 : f32 to vector<8x128xf32>
    %391 = arith.mulf %390, %389 : vector<8x128xf32>
    %cst_154 = arith.constant 5.000000e-01 : f32
    %392 = vector.broadcast %cst_154 : f32 to vector<8x128xf32>
    %393 = arith.addf %391, %392 : vector<8x128xf32>
    %394 = vector.extract_strided_slice %377 {offsets = [0, 256], sizes = [8, 128], strides = [1, 1]} : vector<8x512xf32> to vector<8x128xf32>
    %395 = math.tanh %394 : vector<8x128xf32>
    %396 = vector.extract_strided_slice %377 {offsets = [0, 384], sizes = [8, 128], strides = [1, 1]} : vector<8x512xf32> to vector<8x128xf32>
    %cst_155 = arith.constant 5.000000e-01 : f32
    %397 = vector.broadcast %cst_155 : f32 to vector<8x128xf32>
    %398 = arith.mulf %397, %396 : vector<8x128xf32>
    %399 = math.tanh %398 : vector<8x128xf32>
    %cst_156 = arith.constant 5.000000e-01 : f32
    %400 = vector.broadcast %cst_156 : f32 to vector<8x128xf32>
    %401 = arith.mulf %400, %399 : vector<8x128xf32>
    %cst_157 = arith.constant 5.000000e-01 : f32
    %402 = vector.broadcast %cst_157 : f32 to vector<8x128xf32>
    %403 = arith.addf %401, %402 : vector<8x128xf32>
    %404 = arith.mulf %393, %327 : vector<8x128xf32>
    %405 = arith.mulf %385, %395 : vector<8x128xf32>
    %406 = arith.addf %404, %405 : vector<8x128xf32>
    %407 = math.tanh %406 : vector<8x128xf32>
    %408 = arith.mulf %403, %407 : vector<8x128xf32>
    %c5_i32 = arith.constant 5 : i32
    %409 = arith.truncf %408 : vector<8x128xf32> to vector<8x128xbf16>
    %c0_158 = arith.constant 0 : index
    %c0_159 = arith.constant 0 : index
    %410 = vector.load %arg6[%c0_158, %c0_159] : memref<128x512xbf16, #tpu.memory_space<vmem>>, vector<128x512xbf16>
    %cst_160 = arith.constant dense<0.000000e+00> : vector<8x512xf32>
    %411 = tpu.matmul %409, %410, %cst_160 {dimension_numbers = #tpu.dot_dimension_numbers<[1], [0], [0], [1], [0, 0, 1, 1], [], []>} : vector<8x128xbf16>, vector<128x512xbf16>, vector<8x512xf32> -> vector<8x512xf32>
    %412 = arith.index_cast %c5_i32 : i32 to index
    %c0_161 = arith.constant 0 : index
    %c0_162 = arith.constant 0 : index
    %413 = vector.load %arg0[%412, %c0_161, %c0_162] : memref<8x8x512xbf16, #tpu.memory_space<vmem>>, vector<1x8x512xbf16>
    %414 = vector.shape_cast %413 : vector<1x8x512xbf16> to vector<8x512xbf16>
    %415 = arith.extf %414 : vector<8x512xbf16> to vector<8x512xf32>
    %416 = arith.addf %415, %2 : vector<8x512xf32>
    %417 = arith.truncf %372 : vector<8x128xf32> to vector<8x128xbf16>
    %c0_163 = arith.constant 0 : index
    %c0_164 = arith.constant 0 : index
    %418 = vector.load %arg4[%c0_163, %c0_164] : memref<128x512xbf16, #tpu.memory_space<vmem>>, vector<128x512xbf16>
    %cst_165 = arith.constant dense<0.000000e+00> : vector<8x512xf32>
    %419 = tpu.matmul %417, %418, %cst_165 {dimension_numbers = #tpu.dot_dimension_numbers<[1], [0], [0], [1], [0, 0, 1, 1], [], []>} : vector<8x128xbf16>, vector<128x512xbf16>, vector<8x512xf32> -> vector<8x512xf32>
    %420 = arith.addf %416, %419 : vector<8x512xf32>
    %421 = vector.extract_strided_slice %420 {offsets = [0, 0], sizes = [8, 128], strides = [1, 1]} : vector<8x512xf32> to vector<8x128xf32>
    %cst_166 = arith.constant 5.000000e-01 : f32
    %422 = vector.broadcast %cst_166 : f32 to vector<8x128xf32>
    %423 = arith.mulf %422, %421 : vector<8x128xf32>
    %424 = math.tanh %423 : vector<8x128xf32>
    %cst_167 = arith.constant 5.000000e-01 : f32
    %425 = vector.broadcast %cst_167 : f32 to vector<8x128xf32>
    %426 = arith.mulf %425, %424 : vector<8x128xf32>
    %cst_168 = arith.constant 5.000000e-01 : f32
    %427 = vector.broadcast %cst_168 : f32 to vector<8x128xf32>
    %428 = arith.addf %426, %427 : vector<8x128xf32>
    %429 = vector.extract_strided_slice %420 {offsets = [0, 128], sizes = [8, 128], strides = [1, 1]} : vector<8x512xf32> to vector<8x128xf32>
    %cst_169 = arith.constant 5.000000e-01 : f32
    %430 = vector.broadcast %cst_169 : f32 to vector<8x128xf32>
    %431 = arith.mulf %430, %429 : vector<8x128xf32>
    %432 = math.tanh %431 : vector<8x128xf32>
    %cst_170 = arith.constant 5.000000e-01 : f32
    %433 = vector.broadcast %cst_170 : f32 to vector<8x128xf32>
    %434 = arith.mulf %433, %432 : vector<8x128xf32>
    %cst_171 = arith.constant 5.000000e-01 : f32
    %435 = vector.broadcast %cst_171 : f32 to vector<8x128xf32>
    %436 = arith.addf %434, %435 : vector<8x128xf32>
    %437 = vector.extract_strided_slice %420 {offsets = [0, 256], sizes = [8, 128], strides = [1, 1]} : vector<8x512xf32> to vector<8x128xf32>
    %438 = math.tanh %437 : vector<8x128xf32>
    %439 = vector.extract_strided_slice %420 {offsets = [0, 384], sizes = [8, 128], strides = [1, 1]} : vector<8x512xf32> to vector<8x128xf32>
    %cst_172 = arith.constant 5.000000e-01 : f32
    %440 = vector.broadcast %cst_172 : f32 to vector<8x128xf32>
    %441 = arith.mulf %440, %439 : vector<8x128xf32>
    %442 = math.tanh %441 : vector<8x128xf32>
    %cst_173 = arith.constant 5.000000e-01 : f32
    %443 = vector.broadcast %cst_173 : f32 to vector<8x128xf32>
    %444 = arith.mulf %443, %442 : vector<8x128xf32>
    %cst_174 = arith.constant 5.000000e-01 : f32
    %445 = vector.broadcast %cst_174 : f32 to vector<8x128xf32>
    %446 = arith.addf %444, %445 : vector<8x128xf32>
    %447 = arith.mulf %436, %370 : vector<8x128xf32>
    %448 = arith.mulf %428, %438 : vector<8x128xf32>
    %449 = arith.addf %447, %448 : vector<8x128xf32>
    %450 = math.tanh %449 : vector<8x128xf32>
    %451 = arith.mulf %446, %450 : vector<8x128xf32>
    %452 = arith.truncf %451 : vector<8x128xf32> to vector<8x128xbf16>
    %c0_175 = arith.constant 0 : index
    %c0_176 = arith.constant 0 : index
    %453 = vector.load %arg5[%c0_175, %c0_176] : memref<128x512xbf16, #tpu.memory_space<vmem>>, vector<128x512xbf16>
    %cst_177 = arith.constant dense<0.000000e+00> : vector<8x512xf32>
    %454 = tpu.matmul %452, %453, %cst_177 {dimension_numbers = #tpu.dot_dimension_numbers<[1], [0], [0], [1], [0, 0, 1, 1], [], []>} : vector<8x128xbf16>, vector<128x512xbf16>, vector<8x512xf32> -> vector<8x512xf32>
    %455 = arith.addf %454, %411 : vector<8x512xf32>
    %456 = arith.addf %455, %5 : vector<8x512xf32>
    %457 = vector.extract_strided_slice %456 {offsets = [0, 0], sizes = [8, 128], strides = [1, 1]} : vector<8x512xf32> to vector<8x128xf32>
    %cst_178 = arith.constant 5.000000e-01 : f32
    %458 = vector.broadcast %cst_178 : f32 to vector<8x128xf32>
    %459 = arith.mulf %458, %457 : vector<8x128xf32>
    %460 = math.tanh %459 : vector<8x128xf32>
    %cst_179 = arith.constant 5.000000e-01 : f32
    %461 = vector.broadcast %cst_179 : f32 to vector<8x128xf32>
    %462 = arith.mulf %461, %460 : vector<8x128xf32>
    %cst_180 = arith.constant 5.000000e-01 : f32
    %463 = vector.broadcast %cst_180 : f32 to vector<8x128xf32>
    %464 = arith.addf %462, %463 : vector<8x128xf32>
    %465 = vector.extract_strided_slice %456 {offsets = [0, 128], sizes = [8, 128], strides = [1, 1]} : vector<8x512xf32> to vector<8x128xf32>
    %cst_181 = arith.constant 5.000000e-01 : f32
    %466 = vector.broadcast %cst_181 : f32 to vector<8x128xf32>
    %467 = arith.mulf %466, %465 : vector<8x128xf32>
    %468 = math.tanh %467 : vector<8x128xf32>
    %cst_182 = arith.constant 5.000000e-01 : f32
    %469 = vector.broadcast %cst_182 : f32 to vector<8x128xf32>
    %470 = arith.mulf %469, %468 : vector<8x128xf32>
    %cst_183 = arith.constant 5.000000e-01 : f32
    %471 = vector.broadcast %cst_183 : f32 to vector<8x128xf32>
    %472 = arith.addf %470, %471 : vector<8x128xf32>
    %473 = vector.extract_strided_slice %456 {offsets = [0, 256], sizes = [8, 128], strides = [1, 1]} : vector<8x512xf32> to vector<8x128xf32>
    %474 = math.tanh %473 : vector<8x128xf32>
    %475 = vector.extract_strided_slice %456 {offsets = [0, 384], sizes = [8, 128], strides = [1, 1]} : vector<8x512xf32> to vector<8x128xf32>
    %cst_184 = arith.constant 5.000000e-01 : f32
    %476 = vector.broadcast %cst_184 : f32 to vector<8x128xf32>
    %477 = arith.mulf %476, %475 : vector<8x128xf32>
    %478 = math.tanh %477 : vector<8x128xf32>
    %cst_185 = arith.constant 5.000000e-01 : f32
    %479 = vector.broadcast %cst_185 : f32 to vector<8x128xf32>
    %480 = arith.mulf %479, %478 : vector<8x128xf32>
    %cst_186 = arith.constant 5.000000e-01 : f32
    %481 = vector.broadcast %cst_186 : f32 to vector<8x128xf32>
    %482 = arith.addf %480, %481 : vector<8x128xf32>
    %483 = arith.mulf %472, %406 : vector<8x128xf32>
    %484 = arith.mulf %464, %474 : vector<8x128xf32>
    %485 = arith.addf %483, %484 : vector<8x128xf32>
    %486 = math.tanh %485 : vector<8x128xf32>
    %487 = arith.mulf %482, %486 : vector<8x128xf32>
    %c6_i32 = arith.constant 6 : i32
    %488 = arith.truncf %487 : vector<8x128xf32> to vector<8x128xbf16>
    %c0_187 = arith.constant 0 : index
    %c0_188 = arith.constant 0 : index
    %489 = vector.load %arg6[%c0_187, %c0_188] : memref<128x512xbf16, #tpu.memory_space<vmem>>, vector<128x512xbf16>
    %cst_189 = arith.constant dense<0.000000e+00> : vector<8x512xf32>
    %490 = tpu.matmul %488, %489, %cst_189 {dimension_numbers = #tpu.dot_dimension_numbers<[1], [0], [0], [1], [0, 0, 1, 1], [], []>} : vector<8x128xbf16>, vector<128x512xbf16>, vector<8x512xf32> -> vector<8x512xf32>
    %491 = arith.index_cast %c6_i32 : i32 to index
    %c0_190 = arith.constant 0 : index
    %c0_191 = arith.constant 0 : index
    %492 = vector.load %arg0[%491, %c0_190, %c0_191] : memref<8x8x512xbf16, #tpu.memory_space<vmem>>, vector<1x8x512xbf16>
    %493 = vector.shape_cast %492 : vector<1x8x512xbf16> to vector<8x512xbf16>
    %494 = arith.extf %493 : vector<8x512xbf16> to vector<8x512xf32>
    %495 = arith.addf %494, %2 : vector<8x512xf32>
    %496 = arith.truncf %451 : vector<8x128xf32> to vector<8x128xbf16>
    %c0_192 = arith.constant 0 : index
    %c0_193 = arith.constant 0 : index
    %497 = vector.load %arg4[%c0_192, %c0_193] : memref<128x512xbf16, #tpu.memory_space<vmem>>, vector<128x512xbf16>
    %cst_194 = arith.constant dense<0.000000e+00> : vector<8x512xf32>
    %498 = tpu.matmul %496, %497, %cst_194 {dimension_numbers = #tpu.dot_dimension_numbers<[1], [0], [0], [1], [0, 0, 1, 1], [], []>} : vector<8x128xbf16>, vector<128x512xbf16>, vector<8x512xf32> -> vector<8x512xf32>
    %499 = arith.addf %495, %498 : vector<8x512xf32>
    %500 = vector.extract_strided_slice %499 {offsets = [0, 0], sizes = [8, 128], strides = [1, 1]} : vector<8x512xf32> to vector<8x128xf32>
    %cst_195 = arith.constant 5.000000e-01 : f32
    %501 = vector.broadcast %cst_195 : f32 to vector<8x128xf32>
    %502 = arith.mulf %501, %500 : vector<8x128xf32>
    %503 = math.tanh %502 : vector<8x128xf32>
    %cst_196 = arith.constant 5.000000e-01 : f32
    %504 = vector.broadcast %cst_196 : f32 to vector<8x128xf32>
    %505 = arith.mulf %504, %503 : vector<8x128xf32>
    %cst_197 = arith.constant 5.000000e-01 : f32
    %506 = vector.broadcast %cst_197 : f32 to vector<8x128xf32>
    %507 = arith.addf %505, %506 : vector<8x128xf32>
    %508 = vector.extract_strided_slice %499 {offsets = [0, 128], sizes = [8, 128], strides = [1, 1]} : vector<8x512xf32> to vector<8x128xf32>
    %cst_198 = arith.constant 5.000000e-01 : f32
    %509 = vector.broadcast %cst_198 : f32 to vector<8x128xf32>
    %510 = arith.mulf %509, %508 : vector<8x128xf32>
    %511 = math.tanh %510 : vector<8x128xf32>
    %cst_199 = arith.constant 5.000000e-01 : f32
    %512 = vector.broadcast %cst_199 : f32 to vector<8x128xf32>
    %513 = arith.mulf %512, %511 : vector<8x128xf32>
    %cst_200 = arith.constant 5.000000e-01 : f32
    %514 = vector.broadcast %cst_200 : f32 to vector<8x128xf32>
    %515 = arith.addf %513, %514 : vector<8x128xf32>
    %516 = vector.extract_strided_slice %499 {offsets = [0, 256], sizes = [8, 128], strides = [1, 1]} : vector<8x512xf32> to vector<8x128xf32>
    %517 = math.tanh %516 : vector<8x128xf32>
    %518 = vector.extract_strided_slice %499 {offsets = [0, 384], sizes = [8, 128], strides = [1, 1]} : vector<8x512xf32> to vector<8x128xf32>
    %cst_201 = arith.constant 5.000000e-01 : f32
    %519 = vector.broadcast %cst_201 : f32 to vector<8x128xf32>
    %520 = arith.mulf %519, %518 : vector<8x128xf32>
    %521 = math.tanh %520 : vector<8x128xf32>
    %cst_202 = arith.constant 5.000000e-01 : f32
    %522 = vector.broadcast %cst_202 : f32 to vector<8x128xf32>
    %523 = arith.mulf %522, %521 : vector<8x128xf32>
    %cst_203 = arith.constant 5.000000e-01 : f32
    %524 = vector.broadcast %cst_203 : f32 to vector<8x128xf32>
    %525 = arith.addf %523, %524 : vector<8x128xf32>
    %526 = arith.mulf %515, %449 : vector<8x128xf32>
    %527 = arith.mulf %507, %517 : vector<8x128xf32>
    %528 = arith.addf %526, %527 : vector<8x128xf32>
    %529 = math.tanh %528 : vector<8x128xf32>
    %530 = arith.mulf %525, %529 : vector<8x128xf32>
    %531 = arith.truncf %530 : vector<8x128xf32> to vector<8x128xbf16>
    %c0_204 = arith.constant 0 : index
    %c0_205 = arith.constant 0 : index
    %532 = vector.load %arg5[%c0_204, %c0_205] : memref<128x512xbf16, #tpu.memory_space<vmem>>, vector<128x512xbf16>
    %cst_206 = arith.constant dense<0.000000e+00> : vector<8x512xf32>
    %533 = tpu.matmul %531, %532, %cst_206 {dimension_numbers = #tpu.dot_dimension_numbers<[1], [0], [0], [1], [0, 0, 1, 1], [], []>} : vector<8x128xbf16>, vector<128x512xbf16>, vector<8x512xf32> -> vector<8x512xf32>
    %534 = arith.addf %533, %490 : vector<8x512xf32>
    %535 = arith.addf %534, %5 : vector<8x512xf32>
    %536 = vector.extract_strided_slice %535 {offsets = [0, 0], sizes = [8, 128], strides = [1, 1]} : vector<8x512xf32> to vector<8x128xf32>
    %cst_207 = arith.constant 5.000000e-01 : f32
    %537 = vector.broadcast %cst_207 : f32 to vector<8x128xf32>
    %538 = arith.mulf %537, %536 : vector<8x128xf32>
    %539 = math.tanh %538 : vector<8x128xf32>
    %cst_208 = arith.constant 5.000000e-01 : f32
    %540 = vector.broadcast %cst_208 : f32 to vector<8x128xf32>
    %541 = arith.mulf %540, %539 : vector<8x128xf32>
    %cst_209 = arith.constant 5.000000e-01 : f32
    %542 = vector.broadcast %cst_209 : f32 to vector<8x128xf32>
    %543 = arith.addf %541, %542 : vector<8x128xf32>
    %544 = vector.extract_strided_slice %535 {offsets = [0, 128], sizes = [8, 128], strides = [1, 1]} : vector<8x512xf32> to vector<8x128xf32>
    %cst_210 = arith.constant 5.000000e-01 : f32
    %545 = vector.broadcast %cst_210 : f32 to vector<8x128xf32>
    %546 = arith.mulf %545, %544 : vector<8x128xf32>
    %547 = math.tanh %546 : vector<8x128xf32>
    %cst_211 = arith.constant 5.000000e-01 : f32
    %548 = vector.broadcast %cst_211 : f32 to vector<8x128xf32>
    %549 = arith.mulf %548, %547 : vector<8x128xf32>
    %cst_212 = arith.constant 5.000000e-01 : f32
    %550 = vector.broadcast %cst_212 : f32 to vector<8x128xf32>
    %551 = arith.addf %549, %550 : vector<8x128xf32>
    %552 = vector.extract_strided_slice %535 {offsets = [0, 256], sizes = [8, 128], strides = [1, 1]} : vector<8x512xf32> to vector<8x128xf32>
    %553 = math.tanh %552 : vector<8x128xf32>
    %554 = vector.extract_strided_slice %535 {offsets = [0, 384], sizes = [8, 128], strides = [1, 1]} : vector<8x512xf32> to vector<8x128xf32>
    %cst_213 = arith.constant 5.000000e-01 : f32
    %555 = vector.broadcast %cst_213 : f32 to vector<8x128xf32>
    %556 = arith.mulf %555, %554 : vector<8x128xf32>
    %557 = math.tanh %556 : vector<8x128xf32>
    %cst_214 = arith.constant 5.000000e-01 : f32
    %558 = vector.broadcast %cst_214 : f32 to vector<8x128xf32>
    %559 = arith.mulf %558, %557 : vector<8x128xf32>
    %cst_215 = arith.constant 5.000000e-01 : f32
    %560 = vector.broadcast %cst_215 : f32 to vector<8x128xf32>
    %561 = arith.addf %559, %560 : vector<8x128xf32>
    %562 = arith.mulf %551, %485 : vector<8x128xf32>
    %563 = arith.mulf %543, %553 : vector<8x128xf32>
    %564 = arith.addf %562, %563 : vector<8x128xf32>
    %565 = math.tanh %564 : vector<8x128xf32>
    %566 = arith.mulf %561, %565 : vector<8x128xf32>
    %c7_i32 = arith.constant 7 : i32
    %567 = arith.truncf %566 : vector<8x128xf32> to vector<8x128xbf16>
    %c0_216 = arith.constant 0 : index
    %c0_217 = arith.constant 0 : index
    %568 = vector.load %arg6[%c0_216, %c0_217] : memref<128x512xbf16, #tpu.memory_space<vmem>>, vector<128x512xbf16>
    %cst_218 = arith.constant dense<0.000000e+00> : vector<8x512xf32>
    %569 = tpu.matmul %567, %568, %cst_218 {dimension_numbers = #tpu.dot_dimension_numbers<[1], [0], [0], [1], [0, 0, 1, 1], [], []>} : vector<8x128xbf16>, vector<128x512xbf16>, vector<8x512xf32> -> vector<8x512xf32>
    %570 = arith.index_cast %c7_i32 : i32 to index
    %c0_219 = arith.constant 0 : index
    %c0_220 = arith.constant 0 : index
    %571 = vector.load %arg0[%570, %c0_219, %c0_220] : memref<8x8x512xbf16, #tpu.memory_space<vmem>>, vector<1x8x512xbf16>
    %572 = vector.shape_cast %571 : vector<1x8x512xbf16> to vector<8x512xbf16>
    %573 = arith.extf %572 : vector<8x512xbf16> to vector<8x512xf32>
    %574 = arith.addf %573, %2 : vector<8x512xf32>
    %575 = arith.truncf %530 : vector<8x128xf32> to vector<8x128xbf16>
    %c0_221 = arith.constant 0 : index
    %c0_222 = arith.constant 0 : index
    %576 = vector.load %arg4[%c0_221, %c0_222] : memref<128x512xbf16, #tpu.memory_space<vmem>>, vector<128x512xbf16>
    %cst_223 = arith.constant dense<0.000000e+00> : vector<8x512xf32>
    %577 = tpu.matmul %575, %576, %cst_223 {dimension_numbers = #tpu.dot_dimension_numbers<[1], [0], [0], [1], [0, 0, 1, 1], [], []>} : vector<8x128xbf16>, vector<128x512xbf16>, vector<8x512xf32> -> vector<8x512xf32>
    %578 = arith.addf %574, %577 : vector<8x512xf32>
    %579 = vector.extract_strided_slice %578 {offsets = [0, 0], sizes = [8, 128], strides = [1, 1]} : vector<8x512xf32> to vector<8x128xf32>
    %cst_224 = arith.constant 5.000000e-01 : f32
    %580 = vector.broadcast %cst_224 : f32 to vector<8x128xf32>
    %581 = arith.mulf %580, %579 : vector<8x128xf32>
    %582 = math.tanh %581 : vector<8x128xf32>
    %cst_225 = arith.constant 5.000000e-01 : f32
    %583 = vector.broadcast %cst_225 : f32 to vector<8x128xf32>
    %584 = arith.mulf %583, %582 : vector<8x128xf32>
    %cst_226 = arith.constant 5.000000e-01 : f32
    %585 = vector.broadcast %cst_226 : f32 to vector<8x128xf32>
    %586 = arith.addf %584, %585 : vector<8x128xf32>
    %587 = vector.extract_strided_slice %578 {offsets = [0, 128], sizes = [8, 128], strides = [1, 1]} : vector<8x512xf32> to vector<8x128xf32>
    %cst_227 = arith.constant 5.000000e-01 : f32
    %588 = vector.broadcast %cst_227 : f32 to vector<8x128xf32>
    %589 = arith.mulf %588, %587 : vector<8x128xf32>
    %590 = math.tanh %589 : vector<8x128xf32>
    %cst_228 = arith.constant 5.000000e-01 : f32
    %591 = vector.broadcast %cst_228 : f32 to vector<8x128xf32>
    %592 = arith.mulf %591, %590 : vector<8x128xf32>
    %cst_229 = arith.constant 5.000000e-01 : f32
    %593 = vector.broadcast %cst_229 : f32 to vector<8x128xf32>
    %594 = arith.addf %592, %593 : vector<8x128xf32>
    %595 = vector.extract_strided_slice %578 {offsets = [0, 256], sizes = [8, 128], strides = [1, 1]} : vector<8x512xf32> to vector<8x128xf32>
    %596 = math.tanh %595 : vector<8x128xf32>
    %597 = vector.extract_strided_slice %578 {offsets = [0, 384], sizes = [8, 128], strides = [1, 1]} : vector<8x512xf32> to vector<8x128xf32>
    %cst_230 = arith.constant 5.000000e-01 : f32
    %598 = vector.broadcast %cst_230 : f32 to vector<8x128xf32>
    %599 = arith.mulf %598, %597 : vector<8x128xf32>
    %600 = math.tanh %599 : vector<8x128xf32>
    %cst_231 = arith.constant 5.000000e-01 : f32
    %601 = vector.broadcast %cst_231 : f32 to vector<8x128xf32>
    %602 = arith.mulf %601, %600 : vector<8x128xf32>
    %cst_232 = arith.constant 5.000000e-01 : f32
    %603 = vector.broadcast %cst_232 : f32 to vector<8x128xf32>
    %604 = arith.addf %602, %603 : vector<8x128xf32>
    %605 = arith.mulf %594, %528 : vector<8x128xf32>
    %606 = arith.mulf %586, %596 : vector<8x128xf32>
    %607 = arith.addf %605, %606 : vector<8x128xf32>
    %608 = math.tanh %607 : vector<8x128xf32>
    %609 = arith.mulf %604, %608 : vector<8x128xf32>
    %610 = arith.truncf %609 : vector<8x128xf32> to vector<8x128xbf16>
    %c0_233 = arith.constant 0 : index
    %c0_234 = arith.constant 0 : index
    %611 = vector.load %arg5[%c0_233, %c0_234] : memref<128x512xbf16, #tpu.memory_space<vmem>>, vector<128x512xbf16>
    %cst_235 = arith.constant dense<0.000000e+00> : vector<8x512xf32>
    %612 = tpu.matmul %610, %611, %cst_235 {dimension_numbers = #tpu.dot_dimension_numbers<[1], [0], [0], [1], [0, 0, 1, 1], [], []>} : vector<8x128xbf16>, vector<128x512xbf16>, vector<8x512xf32> -> vector<8x512xf32>
    %613 = arith.addf %612, %569 : vector<8x512xf32>
    %614 = arith.addf %613, %5 : vector<8x512xf32>
    %615 = vector.extract_strided_slice %614 {offsets = [0, 0], sizes = [8, 128], strides = [1, 1]} : vector<8x512xf32> to vector<8x128xf32>
    %cst_236 = arith.constant 5.000000e-01 : f32
    %616 = vector.broadcast %cst_236 : f32 to vector<8x128xf32>
    %617 = arith.mulf %616, %615 : vector<8x128xf32>
    %618 = math.tanh %617 : vector<8x128xf32>
    %cst_237 = arith.constant 5.000000e-01 : f32
    %619 = vector.broadcast %cst_237 : f32 to vector<8x128xf32>
    %620 = arith.mulf %619, %618 : vector<8x128xf32>
    %cst_238 = arith.constant 5.000000e-01 : f32
    %621 = vector.broadcast %cst_238 : f32 to vector<8x128xf32>
    %622 = arith.addf %620, %621 : vector<8x128xf32>
    %623 = vector.extract_strided_slice %614 {offsets = [0, 128], sizes = [8, 128], strides = [1, 1]} : vector<8x512xf32> to vector<8x128xf32>
    %cst_239 = arith.constant 5.000000e-01 : f32
    %624 = vector.broadcast %cst_239 : f32 to vector<8x128xf32>
    %625 = arith.mulf %624, %623 : vector<8x128xf32>
    %626 = math.tanh %625 : vector<8x128xf32>
    %cst_240 = arith.constant 5.000000e-01 : f32
    %627 = vector.broadcast %cst_240 : f32 to vector<8x128xf32>
    %628 = arith.mulf %627, %626 : vector<8x128xf32>
    %cst_241 = arith.constant 5.000000e-01 : f32
    %629 = vector.broadcast %cst_241 : f32 to vector<8x128xf32>
    %630 = arith.addf %628, %629 : vector<8x128xf32>
    %631 = vector.extract_strided_slice %614 {offsets = [0, 256], sizes = [8, 128], strides = [1, 1]} : vector<8x512xf32> to vector<8x128xf32>
    %632 = math.tanh %631 : vector<8x128xf32>
    %633 = vector.extract_strided_slice %614 {offsets = [0, 384], sizes = [8, 128], strides = [1, 1]} : vector<8x512xf32> to vector<8x128xf32>
    %cst_242 = arith.constant 5.000000e-01 : f32
    %634 = vector.broadcast %cst_242 : f32 to vector<8x128xf32>
    %635 = arith.mulf %634, %633 : vector<8x128xf32>
    %636 = math.tanh %635 : vector<8x128xf32>
    %cst_243 = arith.constant 5.000000e-01 : f32
    %637 = vector.broadcast %cst_243 : f32 to vector<8x128xf32>
    %638 = arith.mulf %637, %636 : vector<8x128xf32>
    %cst_244 = arith.constant 5.000000e-01 : f32
    %639 = vector.broadcast %cst_244 : f32 to vector<8x128xf32>
    %640 = arith.addf %638, %639 : vector<8x128xf32>
    %641 = arith.mulf %630, %564 : vector<8x128xf32>
    %642 = arith.mulf %622, %632 : vector<8x128xf32>
    %643 = arith.addf %641, %642 : vector<8x128xf32>
    %644 = math.tanh %643 : vector<8x128xf32>
    %645 = arith.mulf %640, %644 : vector<8x128xf32>
    %c8_i32 = arith.constant 8 : i32
    %c0_245 = arith.constant 0 : index
    %c0_246 = arith.constant 0 : index
    %c0_247 = arith.constant 0 : index
    %646 = vector.load %arg11[%c0_245, %c0_246, %c0_247] : memref<2x8x128xf32, #tpu.memory_space<vmem>>, vector<1x8x128xf32>
    %647 = vector.shape_cast %646 : vector<1x8x128xf32> to vector<8x128xf32>
    %648 = vector.shape_cast %609 : vector<8x128xf32> to vector<1x8x128xf32>
    tpu.vector_store %arg11[%c0_245, %c0_246, %c0_247], %648 {strides = array<i32>} : memref<2x8x128xf32, #tpu.memory_space<vmem>>, vector<1x8x128xf32>,
    %c1_248 = arith.constant 1 : index
    %c0_249 = arith.constant 0 : index
    %c0_250 = arith.constant 0 : index
    %649 = vector.load %arg11[%c1_248, %c0_249, %c0_250] : memref<2x8x128xf32, #tpu.memory_space<vmem>>, vector<1x8x128xf32>
    %650 = vector.shape_cast %649 : vector<1x8x128xf32> to vector<8x128xf32>
    %651 = vector.shape_cast %645 : vector<8x128xf32> to vector<1x8x128xf32>
    tpu.vector_store %arg11[%c1_248, %c0_249, %c0_250], %651 {strides = array<i32>} : memref<2x8x128xf32, #tpu.memory_space<vmem>>, vector<1x8x128xf32>,
    %c0_251 = arith.constant 0 : index
    %c0_252 = arith.constant 0 : index
    %c0_253 = arith.constant 0 : index
    %652 = vector.load %arg12[%c0_251, %c0_252, %c0_253] : memref<2x8x128xf32, #tpu.memory_space<vmem>>, vector<1x8x128xf32>
    %653 = vector.shape_cast %652 : vector<1x8x128xf32> to vector<8x128xf32>
    %654 = vector.shape_cast %607 : vector<8x128xf32> to vector<1x8x128xf32>
    tpu.vector_store %arg12[%c0_251, %c0_252, %c0_253], %654 {strides = array<i32>} : memref<2x8x128xf32, #tpu.memory_space<vmem>>, vector<1x8x128xf32>,
    %c1_254 = arith.constant 1 : index
    %c0_255 = arith.constant 0 : index
    %c0_256 = arith.constant 0 : index
    %655 = vector.load %arg12[%c1_254, %c0_255, %c0_256] : memref<2x8x128xf32, #tpu.memory_space<vmem>>, vector<1x8x128xf32>
    %656 = vector.shape_cast %655 : vector<1x8x128xf32> to vector<8x128xf32>
    %657 = vector.shape_cast %643 : vector<8x128xf32> to vector<1x8x128xf32>
    tpu.vector_store %arg12[%c1_254, %c0_255, %c0_256], %657 {strides = array<i32>} : memref<2x8x128xf32, #tpu.memory_space<vmem>>, vector<1x8x128xf32>,
    %658 = arith.truncf %645 : vector<8x128xf32> to vector<8x128xbf16>
    %c0_257 = arith.constant 0 : index
    %c0_258 = arith.constant 0 : index
    %659 = vector.load %arg8[%c0_257, %c0_258] : memref<128x128xbf16, #tpu.memory_space<vmem>>, vector<128x128xbf16>
    %cst_259 = arith.constant dense<0.000000e+00> : vector<8x128xf32>
    %660 = tpu.matmul %658, %659, %cst_259 {dimension_numbers = #tpu.dot_dimension_numbers<[1], [0], [0], [1], [0, 0, 1, 1], [], []>} : vector<8x128xbf16>, vector<128x128xbf16>, vector<8x128xf32> -> vector<8x128xf32>
    %c0_260 = arith.constant 0 : index
    %c0_261 = arith.constant 0 : index
    %661 = vector.load %arg9[%c0_260, %c0_261] : memref<1x128xf32, #tpu.memory_space<vmem>>, vector<1x128xf32>
    %662 = vector.broadcast %661 : vector<1x128xf32> to vector<8x128xf32>
    %663 = arith.addf %660, %662 : vector<8x128xf32>
    %c0_262 = arith.constant 0 : index
    %c0_263 = arith.constant 0 : index
    %664 = vector.load %arg10[%c0_262, %c0_263] : memref<8x128xf32, #tpu.memory_space<vmem>>, vector<8x128xf32>
    tpu.vector_store %arg10[%c0_262, %c0_263], %663 {strides = array<i32>} : memref<8x128xf32, #tpu.memory_space<vmem>>, vector<8x128xf32>,
    return
  }
}

</mosaic_0001>

<bundles_post_ra>
// kernel: shakespeare_forward.1
= control target key start
LH: loop header
LB: loop body
LE: loop exit
PB: predicated region body
PF: predicated region fallthrough
CT: control target
= control target key end

     0   :  { %18 = vsyncpa [#allocation3], 0  ;;  %s6322_s0 = inlined_call_operand.hbm [shape: bf16[8,8,512], index: 0, kind: input, shape index: {}]   ;;  %s6323_s1 = inlined_call_operand.hbm [shape: f32[2,8,128], index: 1, kind: input, shape index: {}, may-alias: {1,11}]   ;;  %s6324_s2 = inlined_call_operand.hbm [shape: f32[2,8,128], index: 2, kind: input, shape index: {}, may-alias: {2,12}]   ;;  %s6325_s3 = inlined_call_operand.hbm [shape: f32[1,512], index: 3, kind: input, shape index: {}]   ;;  %s6326_s4 = inlined_call_operand.hbm [shape: bf16[128,512], index: 4, kind: input, shape index: {}]   ;;  %s6327_s5 = inlined_call_operand.hbm [shape: bf16[128,512], index: 5, kind: input, shape index: {}]   ;;  %s6328_s6 = inlined_call_operand.hbm [shape: bf16[128,512], index: 6, kind: input, shape index: {}]   ;;  %s6329_s7 = inlined_call_operand.hbm [shape: f32[1,512], index: 7, kind: input, shape index: {}]   ;;  %s6330_s8 = inlined_call_operand.hbm [shape: bf16[128,128], index: 8, kind: input, shape index: {}]   ;;  %s6331_s9 = inlined_call_operand.hbm [shape: f32[1,128], index: 9, kind: input, shape index: {}]   ;;  %s6332_s10 = inlined_call_operand.hbm [shape: f32[8,128], index: 10, kind: output, shape index: {0}]   ;;  %s6333_s11 = inlined_call_operand.hbm [shape: f32[2,8,128], index: 11, kind: output, shape index: {1}, may-alias: {1,11}]   ;;  %s6334_s12 = inlined_call_operand.hbm [shape: f32[2,8,128], index: 12, kind: output, shape index: {2}, may-alias: {2,12}]  }
   0x1   :  { %19 = vsyncpa [#allocation6], 0 }
   0x2   :  { %20 = vsyncpa [#allocation9], 0 }
   0x3   :  { %21 = vsyncpa [#allocation12], 0 }
   0x4   :  { %22 = vsyncpa [#allocation15], 0 }
   0x5   :  { %23 = vsyncpa [#allocation18], 0 }
   0x6   :  { %24 = vsyncpa [#allocation4], 0 }
   0x7   :  { %25 = vsyncpa [#allocation21], 0  ;;  %s4353_s21 = smov [#allocation5]   ;;  %s4051_s25 = scalar_lea.hbm %s6323_s1, 256 }
   0x8   :  { %s43_s22 = sshll.u32 %s4353_s21, 4  ;;  %p4052_p0 = scmp.ne.s32.totalorder %s6323_s1, %s4051_s25  ;;  %s44_s22 = int_to_ptr.vmem [resolvable:$true] %s43_s22 }
   0x9   :  { %p4055_p1 = scmp.lt.u32.totalorder %s4051_s25, %s6323_s1 }
   0xb   :  { %p4057_p2 = pnand %p4055_p1, %p4052_p0 }
   0xd   :  { %4060 = shalt.err (!%p4057_p2)
}
   0xe   :  { %s4061_s30 = scalar_lea.vmem %s44_s22, 256  ;;  %p4066_p4 = scmp.lt.s32.totalorder %s44_s22, %s44_s22 }
   0xf   :  { %p4062_p3 = scmp.ne.s32.totalorder %s44_s22, %s4061_s30  ;;  %p4067_p5 = scmp.lt.s32.totalorder %s4061_s30, %s4061_s30 }
  0x11   :  { %p4068_p6 = por %p4067_p5, %p4066_p4 }
  0x13   :  { %p4069_p7 = pnand %p4068_p6, %p4062_p3 }
  0x15   :  { %4072 = shalt.err (!%p4069_p7)
}
  0x16   :  { %s4354_s13 = smov 128   ;;  %s4355_s14 = smov 8  }
  0x17   :  { %49 = dma.hbm_to_vmem [thread:$0]  %s6323_s1, 256, %s44_s22, [#allocation6], %s4354_s13, %s4354_s13, %s4355_s14  }
  0x18   :  { %s4356_s17 = smov [#allocation8]   ;;  %s4073_s21 = scalar_lea.hbm %s6325_s3, 64 }
  0x19   :  { %s68_s18 = sshll.u32 %s4356_s17, 4  ;;  %p4074_p8 = scmp.ne.s32.totalorder %s6325_s3, %s4073_s21  ;;  %s69_s18 = int_to_ptr.vmem [resolvable:$true] %s68_s18 }
  0x1a   :  { %p4077_p9 = scmp.lt.u32.totalorder %s4073_s21, %s6325_s3 }
  0x1c   :  { %p4079_p10 = pnand %p4077_p9, %p4074_p8 }
  0x1e   :  { %4082 = shalt.err (!%p4079_p10)
}
  0x1f   :  { %s4083_s27 = scalar_lea.vmem %s69_s18, 64  ;;  %p4088_p12 = scmp.lt.s32.totalorder %s69_s18, %s69_s18 }
  0x20   :  { %p4084_p11 = scmp.ne.s32.totalorder %s69_s18, %s4083_s27  ;;  %p4089_p13 = scmp.lt.s32.totalorder %s4083_s27, %s4083_s27 }
  0x22   :  { %p4090_p0 = por %p4089_p13, %p4088_p12 }
  0x24   :  { %p4091_p1 = pnand %p4090_p0, %p4084_p11 }
  0x26   :  { %4094 = shalt.err (!%p4091_p1)
}
  0x27   :  { %71 = dma.hbm_to_vmem [thread:$0]  %s6325_s3, 64, %s69_s18, [#allocation9]  }
  0x28   :  { %s4357_s28 = smov [#allocation11]   ;;  %s4358_s30 = smov [#allocation14]  }
  0x29   :  { %s89_s29 = sshll.u32 %s4357_s28, 4  ;;  %s114_s15 = sshll.u32 %s4358_s30, 4  ;;  %s90_s29 = int_to_ptr.vmem [resolvable:$true] %s89_s29  ;;  %s115_s15 = int_to_ptr.vmem [resolvable:$true] %s114_s15 }
  0x2a   :  { %s4095_s19 = scalar_lea.hbm %s6327_s5, 4096 }
  0x2b   :  { %p4096_p2 = scmp.ne.s32.totalorder %s6327_s5, %s4095_s19  ;;  %p4099_p3 = scmp.lt.u32.totalorder %s4095_s19, %s6327_s5 }
  0x2d   :  { %p4101_p4 = pnand %p4099_p3, %p4096_p2 }
  0x2f   :  { %4104 = shalt.err (!%p4101_p4)
}
  0x30   :  { %s4105_s3 = scalar_lea.vmem %s90_s29, 4096  ;;  %p4110_p6 = scmp.lt.s32.totalorder %s90_s29, %s90_s29 }
  0x31   :  { %p4106_p5 = scmp.ne.s32.totalorder %s90_s29, %s4105_s3  ;;  %p4111_p7 = scmp.lt.s32.totalorder %s4105_s3, %s4105_s3 }
  0x33   :  { %p4112_p8 = por %p4111_p7, %p4110_p6 }
  0x35   :  { %p4113_p9 = pnand %p4112_p8, %p4106_p5 }
  0x37   :  { %4116 = shalt.err (!%p4113_p9)
}
  0x38   :  { %s4359_s18 = smov 256   ;;  %s4360_s25 = smov 16  }
  0x39   :  { %95 = dma.hbm_to_vmem [thread:$0]  %s6327_s5, 4096, %s90_s29, [#allocation12], %s4359_s18, %s4359_s18, %s4360_s25  }
  0x3a   :  { %s4117_s28 = scalar_lea.hbm %s6329_s7, 64 }
  0x3b   :  { %p4118_p10 = scmp.ne.s32.totalorder %s6329_s7, %s4117_s28  ;;  %p4121_p11 = scmp.lt.u32.totalorder %s4117_s28, %s6329_s7 }
  0x3d   :  { %p4123_p12 = pnand %p4121_p11, %p4118_p10 }
  0x3f   :  { %4126 = shalt.err (!%p4123_p12)
}
  0x40   :  { %s4127_s20 = scalar_lea.vmem %s115_s15, 64  ;;  %p4132_p0 = scmp.lt.s32.totalorder %s115_s15, %s115_s15 }
  0x41   :  { %p4128_p13 = scmp.ne.s32.totalorder %s115_s15, %s4127_s20  ;;  %p4133_p1 = scmp.lt.s32.totalorder %s4127_s20, %s4127_s20 }
  0x43   :  { %p4134_p2 = por %p4133_p1, %p4132_p0 }
  0x45   :  { %p4135_p3 = pnand %p4134_p2, %p4128_p13 }
  0x47   :  { %4138 = shalt.err (!%p4135_p3)
}
  0x48   :  { %117 = dma.hbm_to_vmem [thread:$0]  %s6329_s7, 64, %s115_s15, [#allocation15]  }
  0x49   :  { %s4361_s21 = smov [#allocation2]   ;;  %s4362_s24 = smov [#allocation7]  }
  0x4a   :  { %s31_s23 = sshll.u32 %s4361_s21, 4  ;;  %s55_s3 = sshll.u32 %s4362_s24, 4  ;;  %s32_s23 = int_to_ptr.vmem [resolvable:$true] %s31_s23  ;;  %s4494_s3 = int_to_ptr.vmem [resolvable:$true] %s55_s3 }
  0x4b   :  { %s4139_s1 = scalar_lea.hbm %s6322_s0, 2048 }
  0x4c   :  { %p4140_p4 = scmp.ne.s32.totalorder %s6322_s0, %s4139_s1  ;;  %p4143_p5 = scmp.lt.u32.totalorder %s4139_s1, %s6322_s0 }
  0x4e   :  { %p4145_p6 = pnand %p4143_p5, %p4140_p4 }
  0x50   :  { %4148 = shalt.err (!%p4145_p6)
}
  0x51   :  { %s4149_s7 = scalar_lea.vmem %s32_s23, 2048  ;;  %p4154_p8 = scmp.lt.s32.totalorder %s32_s23, %s32_s23 }
  0x52   :  { %p4150_p7 = scmp.ne.s32.totalorder %s32_s23, %s4149_s7  ;;  %p4155_p9 = scmp.lt.s32.totalorder %s4149_s7, %s4149_s7 }
  0x54   :  { %p4156_p10 = por %p4155_p9, %p4154_p8 }
  0x56   :  { %p4157_p11 = pnand %p4156_p10, %p4150_p7 }
  0x58   :  { %4160 = shalt.err (!%p4157_p11)
}
  0x59   :  { %37 = dma.hbm_to_vmem [thread:$0]  %s6322_s0, 2048, %s32_s23, [#allocation3], %s4359_s18, %s4359_s18, %s4360_s25  }
  0x5a   :  { %s4161_s5 = scalar_lea.hbm %s6324_s2, 256 }
  0x5b   :  { %p4162_p12 = scmp.ne.s32.totalorder %s6324_s2, %s4161_s5  ;;  %p4165_p13 = scmp.lt.u32.totalorder %s4161_s5, %s6324_s2 }
  0x5d   :  { %p4167_p0 = pnand %p4165_p13, %p4162_p12 }
  0x5f   :  { %4170 = shalt.err (!%p4167_p0)
}
  0x60   :  { %s4171_s27 = scalar_lea.vmem %s4494_s3, 256  ;;  %p4176_p2 = scmp.lt.s32.totalorder %s4494_s3, %s4494_s3 }
  0x61   :  { %p4172_p1 = scmp.ne.s32.totalorder %s4494_s3, %s4171_s27  ;;  %p4177_p3 = scmp.lt.s32.totalorder %s4171_s27, %s4171_s27 }
  0x63   :  { %p4178_p4 = por %p4177_p3, %p4176_p2 }
  0x65   :  { %p4179_p5 = pnand %p4178_p4, %p4172_p1 }
  0x67   :  { %4182 = shalt.err (!%p4179_p5)
}
  0x68   :  { %61 = dma.hbm_to_vmem [thread:$0]  %s6324_s2, 256, %s4494_s3, [#allocation6], %s4354_s13, %s4354_s13, %s4355_s14  }
  0x69   :  { %s4363_s1 = smov [#allocation10]   ;;  %s4364_s28 = smov [#allocation13]  }
  0x6a   :  { %s77_s22 = sshll.u32 %s4363_s1, 4  ;;  %s101_s30 = sshll.u32 %s4364_s28, 4  ;;  %s78_s22 = int_to_ptr.vmem [resolvable:$true] %s77_s22  ;;  %s4531_s30 = int_to_ptr.vmem [resolvable:$true] %s101_s30 }
  0x6b   :  { %s4183_s15 = scalar_lea.hbm %s6326_s4, 4096 }
  0x6c   :  { %p4184_p6 = scmp.ne.s32.totalorder %s6326_s4, %s4183_s15  ;;  %p4187_p7 = scmp.lt.u32.totalorder %s4183_s15, %s6326_s4 }
  0x6e   :  { %p4189_p8 = pnand %p4187_p7, %p4184_p6 }
  0x70   :  { %4192 = shalt.err (!%p4189_p8)
}
  0x71   :  { %s4193_s2 = scalar_lea.vmem %s78_s22, 4096  ;;  %p4198_p10 = scmp.lt.s32.totalorder %s78_s22, %s78_s22 }
  0x72   :  { %p4194_p9 = scmp.ne.s32.totalorder %s78_s22, %s4193_s2  ;;  %p4199_p11 = scmp.lt.s32.totalorder %s4193_s2, %s4193_s2 }
  0x74   :  { %p4200_p12 = por %p4199_p11, %p4198_p10 }
  0x76   :  { %p4201_p13 = pnand %p4200_p12, %p4194_p9 }
  0x78   :  { %4204 = shalt.err (!%p4201_p13)
}
  0x79   :  { %83 = dma.hbm_to_vmem [thread:$0]  %s6326_s4, 4096, %s78_s22, [#allocation9], %s4359_s18, %s4359_s18, %s4360_s25  }
  0x7a   :  { %s4205_s26 = scalar_lea.hbm %s6328_s6, 4096 }
  0x7b   :  { %p4206_p0 = scmp.ne.s32.totalorder %s6328_s6, %s4205_s26  ;;  %p4209_p1 = scmp.lt.u32.totalorder %s4205_s26, %s6328_s6 }
  0x7d   :  { %p4211_p2 = pnand %p4209_p1, %p4206_p0 }
  0x7f   :  { %4214 = shalt.err (!%p4211_p2)
}
  0x80   :  { %s4215_s28 = scalar_lea.vmem %s4531_s30, 4096  ;;  %p4220_p4 = scmp.lt.s32.totalorder %s4531_s30, %s4531_s30 }
  0x81   :  { %p4216_p3 = scmp.ne.s32.totalorder %s4531_s30, %s4215_s28  ;;  %p4221_p5 = scmp.lt.s32.totalorder %s4215_s28, %s4215_s28 }
  0x83   :  { %p4222_p6 = por %p4221_p5, %p4220_p4 }
  0x85   :  { %p4223_p7 = pnand %p4222_p6, %p4216_p3 }
  0x87   :  { %4226 = shalt.err (!%p4223_p7)
}
  0x88   :  { %107 = dma.hbm_to_vmem [thread:$0]  %s6328_s6, 4096, %s4531_s30, [#allocation12], %s4359_s18, %s4359_s18, %s4360_s25  }
  0x89   :  { %s4365_s16 = smov [#allocation16]   ;;  %s4227_s19 = scalar_lea.hbm %s6330_s8, 1024 }
  0x8a   :  { %s123_s7 = sshll.u32 %s4365_s16, 4  ;;  %p4228_p8 = scmp.ne.s32.totalorder %s6330_s8, %s4227_s19  ;;  %s124_s7 = int_to_ptr.vmem [resolvable:$true] %s123_s7 }
  0x8b   :  { %p4231_p9 = scmp.lt.u32.totalorder %s4227_s19, %s6330_s8 }
  0x8d   :  { %p4233_p10 = pnand %p4231_p9, %p4228_p8 }
  0x8f   :  { %4236 = shalt.err (!%p4233_p10)
}
  0x90   :  { %s4237_s29 = scalar_lea.vmem %s124_s7, 1024  ;;  %p4242_p12 = scmp.lt.s32.totalorder %s124_s7, %s124_s7 }
  0x91   :  { %p4238_p11 = scmp.ne.s32.totalorder %s124_s7, %s4237_s29  ;;  %p4243_p13 = scmp.lt.s32.totalorder %s4237_s29, %s4237_s29 }
  0x93   :  { %p4244_p0 = por %p4243_p13, %p4242_p12 }
  0x95   :  { %p4245_p1 = pnand %p4244_p0, %p4238_p11 }
  0x97   :  { %4248 = shalt.err (!%p4245_p1)
}
  0x98   :  { %s4366_s6 = smov 64   ;;  %s4367_s18 = smov 4  }
  0x99   :  { %129 = dma.hbm_to_vmem [thread:$0]  %s6330_s8, 1024, %s124_s7, [#allocation15], %s4366_s6, %s4366_s6, %s4367_s18  }
  0x9a   :  { %s4368_s21 = smov [#allocation17]   ;;  %s4249_s0 = scalar_lea.hbm %s6331_s9, 16 }
  0x9b   :  { %s136_s24 = sshll.u32 %s4368_s21, 4  ;;  %p4250_p2 = scmp.ne.s32.totalorder %s6331_s9, %s4249_s0  ;;  %s137_s24 = int_to_ptr.vmem [resolvable:$true] %s136_s24 }
  0x9c   :  { %p4253_p3 = scmp.lt.u32.totalorder %s4249_s0, %s6331_s9 }
  0x9e   :  { %p4255_p4 = pnand %p4253_p3, %p4250_p2 }
  0xa0   :  { %4258 = shalt.err (!%p4255_p4)
}
  0xa1   :  { %s4259_s22 = scalar_lea.vmem %s137_s24, 16  ;;  %s4263_s8 = scalar_lea.vmem %s137_s24, 32 }
  0xa2   :  { %p4260_p5 = scmp.ne.s32.totalorder %s137_s24, %s4259_s22  ;;  %p4264_p6 = scmp.lt.s32.totalorder %s137_s24, %s137_s24 }
  0xa3   :  { %p4265_p7 = scmp.lt.s32.totalorder %s4263_s8, %s4259_s22 }
  0xa5   :  { %p4266_p8 = por %p4265_p7, %p4264_p6 }
  0xa7   :  { %p4267_p9 = pnand %p4266_p8, %p4260_p5 }
  0xa9   :  { %4270 = shalt.err (!%p4267_p9)
}
  0xaa   :  { %139 = dma.hbm_to_vmem [thread:$0]  %s6331_s9, 16, %s137_s24, [#allocation18]  }
  0xab   :  { %4337 = dma.done.wait [#allocation3], 2048  }
  0xac   :  { %4338 = vsyncadd [#allocation3], 4294965248 }
  0xad   :  { %4339 = dma.done.wait [#allocation6], 512  }
  0xae   :  { %4340 = vsyncadd [#allocation6], 4294966784 }
  0xaf   :  { %4341 = dma.done.wait [#allocation9], 4160  }
  0xb0   :  { %4342 = vsyncadd [#allocation9], 4294963136 }
  0xb1   :  { %4343 = dma.done.wait [#allocation12], 8192  }
  0xb2   :  { %4344 = vsyncadd [#allocation12], 4294959104 }
  0xb3   :  { %4345 = dma.done.wait [#allocation15], 1088  }
  0xb4   :  { %4346 = vsyncadd [#allocation15], 4294966208 }
  0xb5   :  { %4347 = dma.done.wait [#allocation18], 16  }
  0xb6   :  { %4348 = vsyncadd [#allocation18], 4294967280  ;;  %v6335_v0 = vmov 0   ;;  %v4594_v1 = vld [vmem:[#allocation13 + $0x4] ss:$16 sps:$4 sm:$0xff]   ;;  %vm4371_vm0 = vmmov 0  }
  0xb7   :  { %446 = vmatprep.mubr.bf16.mxu0 %v6335_v0  ;;  %487 = vmatprep.mubr.bf16.mxu1 %v6335_v0  ;;  %v4596_v2 = vld [vmem:[#allocation13] ss:$16 sps:$4 sm:$0xff]   ;;  %v4599_v3 = vld [vmem:[#allocation13 + $0x24] ss:$16 sps:$4 sm:$0xff]   ;;  %v4602_v4 = vld [vmem:[#allocation13 + $0xc] ss:$16 sps:$4 sm:$0xff]  }
  0xb8   :  { %414 = vmatprep.subr.bf16.mxu0 %v4594_v1  ;;  %v4604_v5 = vld [vmem:[#allocation13 + $0x20] ss:$16 sps:$4 sm:$0xff]   ;;  %v4606_v6 = vld [vmem:[#allocation13 + $0x8] ss:$16 sps:$4 sm:$0xff]   ;;  %v4609_v7 = vld [vmem:[#allocation13 + $0x44] ss:$16 sps:$4 sm:$0xff]   ;;  %455 = vmatprep.subr.bf16.mxu1 %v4602_v4 }
  0xb9   :  { %415 = vmatpush1.bf16.msra.mxu0 %v4596_v2  ;;  %v4612_v8 = vld [vmem:[#allocation13 + $0x2c] ss:$16 sps:$4 sm:$0xff]   ;;  %456 = vmatpush1.bf16.msra.mxu1 %v4606_v6  ;;  %v4615_v9 = vld [vmem:[#allocation13 + $0x28] ss:$16 sps:$4 sm:$0xff]   ;;  %v4619_v10 = vld [vmem:[#allocation13 + $0x40] ss:$16 sps:$4 sm:$0xff]  }
  0xba   :  { %416 = vmatprep.subr.bf16.mxu0 %v4599_v3  ;;  %457 = vmatprep.subr.bf16.mxu1 %v4612_v8  ;;  %v4622_v11 = vld [vmem:[#allocation13 + $0x64] ss:$16 sps:$4 sm:$0xff]   ;;  %v4624_v12 = vld [vmem:[#allocation13 + $0x4c] ss:$16 sps:$4 sm:$0xff]   ;;  %v4627_v13 = vld [vmem:[#allocation13 + $0x48] ss:$16 sps:$4 sm:$0xff]  }
  0xbb   :  { %v4631_v14 = vld [vmem:[#allocation13 + $0x60] ss:$16 sps:$4 sm:$0xff]   ;;  %v4633_v15 = vld [vmem:[#allocation13 + $0x6c] ss:$16 sps:$4 sm:$0xff]   ;;  %v4636_v16 = vld [vmem:[#allocation13 + $0x84] ss:$16 sps:$4 sm:$0xff]  }
  0xbc   :  { %v4639_v17 = vld [vmem:[#allocation13 + $0x80] ss:$16 sps:$4 sm:$0xff]   ;;  %v4641_v18 = vld [vmem:[#allocation13 + $0x68] ss:$16 sps:$4 sm:$0xff]   ;;  %v4645_v19 = vld [vmem:[#allocation13 + $0x8c] ss:$16 sps:$4 sm:$0xff]  }
  0xbd   :  { %417 = vmatpush1.bf16.msra.mxu0 %v4604_v5  ;;  %458 = vmatpush1.bf16.msra.mxu1 %v4615_v9  ;;  %v4648_v20 = vld [vmem:[#allocation13 + $0xa4] ss:$16 sps:$4 sm:$0xff]   ;;  %v4651_v21 = vld [vmem:[#allocation13 + $0x88] ss:$16 sps:$4 sm:$0xff]   ;;  %v4655_v22 = vld [vmem:[#allocation13 + $0xa0] ss:$16 sps:$4 sm:$0xff]  }
  0xbe   :  { %418 = vmatprep.subr.bf16.mxu0 %v4609_v7  ;;  %459 = vmatprep.subr.bf16.mxu1 %v4624_v12  ;;  %v4657_v23 = vld [vmem:[#allocation13 + $0xac] ss:$16 sps:$4 sm:$0xff]   ;;  %v4660_v24 = vld [vmem:[#allocation13 + $0xc4] ss:$16 sps:$4 sm:$0xff]   ;;  %v4663_v25 = vld [vmem:[#allocation13 + $0xc0] ss:$16 sps:$4 sm:$0xff]  }
  0xbf   :  { %v4665_v26 = vld [vmem:[#allocation13 + $0xa8] ss:$16 sps:$4 sm:$0xff]   ;;  %v4669_v27 = vld [vmem:[#allocation13 + $0xcc] ss:$16 sps:$4 sm:$0xff]   ;;  %v4672_v28 = vld [vmem:[#allocation13 + $0xe4] ss:$16 sps:$4 sm:$0xff]  }
  0xc0   :  { %v4674_v29 = vld [vmem:[#allocation13 + $0xe0] ss:$16 sps:$4 sm:$0xff]   ;;  %v4677_v30 = vld [vmem:[#allocation13 + $0xc8] ss:$16 sps:$4 sm:$0xff]   ;;  %v4681_v32 = vld [vmem:[#allocation13 + $0xec] ss:$16 sps:$4 sm:$0xff]  }
  0xc1   :  { %419 = vmatpush1.bf16.msra.mxu0 %v4619_v10  ;;  %460 = vmatpush1.bf16.msra.mxu1 %v4627_v13  ;;  %v218_v31 = vld [vmem:[#allocation5 + $0x8] sm:$0xff]  ;;  %v4689_v36 = vld [vmem:[#allocation10] ss:$16 sps:$4 sm:$0xff]   ;;  %v4693_v37 = vld [vmem:[#allocation10 + $0xc] ss:$16 sps:$4 sm:$0xff]   ;;  %s4372_s9 = smov [#allocation20]  }
  0xc2   :  { %420 = vmatprep.subr.bf16.mxu0 %v4622_v11  ;;  %461 = vmatprep.subr.bf16.mxu1 %v4633_v15  ;;  %v4684_v33 = vld [vmem:[#allocation10 + $0x4] ss:$16 sps:$4 sm:$0xff]   ;;  %v221_v34 = vpack.c.bf16 %v218_v31, %v218_v31  ;;  %v4687_v35 = vld [vmem:[#allocation13 + $0xe8] ss:$16 sps:$4 sm:$0xff]   ;;  %v4703_v40 = vld [vmem:[#allocation10 + $0x20] ss:$16 sps:$4 sm:$0xff]  }
  0xc3   :  { %v4696_v38 = vld [vmem:[#allocation10 + $0x24] ss:$16 sps:$4 sm:$0xff]   ;;  %v4699_v39 = vld [vmem:[#allocation10 + $0x8] ss:$16 sps:$4 sm:$0xff]   ;;  %6704 = vst [vmem:[#allocation31_spill] sm:$0xff] %v4703_v40  ;;  %s3355_s15 = sshll.u32 %s4372_s9, 4  ;;  %s3356_s15 = int_to_ptr.vmem [resolvable:$true] %s3355_s15 }
  0xc4   :  { %v4705_v41 = vld [vmem:[#allocation10 + $0x2c] ss:$16 sps:$4 sm:$0xff]   ;;  %v4708_v42 = vld [vmem:[#allocation10 + $0x44] ss:$16 sps:$4 sm:$0xff]   ;;  %v4712_v43 = vld [vmem:[#allocation10 + $0x40] ss:$16 sps:$4 sm:$0xff]   ;;  %p4276_p11 = scmp.lt.s32.totalorder %s3356_s15, %s3356_s15 }
  0xc5   :  { %421 = vmatpush1.bf16.msra.mxu0 %v4631_v14  ;;  %462 = vmatpush1.bf16.msra.mxu1 %v4641_v18  ;;  %6705 = vst [vmem:[#allocation32_spill] sm:$0xff] %v4705_v41  ;;  %6706 = vst [vmem:[#allocation33_spill] sm:$0xff] %v4708_v42  ;;  %v4714_v44 = vld [vmem:[#allocation10 + $0x28] ss:$16 sps:$4 sm:$0xff]   ;;  %v4719_v45 = vld [vmem:[#allocation10 + $0x4c] ss:$16 sps:$4 sm:$0xff]  }
  0xc6   :  { %422 = vmatprep.subr.bf16.mxu0 %v4636_v16  ;;  %463 = vmatprep.subr.bf16.mxu1 %v4645_v19  ;;  %6707 = vst [vmem:[#allocation34_spill] sm:$0xff] %v4712_v43  ;;  %6708 = vst [vmem:[#allocation35_spill] sm:$0xff] %v4714_v44  ;;  %v4722_v46 = vld [vmem:[#allocation10 + $0x64] ss:$16 sps:$4 sm:$0xff]   ;;  %v4724_v47 = vld [vmem:[#allocation10 + $0x60] ss:$16 sps:$4 sm:$0xff]  }
  0xc7   :  { %6709 = vst [vmem:[#allocation36_spill] sm:$0xff] %v4719_v45  ;;  %6710 = vst [vmem:[#allocation37_spill] sm:$0xff] %v4722_v46  ;;  %v4726_v48 = vld [vmem:[#allocation10 + $0x48] ss:$16 sps:$4 sm:$0xff]   ;;  %v4729_v49 = vld [vmem:[#allocation10 + $0x84] ss:$16 sps:$4 sm:$0xff]  }
  0xc8   :  { %6711 = vst [vmem:[#allocation38_spill] sm:$0xff] %v4724_v47  ;;  %6712 = vst [vmem:[#allocation39_spill] sm:$0xff] %v4726_v48  ;;  %v4733_v50 = vld [vmem:[#allocation10 + $0x6c] ss:$16 sps:$4 sm:$0xff]   ;;  %v4736_v51 = vld [vmem:[#allocation10 + $0x68] ss:$16 sps:$4 sm:$0xff]  }
  0xc9   :  { %423 = vmatpush1.bf16.msra.mxu0 %v4639_v17  ;;  %464 = vmatpush1.bf16.msra.mxu1 %v4651_v21  ;;  %6713 = vst [vmem:[#allocation40_spill] sm:$0xff] %v4729_v49  ;;  %6714 = vst [vmem:[#allocation41_spill] sm:$0xff] %v4733_v50  ;;  %v4738_v52 = vld [vmem:[#allocation10 + $0x80] ss:$16 sps:$4 sm:$0xff]   ;;  %v4740_v53 = vld [vmem:[#allocation10 + $0x8c] ss:$16 sps:$4 sm:$0xff]  }
  0xca   :  { %424 = vmatprep.subr.bf16.mxu0 %v4648_v20  ;;  %465 = vmatprep.subr.bf16.mxu1 %v4657_v23  ;;  %6715 = vst [vmem:[#allocation42_spill] sm:$0xff] %v4736_v51  ;;  %6716 = vst [vmem:[#allocation43_spill] sm:$0xff] %v4738_v52  ;;  %v4743_v54 = vld [vmem:[#allocation10 + $0xa4] ss:$16 sps:$4 sm:$0xff]   ;;  %v4748_v55 = vld [vmem:[#allocation10 + $0x88] ss:$16 sps:$4 sm:$0xff]  }
  0xcb   :  { %6717 = vst [vmem:[#allocation44_spill] sm:$0xff] %v4740_v53  ;;  %6718 = vst [vmem:[#allocation45_spill] sm:$0xff] %v4743_v54  ;;  %v4750_v56 = vld [vmem:[#allocation10 + $0xa0] ss:$16 sps:$4 sm:$0xff]   ;;  %v4752_v57 = vld [vmem:[#allocation10 + $0xac] ss:$16 sps:$4 sm:$0xff]  }
  0xcc   :  { %6719 = vst [vmem:[#allocation46_spill] sm:$0xff] %v4748_v55  ;;  %6720 = vst [vmem:[#allocation47_spill] sm:$0xff] %v4750_v56  ;;  %v4755_v58 = vld [vmem:[#allocation10 + $0xc4] ss:$16 sps:$4 sm:$0xff]   ;;  %v4760_v59 = vld [vmem:[#allocation10 + $0xa8] ss:$16 sps:$4 sm:$0xff]  }
  0xcd   :  { %425 = vmatpush1.bf16.msra.mxu0 %v4655_v22  ;;  %466 = vmatpush1.bf16.msra.mxu1 %v4665_v26  ;;  %6721 = vst [vmem:[#allocation48_spill] sm:$0xff] %v4752_v57  ;;  %6722 = vst [vmem:[#allocation49_spill] sm:$0xff] %v4755_v58  ;;  %v4762_v60 = vld [vmem:[#allocation10 + $0xc0] ss:$16 sps:$4 sm:$0xff]   ;;  %v4764_v61 = vld [vmem:[#allocation10 + $0xcc] ss:$16 sps:$4 sm:$0xff]  }
  0xce   :  { %426 = vmatprep.subr.bf16.mxu0 %v4660_v24  ;;  %467 = vmatprep.subr.bf16.mxu1 %v4669_v27  ;;  %6723 = vst [vmem:[#allocation50_spill] sm:$0xff] %v4760_v59  ;;  %6724 = vst [vmem:[#allocation51_spill] sm:$0xff] %v4762_v60  ;;  %v4767_v62 = vld [vmem:[#allocation10 + $0xe4] ss:$16 sps:$4 sm:$0xff]   ;;  %v4772_v63 = vld [vmem:[#allocation10 + $0xc8] ss:$16 sps:$4 sm:$0xff]  }
  0xcf   :  { %6725 = vst [vmem:[#allocation52_spill] sm:$0xff] %v4764_v61  ;;  %6726 = vst [vmem:[#allocation53_spill] sm:$0xff] %v4767_v62  ;;  %v4774_v31 = vld [vmem:[#allocation10 + $0xe0] ss:$16 sps:$4 sm:$0xff]   ;;  %s4271_s17 = scalar_lea.vmem %s3356_s15, 256 }
  0xd0   :  { %6727 = vst [vmem:[#allocation54_spill] sm:$0xff] %v4772_v63  ;;  %6728 = vst [vmem:[#allocation55_spill] sm:$0xff] %v4774_v31  ;;  %p4272_p10 = scmp.ne.s32.totalorder %s3356_s15, %s4271_s17  ;;  %p4277_p12 = scmp.lt.s32.totalorder %s4271_s17, %s4271_s17 }
  0xd1   :  { %427 = vmatpush1.bf16.msra.mxu0 %v4663_v25  ;;  %468 = vmatpush1.bf16.msra.mxu1 %v4677_v30 }
  0xd2   :  { %428 = vmatprep.subr.bf16.mxu0 %v4672_v28  ;;  %469 = vmatprep.subr.bf16.mxu1 %v4681_v32  ;;  %p4278_p13 = por %p4277_p12, %p4276_p11 }
  0xd4   :  { %p4279_p0 = pnand %p4278_p13, %p4272_p10 }
  0xd5   :  { %429 = vmatpush1.bf16.msra.mxu0 %v4674_v29  ;;  %470 = vmatpush1.bf16.msra.mxu1 %v4687_v35 }
  0xd6   :  { %699 = vmatprep.subr.bf16.mxu0 %v4684_v33  ;;  %740 = vmatprep.subr.bf16.mxu1 %v4693_v37 }
  0xd8   :  { %447 = vmatmul.mubr.bf16.vlgmr.msra.gmra.mrb[0].mxu0 %v221_v34  ;;  %488 = vmatmul.mubr.bf16.vlgmr.msra.gmra.mrb[0].mxu1 %v221_v34  ;;  %v215_v34 = vld [vmem:[#allocation5] sm:$0xff] }
  0xd9   :  { %700 = vmatpush1.bf16.msra.mxu0 %v4689_v36  ;;  %731 = vmatprep.mubr.bf16.mxu0 %v6335_v0 }
  0xda   :  { %701 = vmatprep.subr.bf16.mxu0 %v4696_v38  ;;  %741 = vmatpush1.bf16.msra.mxu1 %v4699_v39 }
  0xdb   :  { %772 = vmatprep.mubr.bf16.mxu1 %v6335_v0  ;;  %742 = vmatprep.subr.bf16.mxu1 %v4705_v41  ;;  %v4779_v0 = vld [vmem:[#allocation10 + $0xec] ss:$16 sps:$4 sm:$0xff]  }
  0xdc   :  { %6729 = vst [vmem:[#allocation56_spill] sm:$0xff] %v4779_v0 }
  0xdd   :  { %702 = vmatpush1.bf16.msra.mxu0 %v4703_v40 }
  0xde   :  { %703 = vmatprep.subr.bf16.mxu0 %v4708_v42  ;;  %743 = vmatpush1.bf16.msra.mxu1 %v4714_v44 }
  0xdf   :  { %744 = vmatprep.subr.bf16.mxu1 %v4719_v45 }
  0xe1   :  { %704 = vmatpush1.bf16.msra.mxu0 %v4712_v43 }
  0xe2   :  { %705 = vmatprep.subr.bf16.mxu0 %v4722_v46  ;;  %745 = vmatpush1.bf16.msra.mxu1 %v4726_v48 }
  0xe3   :  { %746 = vmatprep.subr.bf16.mxu1 %v4733_v50 }
  0xe5   :  { %706 = vmatpush1.bf16.msra.mxu0 %v4724_v47 }
  0xe6   :  { %707 = vmatprep.subr.bf16.mxu0 %v4729_v49  ;;  %747 = vmatpush1.bf16.msra.mxu1 %v4736_v51 }
  0xe7   :  { %748 = vmatprep.subr.bf16.mxu1 %v4740_v53  ;;  %v497_v53 = vld [vmem:[#allocation2 + $0x8] sm:$0xff] }
  0xe8   :  { %v500_v49 = vunpack.c.l.bf16 %v497_v53 }
  0xe9   :  { %708 = vmatpush1.bf16.msra.mxu0 %v4738_v52 }
  0xea   :  { %709 = vmatprep.subr.bf16.mxu0 %v4743_v54  ;;  %749 = vmatpush1.bf16.msra.mxu1 %v4748_v55  ;;  %v173_v54 = vlaneseq  ;;  %v496_v55 = vld [vmem:[#allocation2] sm:$0xff] }
  0xeb   :  { %750 = vmatprep.subr.bf16.mxu1 %v4752_v57  ;;  %v4783_v57 = vld [vmem:[#allocation10 + $0xe8] ss:$16 sps:$4 sm:$0xff]  }
  0xec   :  { %6730 = vst [vmem:[#allocation57_spill] sm:$0xff] %v4783_v57 }
  0xed   :  { %710 = vmatpush1.bf16.msra.mxu0 %v4750_v56  ;;  %v506_v56 = vpack.c.bf16 %v215_v34, %v215_v34  ;;  %v4796_v34 = vld [vmem:[#allocation11 + $0x8] ss:$16 sps:$4 sm:$0xff]  }
  0xee   :  { %711 = vmatprep.subr.bf16.mxu0 %v4755_v58  ;;  %751 = vmatpush1.bf16.msra.mxu1 %v4760_v59  ;;  %6735 = vst [vmem:[#allocation61_spill] sm:$0xff] %v4796_v34 }
  0xef   :  { %752 = vmatprep.subr.bf16.mxu1 %v4764_v61  ;;  %v4790_v61 = vld [vmem:[#allocation11 + $0x4] ss:$16 sps:$4 sm:$0xff]  }
  0xf0   :  { %6732 = vst [vmem:[#allocation58_spill] sm:$0xff] %v4790_v61 }
  0xf1   :  { %712 = vmatpush1.bf16.msra.mxu0 %v4762_v60  ;;  %v6731_v60 = vmov 0  }
  0xf2   :  { %713 = vmatprep.subr.bf16.mxu0 %v4767_v62  ;;  %753 = vmatpush1.bf16.msra.mxu1 %v4772_v63  ;;  %v4792_v62 = vld [vmem:[#allocation11 + $0xc] ss:$16 sps:$4 sm:$0xff]   ;;  %v4794_v63 = vld [vmem:[#allocation11] ss:$16 sps:$4 sm:$0xff]  }
  0xf3   :  { %754 = vmatprep.subr.bf16.mxu1 %v4779_v0  ;;  %6733 = vst [vmem:[#allocation59_spill] sm:$0xff] %v4792_v62  ;;  %6734 = vst [vmem:[#allocation60_spill] sm:$0xff] %v4794_v63  ;;  %v4808_v0 = vld [vmem:[#allocation11 + $0x28] ss:$16 sps:$4 sm:$0xff]  }
  0xf4   :  { %6739 = vst [vmem:[#allocation65_spill] sm:$0xff] %v4808_v0 }
  0xf5   :  { %714 = vmatpush1.bf16.msra.mxu0 %v4774_v31  ;;  %v4806_v31 = vld [vmem:[#allocation11 + $0x20] ss:$16 sps:$4 sm:$0xff]  }
  0xf6   :  { %755 = vmatpush1.bf16.msra.mxu1 %v4783_v57  ;;  %996 = vmatprep.subr.bf16.mxu0 %v4790_v61  ;;  %v4802_v57 = vld [vmem:[#allocation11 + $0x24] ss:$16 sps:$4 sm:$0xff]   ;;  %6738 = vst [vmem:[#allocation64_spill] sm:$0xff] %v4806_v31  ;;  %v4820_v61 = vld [vmem:[#allocation11 + $0x48] ss:$16 sps:$4 sm:$0xff]  }
  0xf7   :  { %1037 = vmatprep.subr.bf16.mxu1 %v4792_v62  ;;  %6736 = vst [vmem:[#allocation62_spill] sm:$0xff] %v4802_v57  ;;  %v4814_v62 = vld [vmem:[#allocation11 + $0x44] ss:$16 sps:$4 sm:$0xff]   ;;  %6743 = vst [vmem:[#allocation69_spill] sm:$0xff] %v4820_v61 }
  0xf8   :  { %732 = vmatmul.mubr.bf16.vlgmr.msra.gmra.mrb[4].mxu0 %v506_v56  ;;  %6740 = vst [vmem:[#allocation66_spill] sm:$0xff] %v4814_v62 }
  0xf9   :  { %1028 = vmatprep.mubr.bf16.mxu0 %v6731_v60  ;;  %773 = vmatmul.mubr.bf16.vlgmr.msra.gmra.mrb[4].mxu1 %v506_v56  ;;  %v4804_v56 = vld [vmem:[#allocation11 + $0x2c] ss:$16 sps:$4 sm:$0xff]  }
  0xfa   :  { %1069 = vmatprep.mubr.bf16.mxu1 %v6731_v60  ;;  %997 = vmatpush1.bf16.msra.mxu0 %v4794_v63  ;;  %6737 = vst [vmem:[#allocation63_spill] sm:$0xff] %v4804_v56  ;;  %v4816_v63 = vld [vmem:[#allocation11 + $0x4c] ss:$16 sps:$4 sm:$0xff]  }
  0xfb   :  { %1038 = vmatpush1.bf16.msra.mxu1 %v4796_v34  ;;  %998 = vmatprep.subr.bf16.mxu0 %v4802_v57  ;;  %6741 = vst [vmem:[#allocation67_spill] sm:$0xff] %v4816_v63  ;;  %v4818_v34 = vld [vmem:[#allocation11 + $0x40] ss:$16 sps:$4 sm:$0xff]   ;;  %v4832_v57 = vld [vmem:[#allocation11 + $0x68] ss:$16 sps:$4 sm:$0xff]  }
  0xfc   :  { %1039 = vmatprep.subr.bf16.mxu1 %v4804_v56  ;;  %6742 = vst [vmem:[#allocation68_spill] sm:$0xff] %v4818_v34  ;;  %v4826_v56 = vld [vmem:[#allocation11 + $0x64] ss:$16 sps:$4 sm:$0xff]   ;;  %6747 = vst [vmem:[#allocation73_spill] sm:$0xff] %v4832_v57 }
  0xfd   :  { %6744 = vst [vmem:[#allocation70_spill] sm:$0xff] %v4826_v56 }
  0xfe   :  { %999 = vmatpush1.bf16.msra.mxu0 %v4806_v31  ;;  %v4828_v31 = vld [vmem:[#allocation11 + $0x6c] ss:$16 sps:$4 sm:$0xff]  }
  0xff   :  { %1040 = vmatpush1.bf16.msra.mxu1 %v4808_v0  ;;  %1000 = vmatprep.subr.bf16.mxu0 %v4814_v62  ;;  %6745 = vst [vmem:[#allocation71_spill] sm:$0xff] %v4828_v31  ;;  %v4830_v0 = vld [vmem:[#allocation11 + $0x60] ss:$16 sps:$4 sm:$0xff]   ;;  %v4844_v62 = vld [vmem:[#allocation11 + $0x88] ss:$16 sps:$4 sm:$0xff]  }
 0x100   :  { %1041 = vmatprep.subr.bf16.mxu1 %v4816_v63  ;;  %6746 = vst [vmem:[#allocation72_spill] sm:$0xff] %v4830_v0  ;;  %v4838_v63 = vld [vmem:[#allocation11 + $0x84] ss:$16 sps:$4 sm:$0xff]   ;;  %6751 = vst [vmem:[#allocation77_spill] sm:$0xff] %v4844_v62 }
 0x101   :  { %6748 = vst [vmem:[#allocation74_spill] sm:$0xff] %v4838_v63 }
 0x102   :  { %1001 = vmatpush1.bf16.msra.mxu0 %v4818_v34  ;;  %v4840_v34 = vld [vmem:[#allocation11 + $0x8c] ss:$16 sps:$4 sm:$0xff]  }
 0x103   :  { %1042 = vmatpush1.bf16.msra.mxu1 %v4820_v61  ;;  %1002 = vmatprep.subr.bf16.mxu0 %v4826_v56  ;;  %6749 = vst [vmem:[#allocation75_spill] sm:$0xff] %v4840_v34  ;;  %v4842_v61 = vld [vmem:[#allocation11 + $0x80] ss:$16 sps:$4 sm:$0xff]   ;;  %v4856_v56 = vld [vmem:[#allocation11 + $0xa8] ss:$16 sps:$4 sm:$0xff]  }
 0x104   :  { %1043 = vmatprep.subr.bf16.mxu1 %v4828_v31  ;;  %6750 = vst [vmem:[#allocation76_spill] sm:$0xff] %v4842_v61  ;;  %v4850_v31 = vld [vmem:[#allocation11 + $0xa4] ss:$16 sps:$4 sm:$0xff]   ;;  %6755 = vst [vmem:[#allocation81_spill] sm:$0xff] %v4856_v56 }
 0x105   :  { %6752 = vst [vmem:[#allocation78_spill] sm:$0xff] %v4850_v31 }
 0x106   :  { %1003 = vmatpush1.bf16.msra.mxu0 %v4830_v0  ;;  %v4852_v0 = vld [vmem:[#allocation11 + $0xac] ss:$16 sps:$4 sm:$0xff]  }
 0x107   :  { %1044 = vmatpush1.bf16.msra.mxu1 %v4832_v57  ;;  %1004 = vmatprep.subr.bf16.mxu0 %v4838_v63  ;;  %6753 = vst [vmem:[#allocation79_spill] sm:$0xff] %v4852_v0  ;;  %v4854_v57 = vld [vmem:[#allocation11 + $0xa0] ss:$16 sps:$4 sm:$0xff]   ;;  %v4868_v63 = vld [vmem:[#allocation11 + $0xc8] ss:$16 sps:$4 sm:$0xff]  }
 0x108   :  { %1045 = vmatprep.subr.bf16.mxu1 %v4840_v34  ;;  %6754 = vst [vmem:[#allocation80_spill] sm:$0xff] %v4854_v57  ;;  %v4862_v34 = vld [vmem:[#allocation11 + $0xc4] ss:$16 sps:$4 sm:$0xff]   ;;  %6759 = vst [vmem:[#allocation85_spill] sm:$0xff] %v4868_v63 }
 0x109   :  { %6756 = vst [vmem:[#allocation82_spill] sm:$0xff] %v4862_v34 }
 0x10a   :  { %1005 = vmatpush1.bf16.msra.mxu0 %v4842_v61  ;;  %v4864_v61 = vld [vmem:[#allocation11 + $0xcc] ss:$16 sps:$4 sm:$0xff]  }
 0x10b   :  { %1046 = vmatpush1.bf16.msra.mxu1 %v4844_v62  ;;  %1006 = vmatprep.subr.bf16.mxu0 %v4850_v31  ;;  %6757 = vst [vmem:[#allocation83_spill] sm:$0xff] %v4864_v61  ;;  %v4866_v62 = vld [vmem:[#allocation11 + $0xc0] ss:$16 sps:$4 sm:$0xff]   ;;  %v4880_v31 = vld [vmem:[#allocation11 + $0xe8] ss:$16 sps:$4 sm:$0xff]  }
 0x10c   :  { %1047 = vmatprep.subr.bf16.mxu1 %v4852_v0  ;;  %6758 = vst [vmem:[#allocation84_spill] sm:$0xff] %v4866_v62  ;;  %v4874_v0 = vld [vmem:[#allocation11 + $0xe4] ss:$16 sps:$4 sm:$0xff]   ;;  %6763 = vst [vmem:[#allocation89_spill] sm:$0xff] %v4880_v31 }
 0x10d   :  { %6760 = vst [vmem:[#allocation86_spill] sm:$0xff] %v4874_v0 }
 0x10e   :  { %1007 = vmatpush1.bf16.msra.mxu0 %v4854_v57  ;;  %v4876_v57 = vld [vmem:[#allocation11 + $0xec] ss:$16 sps:$4 sm:$0xff]  }
 0x10f   :  { %1048 = vmatpush1.bf16.msra.mxu1 %v4856_v56  ;;  %1008 = vmatprep.subr.bf16.mxu0 %v4862_v34  ;;  %6761 = vst [vmem:[#allocation87_spill] sm:$0xff] %v4876_v57  ;;  %v4878_v56 = vld [vmem:[#allocation11 + $0xe0] ss:$16 sps:$4 sm:$0xff]  }
 0x110   :  { %1049 = vmatprep.subr.bf16.mxu1 %v4864_v61  ;;  %6762 = vst [vmem:[#allocation88_spill] sm:$0xff] %v4878_v56 }
 0x112   :  { %1009 = vmatpush1.bf16.msra.mxu0 %v4866_v62 }
 0x113   :  { %1050 = vmatpush1.bf16.msra.mxu1 %v4868_v63  ;;  %1010 = vmatprep.subr.bf16.mxu0 %v4874_v0 }
 0x114   :  { %1051 = vmatprep.subr.bf16.mxu1 %v4876_v57 }
 0x116   :  { %1011 = vmatpush1.bf16.msra.mxu0 %v4878_v56  ;;  %v4896_v56 = vshrl.u32 %v173_v54, 7  ;;  %v499_v54 = vunpack.c.h.bf16 %v496_v55 }
 0x117   :  { %1052 = vmatpush1.bf16.msra.mxu1 %v4880_v31  ;;  %1101 = vmatprep.subr.bf16.mxu0 %v4594_v1  ;;  %v171_v1 = vld [vmem:[#allocation8] sm:$0xf] }
 0x118   :  { %1142 = vmatprep.subr.bf16.mxu1 %v4602_v4  ;;  %v6432_v31 = vsub.s32 0, %v4896_v56  ;;  %v6436_v4 = vsub.s32 1, %v4896_v56  ;;  %v6438_v52 = vsub.s32 2, %v4896_v56  ;;  %v6447_v47 = vsub.s32 3, %v4896_v56 }
 0x1ab   :  { %v4888_v63 = vpop.f32.mrb[0].mxu0  ;;  %v4892_v58 = vpop.f32.mrb[0].mxu1 }
 0x1ac   :  { %v4890_v62 = vpop.f32.mrb[1].mxu0  ;;  %v4894_v59 = vpop.f32.mrb[1].mxu1 }
 0x1ad   :  { %v452_v61 = vpop.f32.mrb[2].mxu0  ;;  %v493_v0 = vpop.f32.mrb[2].mxu1 }
 0x1ae   :  { %v453_v34 = vpop.f32.mrb[3].mxu0  ;;  %v494_v57 = vpop.f32.mrb[3].mxu1  ;;  %v4903_v61 = vrot.slane %v171_v1, %v6432_v31  ;;  %v4907_v0 = vrot.slane %v171_v1, %v6436_v4  ;;  %v4919_v4 = vrot.slane %v171_v1, %v6447_v47 }
 0x1af   :  { %v498_v34 = vunpack.c.l.bf16 %v496_v55  ;;  %v4911_v57 = vrot.slane %v171_v1, %v6438_v52  ;;  %v501_v55 = vunpack.c.h.bf16 %v497_v53 }
 0x1b0   :  { %6764 = vst [vmem:[#allocation90_spill] sm:$0xff] %v4903_v61  ;;  %6765 = vst [vmem:[#allocation91_spill] sm:$0xff] %v4907_v0  ;;  %v503_v50 = vadd.f32 %v499_v54, %v4907_v0 }
 0x1b1   :  { %6766 = vst [vmem:[#allocation92_spill] sm:$0xff] %v4911_v57  ;;  %v502_v51 = vadd.f32 %v498_v34, %v4903_v61  ;;  %v504_v46 = vadd.f32 %v500_v49, %v4911_v57  ;;  %v505_v54 = vadd.f32 %v501_v55, %v4919_v4 }
 0x1cb   :  { %v733_v31 = vpop.f32.mrb[4].mxu0 }
 0x1cc   :  { %v781_v48 = vadd.f32 %v733_v31, %v502_v51  ;;  %v735_v43 = vpop.f32.mrb[5].mxu0  ;;  %v774_v40 = vpop.f32.mrb[4].mxu1 }
 0x1cd   :  { %v782_v45 = vadd.f32 %v735_v43, %v503_v50  ;;  %v737_v52 = vpop.f32.mrb[6].mxu0  ;;  %v783_v61 = vadd.f32 %v774_v40, %v504_v46  ;;  %v776_v41 = vpop.f32.mrb[5].mxu1 }
 0x1ce   :  { %v785_v42 = vmul.f32 0.5, %v781_v48  ;;  %v738_v44 = vpop.f32.mrb[7].mxu0  ;;  %v778_v0 = vpop.f32.mrb[6].mxu1  ;;  %v784_v51 = vadd.f32 %v776_v41, %v505_v54  ;;  %v216_v48 = vld [vmem:[#allocation7] sm:$0xff] }
 0x1cf   :  { %v789_v34 = vmul.f32 0.5, %v782_v45  ;;  %v779_v49 = vpop.f32.mrb[7].mxu1 }
 0x1d0   :  { %3699 = vtanh.f32 %v785_v42  ;;  %v794_v31 = vmul.f32 0.5, %v784_v51 }
 0x1d1   :  { %3701 = vtanh.f32 %v789_v34 }
 0x1d2   :  { %3703 = vtanh.f32 %v783_v61 }
 0x1d3   :  { %3705 = vtanh.f32 %v794_v31 }
 0x1da   :  { %v3700_v1 = vpop.eup %3699 }
 0x1db   :  { %v3702_v47 = vpop.eup %3701  ;;  %v787_v53 = vmul.f32 0.5, %v3700_v1 }
 0x1dc   :  { %v3704_v43 = vpop.eup %3703  ;;  %v791_v50 = vmul.f32 0.5, %v3702_v47 }
 0x1dd   :  { %v788_v44 = vadd.f32 0.5, %v787_v53  ;;  %v3706_v52 = vpop.eup %3705 }
 0x1de   :  { %v792_v45 = vadd.f32 0.5, %v791_v50  ;;  %v796_v0 = vmul.f32 0.5, %v3706_v52  ;;  %v6771_v50 = vld [vmem:[#allocation32_spill] sm:$0xff]  ;;  %v6780_v52 = vld [vmem:[#allocation38_spill] sm:$0xff] }
 0x1df   :  { %v799_v40 = vmul.f32 %v3704_v43, %v788_v44  ;;  %v6772_v44 = vld [vmem:[#allocation31_spill] sm:$0xff] }
 0x1e0   :  { %v798_v46 = vmul.f32 %v792_v45, %v216_v48  ;;  %v797_v61 = vadd.f32 0.5, %v796_v0  ;;  %v6773_v48 = vld [vmem:[#allocation35_spill] sm:$0xff]  ;;  %v6774_v45 = vld [vmem:[#allocation33_spill] sm:$0xff]  ;;  %v6781_v0 = vld [vmem:[#allocation42_spill] sm:$0xff] }
 0x1e2   :  { %v4922_v42 = vadd.f32 %v799_v40, %v798_v46  ;;  %v6775_v40 = vld [vmem:[#allocation36_spill] sm:$0xff]  ;;  %v6776_v46 = vld [vmem:[#allocation34_spill] sm:$0xff] }
 0x1e4   :  { %3707 = vtanh.f32 %v4922_v42 }
 0x1ee   :  { %v3708_v41 = vpop.eup %3707 }
 0x1ef   :  { %v802_v55 = vmul.f32 %v3708_v41, %v797_v61  ;;  %v6782_v61 = vld [vmem:[#allocation40_spill] sm:$0xff] }
 0x1f0   :  { %v6783_v41 = vld [vmem:[#allocation44_spill] sm:$0xff] }
 0x1f1   :  { %v4925_v34 = vpack.c.bf16 %v802_v55, %v802_v55  ;;  %v6784_v55 = vld [vmem:[#allocation43_spill] sm:$0xff] }
 0x1f3   :  { %1029 = vmatmul.mubr.bf16.vlgmr.msra.gmra.mrb[8].mxu0 %v4925_v34  ;;  %1070 = vmatmul.mubr.bf16.vlgmr.msra.gmra.mrb[8].mxu1 %v4925_v34 }
 0x1f4   :  { %1102 = vmatpush1.bf16.msra.mxu0 %v4596_v2  ;;  %1143 = vmatpush1.bf16.msra.mxu1 %v4606_v6  ;;  %v193_v2 = vld [vmem:[#allocation14] sm:$0xf] }
 0x1f5   :  { %1103 = vmatprep.subr.bf16.mxu0 %v4599_v3  ;;  %1144 = vmatprep.subr.bf16.mxu1 %v4612_v8  ;;  %v6767_v3 = vsub.s32 0, %v4896_v56  ;;  %v6768_v8 = vsub.s32 1, %v4896_v56 }
 0x1f6   :  { %1133 = vmatprep.mubr.bf16.mxu0 %v6731_v60  ;;  %1174 = vmatprep.mubr.bf16.mxu1 %v6731_v60 }
 0x1f8   :  { %1104 = vmatpush1.bf16.msra.mxu0 %v4604_v5  ;;  %1145 = vmatpush1.bf16.msra.mxu1 %v4615_v9  ;;  %v4965_v5 = vrot.slane %v193_v2, %v6767_v3  ;;  %v4969_v9 = vrot.slane %v193_v2, %v6768_v8  ;;  %v6786_v3 = vld [vmem:[#allocation45_spill] sm:$0xff]  ;;  %v6789_v8 = vld [vmem:[#allocation50_spill] sm:$0xff] }
 0x1f9   :  { %1105 = vmatprep.subr.bf16.mxu0 %v4609_v7  ;;  %1146 = vmatprep.subr.bf16.mxu1 %v4624_v12 }
 0x1fc   :  { %1106 = vmatpush1.bf16.msra.mxu0 %v4619_v10  ;;  %1147 = vmatpush1.bf16.msra.mxu1 %v4627_v13 }
 0x1fd   :  { %1107 = vmatprep.subr.bf16.mxu0 %v4622_v11  ;;  %1148 = vmatprep.subr.bf16.mxu1 %v4633_v15 }
 0x200   :  { %1108 = vmatpush1.bf16.msra.mxu0 %v4631_v14  ;;  %1149 = vmatpush1.bf16.msra.mxu1 %v4641_v18 }
 0x201   :  { %1109 = vmatprep.subr.bf16.mxu0 %v4636_v16  ;;  %1150 = vmatprep.subr.bf16.mxu1 %v4645_v19  ;;  %v6769_v19 = vsub.s32 2, %v4896_v56 }
 0x204   :  { %1110 = vmatpush1.bf16.msra.mxu0 %v4639_v17  ;;  %1151 = vmatpush1.bf16.msra.mxu1 %v4651_v21 }
 0x205   :  { %1111 = vmatprep.subr.bf16.mxu0 %v4648_v20  ;;  %1152 = vmatprep.subr.bf16.mxu1 %v4657_v23  ;;  %v4978_v20 = vrot.slane %v193_v2, %v6769_v19  ;;  %v6799_v19 = vld [vmem:[#allocation59_spill] sm:$0xff] }
 0x208   :  { %1112 = vmatpush1.bf16.msra.mxu0 %v4655_v22  ;;  %1153 = vmatpush1.bf16.msra.mxu1 %v4665_v26 }
 0x209   :  { %1113 = vmatprep.subr.bf16.mxu0 %v4660_v24  ;;  %1154 = vmatprep.subr.bf16.mxu1 %v4669_v27  ;;  %v6770_v27 = vsub.s32 3, %v4896_v56 }
 0x20c   :  { %1114 = vmatpush1.bf16.msra.mxu0 %v4663_v25  ;;  %1155 = vmatpush1.bf16.msra.mxu1 %v4677_v30 }
 0x20d   :  { %1115 = vmatprep.subr.bf16.mxu0 %v4672_v28  ;;  %1156 = vmatprep.subr.bf16.mxu1 %v4681_v32  ;;  %v4984_v28 = vrot.slane %v193_v2, %v6770_v27  ;;  %v6785_v2 = vld [vmem:[#allocation46_spill] sm:$0xff] }
 0x20e   :  { %v6806_v27 = vld [vmem:[#allocation66_spill] sm:$0xff] }
 0x210   :  { %1116 = vmatpush1.bf16.msra.mxu0 %v4674_v29  ;;  %1157 = vmatpush1.bf16.msra.mxu1 %v4687_v35 }
 0x211   :  { %1194 = vmatprep.subr.bf16.mxu0 %v4684_v33  ;;  %1235 = vmatprep.subr.bf16.mxu1 %v4693_v37 }
 0x2c6   :  { %v1030_v6 = vpop.f32.mrb[8].mxu0  ;;  %v1071_v7 = vpop.f32.mrb[8].mxu1 }
 0x2c7   :  { %v1031_v10 = vadd.f32 %v1030_v6, %v4888_v63  ;;  %v1072_v11 = vadd.f32 %v1071_v7, %v4892_v58  ;;  %v1032_v12 = vpop.f32.mrb[9].mxu0  ;;  %v1073_v13 = vpop.f32.mrb[9].mxu1  ;;  %v220_v58 = vld [vmem:[#allocation7 + $0x8] sm:$0xff] }
 0x2c8   :  { %v1033_v14 = vadd.f32 %v1032_v12, %v4890_v62  ;;  %v1074_v15 = vadd.f32 %v1073_v13, %v4894_v59  ;;  %v1034_v16 = vpop.f32.mrb[10].mxu0  ;;  %v1075_v17 = vpop.f32.mrb[10].mxu1  ;;  %v6787_v6 = vld [vmem:[#allocation48_spill] sm:$0xff]  ;;  %v6788_v7 = vld [vmem:[#allocation47_spill] sm:$0xff]  ;;  %v6793_v13 = vld [vmem:[#allocation54_spill] sm:$0xff] }
 0x2c9   :  { %v1078_v18 = vadd.f32 %v1031_v10, %v4965_v5  ;;  %v1035_v21 = vpop.f32.mrb[11].mxu0  ;;  %v1076_v22 = vpop.f32.mrb[11].mxu1  ;;  %v1080_v26 = vadd.f32 %v1072_v11, %v4978_v20  ;;  %v6790_v10 = vld [vmem:[#allocation49_spill] sm:$0xff]  ;;  %v6791_v11 = vld [vmem:[#allocation52_spill] sm:$0xff]  ;;  %v6792_v12 = vld [vmem:[#allocation51_spill] sm:$0xff] }
 0x2ca   :  { %v1079_v23 = vadd.f32 %v1033_v14, %v4969_v9  ;;  %v1081_v29 = vadd.f32 %v1074_v15, %v4984_v28  ;;  %v6794_v14 = vld [vmem:[#allocation53_spill] sm:$0xff]  ;;  %v6795_v15 = vld [vmem:[#allocation56_spill] sm:$0xff]  ;;  %v6796_v16 = vld [vmem:[#allocation55_spill] sm:$0xff] }
 0x2cb   :  { %v1082_v24 = vmul.f32 0.5, %v1078_v18  ;;  %v6797_v17 = vld [vmem:[#allocation57_spill] sm:$0xff]  ;;  %v6798_v18 = vld [vmem:[#allocation58_spill] sm:$0xff]  ;;  %v6800_v21 = vld [vmem:[#allocation60_spill] sm:$0xff] }
 0x2cc   :  { %v1086_v25 = vmul.f32 0.5, %v1079_v23  ;;  %v1091_v30 = vmul.f32 0.5, %v1081_v29  ;;  %v6801_v22 = vld [vmem:[#allocation61_spill] sm:$0xff]  ;;  %v6802_v23 = vld [vmem:[#allocation62_spill] sm:$0xff]  ;;  %v6807_v29 = vld [vmem:[#allocation67_spill] sm:$0xff] }
 0x2cd   :  { %3709 = vtanh.f32 %v1082_v24  ;;  %v6803_v24 = vld [vmem:[#allocation63_spill] sm:$0xff] }
 0x2ce   :  { %3711 = vtanh.f32 %v1086_v25  ;;  %v6804_v25 = vld [vmem:[#allocation64_spill] sm:$0xff] }
 0x2cf   :  { %3713 = vtanh.f32 %v1080_v26  ;;  %v6805_v26 = vld [vmem:[#allocation65_spill] sm:$0xff] }
 0x2d0   :  { %3715 = vtanh.f32 %v1091_v30  ;;  %v6809_v30 = vld [vmem:[#allocation69_spill] sm:$0xff] }
 0x2d7   :  { %v3710_v32 = vpop.eup %3709 }
 0x2d8   :  { %v3712_v33 = vpop.eup %3711  ;;  %v1084_v35 = vmul.f32 0.5, %v3710_v32  ;;  %v6810_v32 = vld [vmem:[#allocation70_spill] sm:$0xff] }
 0x2d9   :  { %v1088_v37 = vmul.f32 0.5, %v3712_v33  ;;  %v3714_v59 = vpop.eup %3713  ;;  %v6811_v33 = vld [vmem:[#allocation71_spill] sm:$0xff] }
 0x2da   :  { %v1085_v47 = vadd.f32 0.5, %v1084_v35  ;;  %v3716_v56 = vpop.eup %3715  ;;  %v6812_v35 = vld [vmem:[#allocation72_spill] sm:$0xff] }
 0x2db   :  { %v1089_v62 = vadd.f32 0.5, %v1088_v37  ;;  %v1093_v51 = vmul.f32 0.5, %v3716_v56  ;;  %v6813_v37 = vld [vmem:[#allocation73_spill] sm:$0xff]  ;;  %v6820_v56 = vld [vmem:[#allocation80_spill] sm:$0xff] }
 0x2dc   :  { %v1096_v63 = vmul.f32 %v3714_v59, %v1085_v47  ;;  %v6814_v47 = vld [vmem:[#allocation74_spill] sm:$0xff]  ;;  %v6816_v59 = vld [vmem:[#allocation76_spill] sm:$0xff] }
 0x2dd   :  { %v1095_v54 = vmul.f32 %v1089_v62, %v220_v58  ;;  %v1094_v31 = vadd.f32 0.5, %v1093_v51  ;;  %v6815_v58 = vld [vmem:[#allocation75_spill] sm:$0xff]  ;;  %v6817_v62 = vld [vmem:[#allocation77_spill] sm:$0xff] }
 0x2de   :  { %v6821_v51 = vld [vmem:[#allocation81_spill] sm:$0xff] }
 0x2df   :  { %v4987_v49 = vadd.f32 %v1096_v63, %v1095_v54  ;;  %v6818_v63 = vld [vmem:[#allocation78_spill] sm:$0xff]  ;;  %v6819_v54 = vld [vmem:[#allocation79_spill] sm:$0xff] }
 0x2e1   :  { %3717 = vtanh.f32 %v4987_v49 }
 0x2eb   :  { %v3718_v1 = vpop.eup %3717 }
 0x2ec   :  { %v1099_v53 = vmul.f32 %v3718_v1, %v1094_v31  ;;  %v6822_v31 = vld [vmem:[#allocation82_spill] sm:$0xff]  ;;  %v6823_v1 = vld [vmem:[#allocation83_spill] sm:$0xff] }
 0x2ee   :  { %v1100_v43 = vpack.c.bf16 %v1099_v53, %v1099_v53  ;;  %v6824_v53 = vld [vmem:[#allocation84_spill] sm:$0xff] }
 0x2f0   :  { %1134 = vmatmul.mubr.bf16.vlgmr.msra.gmra.mrb[12].mxu0 %v1100_v43  ;;  %1175 = vmatmul.mubr.bf16.vlgmr.msra.gmra.mrb[12].mxu1 %v1100_v43  ;;  %v6825_v43 = vld [vmem:[#allocation85_spill] sm:$0xff] }
 0x2f1   :  { %1195 = vmatpush1.bf16.msra.mxu0 %v4689_v36  ;;  %1236 = vmatpush1.bf16.msra.mxu1 %v4699_v39  ;;  %v6777_v36 = vld [vmem:[#allocation39_spill] sm:$0xff]  ;;  %v6778_v39 = vld [vmem:[#allocation37_spill] sm:$0xff] }
 0x2f2   :  { %1196 = vmatprep.subr.bf16.mxu0 %v4696_v38  ;;  %1237 = vmatprep.subr.bf16.mxu1 %v6771_v50  ;;  %v6779_v38 = vld [vmem:[#allocation41_spill] sm:$0xff]  ;;  %v6826_v50 = vld [vmem:[#allocation86_spill] sm:$0xff] }
 0x2f3   :  { %1226 = vmatprep.mubr.bf16.mxu0 %v6731_v60  ;;  %1267 = vmatprep.mubr.bf16.mxu1 %v6731_v60 }
 0x2f5   :  { %1197 = vmatpush1.bf16.msra.mxu0 %v6772_v44  ;;  %1238 = vmatpush1.bf16.msra.mxu1 %v6773_v48  ;;  %v6827_v44 = vld [vmem:[#allocation87_spill] sm:$0xff]  ;;  %v6828_v48 = vld [vmem:[#allocation88_spill] sm:$0xff] }
 0x2f6   :  { %1198 = vmatprep.subr.bf16.mxu0 %v6774_v45  ;;  %1239 = vmatprep.subr.bf16.mxu1 %v6775_v40  ;;  %v6829_v45 = vld [vmem:[#allocation89_spill] sm:$0xff] }
 0x2f7   :  { %v5058_v40 = vld [vmem:[#allocation13 + $0x4] ss:$16 sps:$4 sm:$0xff]  }
 0x2f8   :  { %6830 = vst [vmem:[#allocation32_spill] sm:$0xff] %v5058_v40 }
 0x2f9   :  { %1199 = vmatpush1.bf16.msra.mxu0 %v6776_v46  ;;  %1240 = vmatpush1.bf16.msra.mxu1 %v6777_v36  ;;  %v5061_v46 = vld [vmem:[#allocation13 + $0xc] ss:$16 sps:$4 sm:$0xff]  }
 0x2fa   :  { %1200 = vmatprep.subr.bf16.mxu0 %v6778_v39  ;;  %1241 = vmatprep.subr.bf16.mxu1 %v6779_v38  ;;  %6831 = vst [vmem:[#allocation31_spill] sm:$0xff] %v5061_v46 }
 0x2fd   :  { %1201 = vmatpush1.bf16.msra.mxu0 %v6780_v52  ;;  %1242 = vmatpush1.bf16.msra.mxu1 %v6781_v0 }
 0x2fe   :  { %1202 = vmatprep.subr.bf16.mxu0 %v6782_v61  ;;  %1243 = vmatprep.subr.bf16.mxu1 %v6783_v41 }
 0x301   :  { %1203 = vmatpush1.bf16.msra.mxu0 %v6784_v55  ;;  %1244 = vmatpush1.bf16.msra.mxu1 %v6785_v2 }
 0x302   :  { %1204 = vmatprep.subr.bf16.mxu0 %v6786_v3  ;;  %1245 = vmatprep.subr.bf16.mxu1 %v6787_v6  ;;  %v1184_v3 = vld [vmem:[#allocation2 + $0x10] sm:$0xff] }
 0x305   :  { %1205 = vmatpush1.bf16.msra.mxu0 %v6788_v7  ;;  %1246 = vmatpush1.bf16.msra.mxu1 %v6789_v8 }
 0x306   :  { %1206 = vmatprep.subr.bf16.mxu0 %v6790_v10  ;;  %1247 = vmatprep.subr.bf16.mxu1 %v6791_v11 }
 0x309   :  { %1207 = vmatpush1.bf16.msra.mxu0 %v6792_v12  ;;  %1248 = vmatpush1.bf16.msra.mxu1 %v6793_v13 }
 0x30a   :  { %1208 = vmatprep.subr.bf16.mxu0 %v6794_v14  ;;  %1249 = vmatprep.subr.bf16.mxu1 %v6795_v15 }
 0x30d   :  { %1209 = vmatpush1.bf16.msra.mxu0 %v6796_v16  ;;  %1250 = vmatpush1.bf16.msra.mxu1 %v6797_v17 }
 0x30e   :  { %1299 = vmatprep.subr.bf16.mxu0 %v6798_v18  ;;  %1340 = vmatprep.subr.bf16.mxu1 %v6799_v19 }
 0x310   :  { %1227 = vmatmul.mubr.bf16.vlgmr.msra.gmra.mrb[16].mxu0 %v4925_v34  ;;  %1268 = vmatmul.mubr.bf16.vlgmr.msra.gmra.mrb[16].mxu1 %v4925_v34  ;;  %v6808_v34 = vld [vmem:[#allocation68_spill] sm:$0xff] }
 0x311   :  { %1300 = vmatpush1.bf16.msra.mxu0 %v6800_v21  ;;  %1341 = vmatpush1.bf16.msra.mxu1 %v6801_v22 }
 0x312   :  { %1301 = vmatprep.subr.bf16.mxu0 %v6802_v23  ;;  %1342 = vmatprep.subr.bf16.mxu1 %v6803_v24 }
 0x313   :  { %1331 = vmatprep.mubr.bf16.mxu0 %v6731_v60  ;;  %1372 = vmatprep.mubr.bf16.mxu1 %v6731_v60 }
 0x315   :  { %1302 = vmatpush1.bf16.msra.mxu0 %v6804_v25  ;;  %1343 = vmatpush1.bf16.msra.mxu1 %v6805_v26 }
 0x316   :  { %1303 = vmatprep.subr.bf16.mxu0 %v6806_v27  ;;  %1344 = vmatprep.subr.bf16.mxu1 %v6807_v29 }
 0x319   :  { %1304 = vmatpush1.bf16.msra.mxu0 %v6808_v34  ;;  %1345 = vmatpush1.bf16.msra.mxu1 %v6809_v30 }
 0x31a   :  { %1305 = vmatprep.subr.bf16.mxu0 %v6810_v32  ;;  %1346 = vmatprep.subr.bf16.mxu1 %v6811_v33 }
 0x31d   :  { %1306 = vmatpush1.bf16.msra.mxu0 %v6812_v35  ;;  %1347 = vmatpush1.bf16.msra.mxu1 %v6813_v37 }
 0x31e   :  { %1307 = vmatprep.subr.bf16.mxu0 %v6814_v47  ;;  %1348 = vmatprep.subr.bf16.mxu1 %v6815_v58 }
 0x321   :  { %1308 = vmatpush1.bf16.msra.mxu0 %v6816_v59  ;;  %1349 = vmatpush1.bf16.msra.mxu1 %v6817_v62 }
 0x322   :  { %1309 = vmatprep.subr.bf16.mxu0 %v6818_v63  ;;  %1350 = vmatprep.subr.bf16.mxu1 %v6819_v54 }
 0x325   :  { %1310 = vmatpush1.bf16.msra.mxu0 %v6820_v56  ;;  %1351 = vmatpush1.bf16.msra.mxu1 %v6821_v51 }
 0x326   :  { %1311 = vmatprep.subr.bf16.mxu0 %v6822_v31  ;;  %1352 = vmatprep.subr.bf16.mxu1 %v6823_v1 }
 0x329   :  { %1312 = vmatpush1.bf16.msra.mxu0 %v6824_v53  ;;  %1353 = vmatpush1.bf16.msra.mxu1 %v6825_v43 }
 0x32a   :  { %1313 = vmatprep.subr.bf16.mxu0 %v6826_v50  ;;  %1354 = vmatprep.subr.bf16.mxu1 %v6827_v44  ;;  %v6832_v44 = vld [vmem:[#allocation90_spill] sm:$0xff] }
 0x32d   :  { %1314 = vmatpush1.bf16.msra.mxu0 %v6828_v48  ;;  %1355 = vmatpush1.bf16.msra.mxu1 %v6829_v45  ;;  %v1186_v45 = vunpack.c.l.bf16 %v1184_v3  ;;  %v1185_v48 = vld [vmem:[#allocation2 + $0x18] sm:$0xff] }
 0x32e   :  { %1404 = vmatprep.subr.bf16.mxu0 %v5058_v40  ;;  %1445 = vmatprep.subr.bf16.mxu1 %v5061_v46  ;;  %v1187_v40 = vunpack.c.h.bf16 %v1184_v3  ;;  %v1188_v43 = vunpack.c.l.bf16 %v1185_v48  ;;  %v6833_v46 = vld [vmem:[#allocation91_spill] sm:$0xff]  ;;  %v1189_v63 = vunpack.c.h.bf16 %v1185_v48 }
 0x32f   :  { %v1190_v50 = vadd.f32 %v1186_v45, %v6832_v44 }
 0x330   :  { %v1191_v53 = vadd.f32 %v1187_v40, %v6833_v46  ;;  %v1192_v56 = vadd.f32 %v1188_v43, %v4911_v57  ;;  %v1193_v44 = vadd.f32 %v1189_v63, %v4919_v4 }
 0x3c3   :  { %v5064_v36 = vpop.f32.mrb[12].mxu0  ;;  %v5066_v39 = vpop.f32.mrb[12].mxu1 }
 0x3c4   :  { %v5068_v38 = vpop.f32.mrb[13].mxu0  ;;  %v5070_v52 = vpop.f32.mrb[13].mxu1 }
 0x3c5   :  { %v1139_v0 = vpop.f32.mrb[14].mxu0  ;;  %v1180_v61 = vpop.f32.mrb[14].mxu1 }
 0x3c6   :  { %v1140_v41 = vpop.f32.mrb[15].mxu0  ;;  %v1181_v55 = vpop.f32.mrb[15].mxu1 }
 0x3e3   :  { %v1228_v1 = vpop.f32.mrb[16].mxu0  ;;  %v1269_v31 = vpop.f32.mrb[16].mxu1 }
 0x3e4   :  { %v1276_v51 = vadd.f32 %v1228_v1, %v1190_v50  ;;  %v1230_v54 = vpop.f32.mrb[17].mxu0  ;;  %v1271_v0 = vpop.f32.mrb[17].mxu1  ;;  %v1278_v45 = vadd.f32 %v1269_v31, %v1192_v56 }
 0x3e5   :  { %v1277_v61 = vadd.f32 %v1230_v54, %v1191_v53  ;;  %v1232_v41 = vpop.f32.mrb[18].mxu0  ;;  %v1273_v55 = vpop.f32.mrb[18].mxu1  ;;  %v1279_v40 = vadd.f32 %v1271_v0, %v1193_v44 }
 0x3e6   :  { %v1280_v62 = vmul.f32 0.5, %v1276_v51  ;;  %v1233_v59 = vpop.f32.mrb[19].mxu0  ;;  %v1274_v58 = vpop.f32.mrb[19].mxu1  ;;  %v5093_v55 = vld [vmem:[#allocation13 + $0x2c] ss:$16 sps:$4 sm:$0xff]  }
 0x3e7   :  { %v1284_v3 = vmul.f32 0.5, %v1277_v61  ;;  %v1289_v1 = vmul.f32 0.5, %v1279_v40  ;;  %v5090_v61 = vld [vmem:[#allocation13 + $0x24] ss:$16 sps:$4 sm:$0xff]  }
 0x3e8   :  { %3719 = vtanh.f32 %v1280_v62  ;;  %v5104_v40 = vld [vmem:[#allocation13 + $0x44] ss:$16 sps:$4 sm:$0xff]  }
 0x3e9   :  { %3721 = vtanh.f32 %v1284_v3  ;;  %v5098_v3 = vld [vmem:[#allocation13 + $0x20] ss:$16 sps:$4 sm:$0xff]   ;;  %6835 = vst [vmem:[#allocation33_spill] sm:$0xff] %v5104_v40 }
 0x3ea   :  { %3723 = vtanh.f32 %v1278_v45  ;;  %v5101_v45 = vld [vmem:[#allocation13 + $0x28] ss:$16 sps:$4 sm:$0xff]  }
 0x3eb   :  { %3725 = vtanh.f32 %v1289_v1  ;;  %6834 = vst [vmem:[#allocation35_spill] sm:$0xff] %v5101_v45  ;;  %v5107_v1 = vld [vmem:[#allocation13 + $0x4c] ss:$16 sps:$4 sm:$0xff]  }
 0x3ec   :  { %6836 = vst [vmem:[#allocation36_spill] sm:$0xff] %v5107_v1 }
 0x3f2   :  { %v3720_v50 = vpop.eup %3719 }
 0x3f3   :  { %v3722_v43 = vpop.eup %3721  ;;  %v1282_v57 = vmul.f32 0.5, %v3720_v50  ;;  %v5110_v50 = vld [vmem:[#allocation13 + $0x40] ss:$16 sps:$4 sm:$0xff]  }
 0x3f4   :  { %v1286_v48 = vmul.f32 0.5, %v3722_v43  ;;  %v3724_v53 = vpop.eup %3723  ;;  %6837 = vst [vmem:[#allocation34_spill] sm:$0xff] %v5110_v50  ;;  %v5113_v43 = vld [vmem:[#allocation13 + $0x48] ss:$16 sps:$4 sm:$0xff]  }
 0x3f5   :  { %v1283_v54 = vadd.f32 0.5, %v1282_v57  ;;  %v3726_v62 = vpop.eup %3725  ;;  %v5084_v57 = vld [vmem:[#allocation13] ss:$16 sps:$4 sm:$0xff]   ;;  %6838 = vst [vmem:[#allocation39_spill] sm:$0xff] %v5113_v43 }
 0x3f6   :  { %v1287_v41 = vadd.f32 0.5, %v1286_v48  ;;  %v1291_v63 = vmul.f32 0.5, %v3726_v62  ;;  %v5116_v48 = vld [vmem:[#allocation13 + $0x64] ss:$16 sps:$4 sm:$0xff]   ;;  %v5134_v62 = vld [vmem:[#allocation13 + $0x80] ss:$16 sps:$4 sm:$0xff]  }
 0x3f7   :  { %v1294_v51 = vmul.f32 %v3724_v53, %v1283_v54  ;;  %6839 = vst [vmem:[#allocation37_spill] sm:$0xff] %v5116_v48  ;;  %v5119_v54 = vld [vmem:[#allocation13 + $0x6c] ss:$16 sps:$4 sm:$0xff]   ;;  %v5122_v53 = vld [vmem:[#allocation13 + $0x60] ss:$16 sps:$4 sm:$0xff]   ;;  %6845 = vst [vmem:[#allocation43_spill] sm:$0xff] %v5134_v62 }
 0x3f8   :  { %v1293_v58 = vmul.f32 %v1287_v41, %v4922_v42  ;;  %v1292_v56 = vadd.f32 0.5, %v1291_v63  ;;  %v5087_v42 = vld [vmem:[#allocation13 + $0x8] ss:$16 sps:$4 sm:$0xff]   ;;  %6840 = vst [vmem:[#allocation41_spill] sm:$0xff] %v5119_v54  ;;  %6841 = vst [vmem:[#allocation38_spill] sm:$0xff] %v5122_v53 }
 0x3f9   :  { %v5125_v41 = vld [vmem:[#allocation13 + $0x68] ss:$16 sps:$4 sm:$0xff]  }
 0x3fa   :  { %v5077_v59 = vadd.f32 %v1294_v51, %v1293_v58  ;;  %6842 = vst [vmem:[#allocation42_spill] sm:$0xff] %v5125_v41  ;;  %v5128_v51 = vld [vmem:[#allocation13 + $0x84] ss:$16 sps:$4 sm:$0xff]   ;;  %v5131_v58 = vld [vmem:[#allocation13 + $0x8c] ss:$16 sps:$4 sm:$0xff]  }
 0x3fb   :  { %6843 = vst [vmem:[#allocation40_spill] sm:$0xff] %v5128_v51  ;;  %6844 = vst [vmem:[#allocation44_spill] sm:$0xff] %v5131_v58  ;;  %v5137_v63 = vld [vmem:[#allocation13 + $0x88] ss:$16 sps:$4 sm:$0xff]  }
 0x3fc   :  { %3727 = vtanh.f32 %v5077_v59  ;;  %6846 = vst [vmem:[#allocation46_spill] sm:$0xff] %v5137_v63 }
 0x406   :  { %v3728_v31 = vpop.eup %3727 }
 0x407   :  { %v1297_v44 = vmul.f32 %v3728_v31, %v1292_v56  ;;  %v5140_v56 = vld [vmem:[#allocation13 + $0xa4] ss:$16 sps:$4 sm:$0xff]   ;;  %v5143_v31 = vld [vmem:[#allocation13 + $0xac] ss:$16 sps:$4 sm:$0xff]  }
 0x408   :  { %6847 = vst [vmem:[#allocation45_spill] sm:$0xff] %v5140_v56  ;;  %6848 = vst [vmem:[#allocation48_spill] sm:$0xff] %v5143_v31 }
 0x409   :  { %v5080_v0 = vpack.c.bf16 %v1297_v44, %v1297_v44  ;;  %v5146_v44 = vld [vmem:[#allocation13 + $0xa0] ss:$16 sps:$4 sm:$0xff]  }
 0x40a   :  { %6849 = vst [vmem:[#allocation47_spill] sm:$0xff] %v5146_v44 }
 0x40b   :  { %1332 = vmatmul.mubr.bf16.vlgmr.msra.gmra.mrb[20].mxu0 %v5080_v0  ;;  %1373 = vmatmul.mubr.bf16.vlgmr.msra.gmra.mrb[20].mxu1 %v5080_v0 }
 0x40c   :  { %1405 = vmatpush1.bf16.msra.mxu0 %v5084_v57  ;;  %1446 = vmatpush1.bf16.msra.mxu1 %v5087_v42 }
 0x40d   :  { %1406 = vmatprep.subr.bf16.mxu0 %v5090_v61  ;;  %1447 = vmatprep.subr.bf16.mxu1 %v5093_v55 }
 0x40e   :  { %1436 = vmatprep.mubr.bf16.mxu0 %v6731_v60  ;;  %1477 = vmatprep.mubr.bf16.mxu1 %v6731_v60 }
 0x410   :  { %1407 = vmatpush1.bf16.msra.mxu0 %v5098_v3  ;;  %1448 = vmatpush1.bf16.msra.mxu1 %v5101_v45 }
 0x411   :  { %1408 = vmatprep.subr.bf16.mxu0 %v5104_v40  ;;  %1449 = vmatprep.subr.bf16.mxu1 %v5107_v1 }
 0x414   :  { %1409 = vmatpush1.bf16.msra.mxu0 %v5110_v50  ;;  %1450 = vmatpush1.bf16.msra.mxu1 %v5113_v43 }
 0x415   :  { %1410 = vmatprep.subr.bf16.mxu0 %v5116_v48  ;;  %1451 = vmatprep.subr.bf16.mxu1 %v5119_v54 }
 0x418   :  { %1411 = vmatpush1.bf16.msra.mxu0 %v5122_v53  ;;  %1452 = vmatpush1.bf16.msra.mxu1 %v5125_v41 }
 0x419   :  { %1412 = vmatprep.subr.bf16.mxu0 %v5128_v51  ;;  %1453 = vmatprep.subr.bf16.mxu1 %v5131_v58  ;;  %v5149_v58 = vld [vmem:[#allocation13 + $0xa8] ss:$16 sps:$4 sm:$0xff]  }
 0x41a   :  { %6850 = vst [vmem:[#allocation50_spill] sm:$0xff] %v5149_v58 }
 0x41c   :  { %1413 = vmatpush1.bf16.msra.mxu0 %v5134_v62  ;;  %1454 = vmatpush1.bf16.msra.mxu1 %v5137_v63  ;;  %v5152_v62 = vld [vmem:[#allocation13 + $0xc4] ss:$16 sps:$4 sm:$0xff]   ;;  %v5155_v63 = vld [vmem:[#allocation13 + $0xcc] ss:$16 sps:$4 sm:$0xff]  }
 0x41d   :  { %1414 = vmatprep.subr.bf16.mxu0 %v5140_v56  ;;  %1455 = vmatprep.subr.bf16.mxu1 %v5143_v31  ;;  %6851 = vst [vmem:[#allocation49_spill] sm:$0xff] %v5152_v62  ;;  %6852 = vst [vmem:[#allocation52_spill] sm:$0xff] %v5155_v63  ;;  %v5158_v56 = vld [vmem:[#allocation13 + $0xc0] ss:$16 sps:$4 sm:$0xff]   ;;  %v5161_v31 = vld [vmem:[#allocation13 + $0xc8] ss:$16 sps:$4 sm:$0xff]  }
 0x41e   :  { %6853 = vst [vmem:[#allocation51_spill] sm:$0xff] %v5158_v56  ;;  %6854 = vst [vmem:[#allocation54_spill] sm:$0xff] %v5161_v31 }
 0x420   :  { %1415 = vmatpush1.bf16.msra.mxu0 %v5146_v44  ;;  %1456 = vmatpush1.bf16.msra.mxu1 %v5149_v58  ;;  %v5164_v44 = vld [vmem:[#allocation13 + $0xe4] ss:$16 sps:$4 sm:$0xff]   ;;  %v5167_v58 = vld [vmem:[#allocation13 + $0xec] ss:$16 sps:$4 sm:$0xff]  }
 0x421   :  { %1416 = vmatprep.subr.bf16.mxu0 %v5152_v62  ;;  %1457 = vmatprep.subr.bf16.mxu1 %v5155_v63  ;;  %6855 = vst [vmem:[#allocation53_spill] sm:$0xff] %v5164_v44  ;;  %6856 = vst [vmem:[#allocation56_spill] sm:$0xff] %v5167_v58  ;;  %v5170_v62 = vld [vmem:[#allocation13 + $0xe0] ss:$16 sps:$4 sm:$0xff]   ;;  %v5173_v63 = vld [vmem:[#allocation13 + $0xe8] ss:$16 sps:$4 sm:$0xff]  }
 0x422   :  { %6857 = vst [vmem:[#allocation55_spill] sm:$0xff] %v5170_v62  ;;  %6858 = vst [vmem:[#allocation57_spill] sm:$0xff] %v5173_v63 }
 0x424   :  { %1417 = vmatpush1.bf16.msra.mxu0 %v5158_v56  ;;  %1458 = vmatpush1.bf16.msra.mxu1 %v5161_v31  ;;  %v5176_v56 = vld [vmem:[#allocation10 + $0x4] ss:$16 sps:$4 sm:$0xff]   ;;  %v5179_v31 = vld [vmem:[#allocation10 + $0xc] ss:$16 sps:$4 sm:$0xff]  }
 0x425   :  { %1418 = vmatprep.subr.bf16.mxu0 %v5164_v44  ;;  %1459 = vmatprep.subr.bf16.mxu1 %v5167_v58  ;;  %6859 = vst [vmem:[#allocation58_spill] sm:$0xff] %v5176_v56  ;;  %6860 = vst [vmem:[#allocation59_spill] sm:$0xff] %v5179_v31 }
 0x428   :  { %1419 = vmatpush1.bf16.msra.mxu0 %v5170_v62  ;;  %1460 = vmatpush1.bf16.msra.mxu1 %v5173_v63 }
 0x429   :  { %1497 = vmatprep.subr.bf16.mxu0 %v5176_v56  ;;  %1538 = vmatprep.subr.bf16.mxu1 %v5179_v31 }
 0x4de   :  { %v1333_v44 = vpop.f32.mrb[20].mxu0  ;;  %v1374_v51 = vpop.f32.mrb[20].mxu1 }
 0x4df   :  { %v1334_v58 = vadd.f32 %v1333_v44, %v5064_v36  ;;  %v1375_v41 = vadd.f32 %v1374_v51, %v5066_v39  ;;  %v1335_v53 = vpop.f32.mrb[21].mxu0  ;;  %v1376_v62 = vpop.f32.mrb[21].mxu1  ;;  %v5194_v44 = vld [vmem:[#allocation10] ss:$16 sps:$4 sm:$0xff]  }
 0x4e0   :  { %v1336_v54 = vadd.f32 %v1335_v53, %v5068_v38  ;;  %v1377_v63 = vadd.f32 %v1376_v62, %v5070_v52  ;;  %v1337_v48 = vpop.f32.mrb[22].mxu0  ;;  %v1378_v43 = vpop.f32.mrb[22].mxu1 }
 0x4e1   :  { %v1381_v56 = vadd.f32 %v1334_v58, %v4965_v5  ;;  %v1338_v50 = vpop.f32.mrb[23].mxu0  ;;  %v1379_v1 = vpop.f32.mrb[23].mxu1  ;;  %v1383_v36 = vadd.f32 %v1375_v41, %v4978_v20 }
 0x4e2   :  { %v1382_v31 = vadd.f32 %v1336_v54, %v4969_v9  ;;  %v1384_v39 = vadd.f32 %v1377_v63, %v4984_v28 }
 0x4e3   :  { %v1385_v40 = vmul.f32 0.5, %v1381_v56 }
 0x4e4   :  { %v1389_v45 = vmul.f32 0.5, %v1382_v31  ;;  %v1394_v38 = vmul.f32 0.5, %v1384_v39  ;;  %v5203_v39 = vld [vmem:[#allocation10 + $0x2c] ss:$16 sps:$4 sm:$0xff]  }
 0x4e5   :  { %3729 = vtanh.f32 %v1385_v40 }
 0x4e6   :  { %3731 = vtanh.f32 %v1389_v45 }
 0x4e7   :  { %3733 = vtanh.f32 %v1383_v36  ;;  %v5197_v36 = vld [vmem:[#allocation10 + $0x8] ss:$16 sps:$4 sm:$0xff]  }
 0x4e8   :  { %3735 = vtanh.f32 %v1394_v38  ;;  %v5208_v38 = vld [vmem:[#allocation10 + $0x20] ss:$16 sps:$4 sm:$0xff]  }
 0x4ef   :  { %v3730_v53 = vpop.eup %3729 }
 0x4f0   :  { %v3732_v52 = vpop.eup %3731  ;;  %v1387_v48 = vmul.f32 0.5, %v3730_v53  ;;  %v5211_v53 = vld [vmem:[#allocation10 + $0x28] ss:$16 sps:$4 sm:$0xff]  }
 0x4f1   :  { %v1391_v43 = vmul.f32 0.5, %v3732_v52  ;;  %v3734_v50 = vpop.eup %3733  ;;  %v5214_v52 = vld [vmem:[#allocation10 + $0x44] ss:$16 sps:$4 sm:$0xff]  }
 0x4f2   :  { %v1388_v51 = vadd.f32 0.5, %v1387_v48  ;;  %v3736_v45 = vpop.eup %3735  ;;  %v5217_v48 = vld [vmem:[#allocation10 + $0x4c] ss:$16 sps:$4 sm:$0xff]  }
 0x4f3   :  { %v1392_v1 = vadd.f32 0.5, %v1391_v43  ;;  %v1396_v40 = vmul.f32 0.5, %v3736_v45  ;;  %v5220_v43 = vld [vmem:[#allocation10 + $0x40] ss:$16 sps:$4 sm:$0xff]   ;;  %v5238_v45 = vld [vmem:[#allocation10 + $0x84] ss:$16 sps:$4 sm:$0xff]  }
 0x4f4   :  { %v1399_v58 = vmul.f32 %v3734_v50, %v1388_v51  ;;  %v5223_v51 = vld [vmem:[#allocation10 + $0x48] ss:$16 sps:$4 sm:$0xff]   ;;  %v5226_v50 = vld [vmem:[#allocation10 + $0x64] ss:$16 sps:$4 sm:$0xff]  }
 0x4f5   :  { %v1398_v54 = vmul.f32 %v1392_v1, %v4987_v49  ;;  %v1397_v41 = vadd.f32 0.5, %v1396_v40  ;;  %v5200_v49 = vld [vmem:[#allocation10 + $0x24] ss:$16 sps:$4 sm:$0xff]   ;;  %v5229_v1 = vld [vmem:[#allocation10 + $0x6c] ss:$16 sps:$4 sm:$0xff]  }
 0x4f6   :  { %v5241_v40 = vld [vmem:[#allocation10 + $0x8c] ss:$16 sps:$4 sm:$0xff]  }
 0x4f7   :  { %v5191_v62 = vadd.f32 %v1399_v58, %v1398_v54  ;;  %v5232_v58 = vld [vmem:[#allocation10 + $0x60] ss:$16 sps:$4 sm:$0xff]   ;;  %v5235_v54 = vld [vmem:[#allocation10 + $0x68] ss:$16 sps:$4 sm:$0xff]  }
 0x4f9   :  { %3737 = vtanh.f32 %v5191_v62 }
 0x503   :  { %v3738_v63 = vpop.eup %3737 }
 0x504   :  { %v1402_v56 = vmul.f32 %v3738_v63, %v1397_v41  ;;  %v5244_v41 = vld [vmem:[#allocation10 + $0x80] ss:$16 sps:$4 sm:$0xff]   ;;  %v5248_v63 = vld [vmem:[#allocation10 + $0xa4] ss:$16 sps:$4 sm:$0xff]  }
 0x505   :  { %6861 = vst [vmem:[#allocation60_spill] sm:$0xff] %v5248_v63 }
 0x506   :  { %v1403_v31 = vpack.c.bf16 %v1402_v56, %v1402_v56 }
 0x508   :  { %1437 = vmatmul.mubr.bf16.vlgmr.msra.gmra.mrb[24].mxu0 %v1403_v31  ;;  %1478 = vmatmul.mubr.bf16.vlgmr.msra.gmra.mrb[24].mxu1 %v1403_v31 }
 0x509   :  { %1498 = vmatpush1.bf16.msra.mxu0 %v5194_v44  ;;  %1539 = vmatpush1.bf16.msra.mxu1 %v5197_v36 }
 0x50a   :  { %1499 = vmatprep.subr.bf16.mxu0 %v5200_v49  ;;  %1540 = vmatprep.subr.bf16.mxu1 %v5203_v39 }
 0x50b   :  { %1529 = vmatprep.mubr.bf16.mxu0 %v6731_v60  ;;  %1570 = vmatprep.mubr.bf16.mxu1 %v6731_v60 }
 0x50d   :  { %1500 = vmatpush1.bf16.msra.mxu0 %v5208_v38  ;;  %1541 = vmatpush1.bf16.msra.mxu1 %v5211_v53 }
 0x50e   :  { %1501 = vmatprep.subr.bf16.mxu0 %v5214_v52  ;;  %1542 = vmatprep.subr.bf16.mxu1 %v5217_v48 }
 0x511   :  { %1502 = vmatpush1.bf16.msra.mxu0 %v5220_v43  ;;  %1543 = vmatpush1.bf16.msra.mxu1 %v5223_v51 }
 0x512   :  { %1503 = vmatprep.subr.bf16.mxu0 %v5226_v50  ;;  %1544 = vmatprep.subr.bf16.mxu1 %v5229_v1 }
 0x515   :  { %1504 = vmatpush1.bf16.msra.mxu0 %v5232_v58  ;;  %1545 = vmatpush1.bf16.msra.mxu1 %v5235_v54 }
 0x516   :  { %1505 = vmatprep.subr.bf16.mxu0 %v5238_v45  ;;  %1546 = vmatprep.subr.bf16.mxu1 %v5241_v40 }
 0x519   :  { %1506 = vmatpush1.bf16.msra.mxu0 %v5244_v41  ;;  %1547 = vmatpush1.bf16.msra.mxu1 %v6785_v2  ;;  %v6862_v2 = vld [vmem:[#allocation75_spill] sm:$0xff] }
 0x51a   :  { %1507 = vmatprep.subr.bf16.mxu0 %v5248_v63  ;;  %1548 = vmatprep.subr.bf16.mxu1 %v6787_v6  ;;  %v6863_v6 = vld [vmem:[#allocation76_spill] sm:$0xff] }
 0x51d   :  { %1508 = vmatpush1.bf16.msra.mxu0 %v6788_v7  ;;  %1549 = vmatpush1.bf16.msra.mxu1 %v6789_v8  ;;  %v6864_v7 = vld [vmem:[#allocation77_spill] sm:$0xff]  ;;  %v6865_v8 = vld [vmem:[#allocation78_spill] sm:$0xff] }
 0x51e   :  { %1509 = vmatprep.subr.bf16.mxu0 %v6790_v10  ;;  %1550 = vmatprep.subr.bf16.mxu1 %v6791_v11  ;;  %v6866_v10 = vld [vmem:[#allocation79_spill] sm:$0xff]  ;;  %v6867_v11 = vld [vmem:[#allocation80_spill] sm:$0xff] }
 0x521   :  { %1510 = vmatpush1.bf16.msra.mxu0 %v6792_v12  ;;  %1551 = vmatpush1.bf16.msra.mxu1 %v6793_v13  ;;  %v6868_v12 = vld [vmem:[#allocation81_spill] sm:$0xff]  ;;  %v6869_v13 = vld [vmem:[#allocation82_spill] sm:$0xff] }
 0x522   :  { %1511 = vmatprep.subr.bf16.mxu0 %v6794_v14  ;;  %1552 = vmatprep.subr.bf16.mxu1 %v6795_v15  ;;  %v6870_v14 = vld [vmem:[#allocation83_spill] sm:$0xff]  ;;  %v6871_v15 = vld [vmem:[#allocation84_spill] sm:$0xff] }
 0x525   :  { %1512 = vmatpush1.bf16.msra.mxu0 %v6796_v16  ;;  %1553 = vmatpush1.bf16.msra.mxu1 %v6797_v17  ;;  %v6872_v16 = vld [vmem:[#allocation85_spill] sm:$0xff]  ;;  %v6873_v17 = vld [vmem:[#allocation86_spill] sm:$0xff] }
 0x526   :  { %1602 = vmatprep.subr.bf16.mxu0 %v6798_v18  ;;  %1643 = vmatprep.subr.bf16.mxu1 %v6799_v19  ;;  %v6874_v18 = vld [vmem:[#allocation87_spill] sm:$0xff]  ;;  %v6875_v19 = vld [vmem:[#allocation88_spill] sm:$0xff] }
 0x528   :  { %1530 = vmatmul.mubr.bf16.vlgmr.msra.gmra.mrb[28].mxu0 %v5080_v0  ;;  %1571 = vmatmul.mubr.bf16.vlgmr.msra.gmra.mrb[28].mxu1 %v5080_v0  ;;  %v6879_v0 = vld [vmem:[#allocation90_spill] sm:$0xff] }
 0x529   :  { %1603 = vmatpush1.bf16.msra.mxu0 %v6800_v21  ;;  %1644 = vmatpush1.bf16.msra.mxu1 %v6801_v22  ;;  %v6876_v21 = vld [vmem:[#allocation89_spill] sm:$0xff]  ;;  %v6877_v22 = vld [vmem:[#allocation32_spill] sm:$0xff] }
 0x52a   :  { %1604 = vmatprep.subr.bf16.mxu0 %v6802_v23  ;;  %1645 = vmatprep.subr.bf16.mxu1 %v6803_v24  ;;  %v6878_v23 = vld [vmem:[#allocation31_spill] sm:$0xff] }
 0x52b   :  { %1634 = vmatprep.mubr.bf16.mxu0 %v6731_v60  ;;  %1675 = vmatprep.mubr.bf16.mxu1 %v6731_v60 }
 0x52d   :  { %1605 = vmatpush1.bf16.msra.mxu0 %v6804_v25  ;;  %1646 = vmatpush1.bf16.msra.mxu1 %v6805_v26 }
 0x52e   :  { %1606 = vmatprep.subr.bf16.mxu0 %v6806_v27  ;;  %1647 = vmatprep.subr.bf16.mxu1 %v6807_v29 }
 0x531   :  { %1607 = vmatpush1.bf16.msra.mxu0 %v6808_v34  ;;  %1648 = vmatpush1.bf16.msra.mxu1 %v6809_v30 }
 0x532   :  { %1608 = vmatprep.subr.bf16.mxu0 %v6810_v32  ;;  %1649 = vmatprep.subr.bf16.mxu1 %v6811_v33  ;;  %v1487_v33 = vld [vmem:[#allocation2 + $0x20] sm:$0xff] }
 0x535   :  { %1609 = vmatpush1.bf16.msra.mxu0 %v6812_v35  ;;  %1650 = vmatpush1.bf16.msra.mxu1 %v6813_v37  ;;  %v1489_v35 = vunpack.c.l.bf16 %v1487_v33  ;;  %v1488_v37 = vld [vmem:[#allocation2 + $0x28] sm:$0xff] }
 0x536   :  { %1610 = vmatprep.subr.bf16.mxu0 %v6814_v47  ;;  %1651 = vmatprep.subr.bf16.mxu1 %v6862_v2  ;;  %v1490_v47 = vunpack.c.h.bf16 %v1487_v33  ;;  %v1491_v31 = vunpack.c.l.bf16 %v1488_v37 }
 0x537   :  { %v1493_v56 = vadd.f32 %v1489_v35, %v6879_v0 }
 0x538   :  { %v1494_v2 = vadd.f32 %v1490_v47, %v6833_v46 }
 0x539   :  { %1611 = vmatpush1.bf16.msra.mxu0 %v6863_v6  ;;  %1652 = vmatpush1.bf16.msra.mxu1 %v6864_v7 }
 0x53a   :  { %1612 = vmatprep.subr.bf16.mxu0 %v6865_v8  ;;  %1653 = vmatprep.subr.bf16.mxu1 %v6866_v10  ;;  %v6880_v10 = vld [vmem:[#allocation92_spill] sm:$0xff] }
 0x53d   :  { %1613 = vmatpush1.bf16.msra.mxu0 %v6867_v11  ;;  %1654 = vmatpush1.bf16.msra.mxu1 %v6868_v12  ;;  %v1495_v11 = vadd.f32 %v1491_v31, %v6880_v10 }
 0x53e   :  { %1614 = vmatprep.subr.bf16.mxu0 %v6869_v13  ;;  %1655 = vmatprep.subr.bf16.mxu1 %v6870_v14  ;;  %v1492_v13 = vunpack.c.h.bf16 %v1488_v37 }
 0x541   :  { %1615 = vmatpush1.bf16.msra.mxu0 %v6871_v15  ;;  %1656 = vmatpush1.bf16.msra.mxu1 %v6872_v16 }
 0x542   :  { %1616 = vmatprep.subr.bf16.mxu0 %v6873_v17  ;;  %1657 = vmatprep.subr.bf16.mxu1 %v6874_v18 }
 0x545   :  { %1617 = vmatpush1.bf16.msra.mxu0 %v6875_v19  ;;  %1658 = vmatpush1.bf16.msra.mxu1 %v6876_v21 }
 0x546   :  { %1707 = vmatprep.subr.bf16.mxu0 %v6877_v22  ;;  %1748 = vmatprep.subr.bf16.mxu1 %v6878_v23 }
 0x5db   :  { %v5300_v24 = vpop.f32.mrb[24].mxu0  ;;  %v5302_v25 = vpop.f32.mrb[24].mxu1 }
 0x5dc   :  { %v5304_v26 = vpop.f32.mrb[25].mxu0  ;;  %v5306_v27 = vpop.f32.mrb[25].mxu1 }
 0x5dd   :  { %v1442_v29 = vpop.f32.mrb[26].mxu0  ;;  %v1483_v34 = vpop.f32.mrb[26].mxu1 }
 0x5de   :  { %v1443_v30 = vpop.f32.mrb[27].mxu0  ;;  %v1484_v32 = vpop.f32.mrb[27].mxu1 }
 0x5df   :  { %v1496_v30 = vadd.f32 %v1492_v13, %v4919_v4 }
 0x5fb   :  { %v1531_v6 = vpop.f32.mrb[28].mxu0  ;;  %v1572_v7 = vpop.f32.mrb[28].mxu1 }
 0x5fc   :  { %v1579_v8 = vadd.f32 %v1531_v6, %v1493_v56  ;;  %v1533_v12 = vpop.f32.mrb[29].mxu0  ;;  %v1574_v14 = vpop.f32.mrb[29].mxu1  ;;  %v1581_v34 = vadd.f32 %v1572_v7, %v1495_v11 }
 0x5fd   :  { %v1580_v15 = vadd.f32 %v1533_v12, %v1494_v2  ;;  %v1535_v16 = vpop.f32.mrb[30].mxu0  ;;  %v1576_v17 = vpop.f32.mrb[30].mxu1  ;;  %v1582_v32 = vadd.f32 %v1574_v14, %v1496_v30  ;;  %v6887_v30 = vld [vmem:[#allocation41_spill] sm:$0xff] }
 0x5fe   :  { %v1583_v18 = vmul.f32 0.5, %v1579_v8  ;;  %v1536_v19 = vpop.f32.mrb[31].mxu0  ;;  %v1577_v21 = vpop.f32.mrb[31].mxu1 }
 0x5ff   :  { %v1587_v29 = vmul.f32 0.5, %v1580_v15  ;;  %v1592_v33 = vmul.f32 0.5, %v1582_v32  ;;  %v6883_v19 = vld [vmem:[#allocation36_spill] sm:$0xff]  ;;  %v6884_v21 = vld [vmem:[#allocation34_spill] sm:$0xff] }
 0x600   :  { %3739 = vtanh.f32 %v1583_v18  ;;  %v6882_v18 = vld [vmem:[#allocation33_spill] sm:$0xff]  ;;  %v6888_v32 = vld [vmem:[#allocation38_spill] sm:$0xff] }
 0x601   :  { %3741 = vtanh.f32 %v1587_v29  ;;  %v6885_v29 = vld [vmem:[#allocation39_spill] sm:$0xff] }
 0x602   :  { %3743 = vtanh.f32 %v1581_v34  ;;  %v6886_v34 = vld [vmem:[#allocation37_spill] sm:$0xff] }
 0x603   :  { %3745 = vtanh.f32 %v1592_v33  ;;  %v6889_v33 = vld [vmem:[#allocation42_spill] sm:$0xff] }
 0x60a   :  { %v3740_v35 = vpop.eup %3739 }
 0x60b   :  { %v3742_v47 = vpop.eup %3741  ;;  %v1585_v56 = vmul.f32 0.5, %v3740_v35  ;;  %v6890_v35 = vld [vmem:[#allocation40_spill] sm:$0xff] }
 0x60c   :  { %v1589_v37 = vmul.f32 0.5, %v3742_v47  ;;  %v3744_v2 = vpop.eup %3743  ;;  %v6891_v47 = vld [vmem:[#allocation44_spill] sm:$0xff] }
 0x60d   :  { %v1586_v31 = vadd.f32 0.5, %v1585_v56  ;;  %v3746_v7 = vpop.eup %3745  ;;  %v6892_v56 = vld [vmem:[#allocation43_spill] sm:$0xff] }
 0x60e   :  { %v1590_v6 = vadd.f32 0.5, %v1589_v37  ;;  %v1594_v11 = vmul.f32 0.5, %v3746_v7  ;;  %v6893_v37 = vld [vmem:[#allocation46_spill] sm:$0xff]  ;;  %v6899_v7 = vld [vmem:[#allocation52_spill] sm:$0xff] }
 0x60f   :  { %v1597_v8 = vmul.f32 %v3744_v2, %v1586_v31  ;;  %v6894_v31 = vld [vmem:[#allocation45_spill] sm:$0xff]  ;;  %v6895_v2 = vld [vmem:[#allocation48_spill] sm:$0xff] }
 0x610   :  { %v1596_v12 = vmul.f32 %v1590_v6, %v5077_v59  ;;  %v1595_v13 = vadd.f32 0.5, %v1594_v11  ;;  %v6881_v59 = vld [vmem:[#allocation35_spill] sm:$0xff] }
 0x611   :  { %v6896_v6 = vld [vmem:[#allocation47_spill] sm:$0xff] }
 0x612   :  { %v5313_v15 = vadd.f32 %v1597_v8, %v1596_v12  ;;  %v6897_v8 = vld [vmem:[#allocation50_spill] sm:$0xff]  ;;  %v6898_v12 = vld [vmem:[#allocation49_spill] sm:$0xff]  ;;  %v6900_v11 = vld [vmem:[#allocation51_spill] sm:$0xff] }
 0x614   :  { %3747 = vtanh.f32 %v5313_v15 }
 0x61e   :  { %v3748_v14 = vpop.eup %3747 }
 0x61f   :  { %v1600_v16 = vmul.f32 %v3748_v14, %v1595_v13  ;;  %v6901_v13 = vld [vmem:[#allocation54_spill] sm:$0xff]  ;;  %v6902_v14 = vld [vmem:[#allocation53_spill] sm:$0xff] }
 0x621   :  { %v5316_v17 = vpack.c.bf16 %v1600_v16, %v1600_v16  ;;  %v6903_v16 = vld [vmem:[#allocation56_spill] sm:$0xff] }
 0x623   :  { %1635 = vmatmul.mubr.bf16.vlgmr.msra.gmra.mrb[32].mxu0 %v5316_v17  ;;  %1676 = vmatmul.mubr.bf16.vlgmr.msra.gmra.mrb[32].mxu1 %v5316_v17 }
 0x624   :  { %1708 = vmatpush1.bf16.msra.mxu0 %v5084_v57  ;;  %1749 = vmatpush1.bf16.msra.mxu1 %v5087_v42 }
 0x625   :  { %1709 = vmatprep.subr.bf16.mxu0 %v5090_v61  ;;  %1750 = vmatprep.subr.bf16.mxu1 %v5093_v55 }
 0x626   :  { %1739 = vmatprep.mubr.bf16.mxu0 %v6731_v60  ;;  %1780 = vmatprep.mubr.bf16.mxu1 %v6731_v60 }
 0x628   :  { %1710 = vmatpush1.bf16.msra.mxu0 %v5098_v3  ;;  %1751 = vmatpush1.bf16.msra.mxu1 %v6881_v59 }
 0x629   :  { %1711 = vmatprep.subr.bf16.mxu0 %v6882_v18  ;;  %1752 = vmatprep.subr.bf16.mxu1 %v6883_v19 }
 0x62c   :  { %1712 = vmatpush1.bf16.msra.mxu0 %v6884_v21  ;;  %1753 = vmatpush1.bf16.msra.mxu1 %v6885_v29 }
 0x62d   :  { %1713 = vmatprep.subr.bf16.mxu0 %v6886_v34  ;;  %1754 = vmatprep.subr.bf16.mxu1 %v6887_v30 }
 0x630   :  { %1714 = vmatpush1.bf16.msra.mxu0 %v6888_v32  ;;  %1755 = vmatpush1.bf16.msra.mxu1 %v6889_v33 }
 0x631   :  { %1715 = vmatprep.subr.bf16.mxu0 %v6890_v35  ;;  %1756 = vmatprep.subr.bf16.mxu1 %v6891_v47 }
 0x634   :  { %1716 = vmatpush1.bf16.msra.mxu0 %v6892_v56  ;;  %1757 = vmatpush1.bf16.msra.mxu1 %v6893_v37  ;;  %v6904_v37 = vld [vmem:[#allocation55_spill] sm:$0xff] }
 0x635   :  { %1717 = vmatprep.subr.bf16.mxu0 %v6894_v31  ;;  %1758 = vmatprep.subr.bf16.mxu1 %v6895_v2  ;;  %v6905_v31 = vld [vmem:[#allocation57_spill] sm:$0xff]  ;;  %v6906_v2 = vld [vmem:[#allocation58_spill] sm:$0xff] }
 0x638   :  { %1718 = vmatpush1.bf16.msra.mxu0 %v6896_v6  ;;  %1759 = vmatpush1.bf16.msra.mxu1 %v6897_v8  ;;  %v6907_v6 = vld [vmem:[#allocation59_spill] sm:$0xff] }
 0x639   :  { %1719 = vmatprep.subr.bf16.mxu0 %v6898_v12  ;;  %1760 = vmatprep.subr.bf16.mxu1 %v6899_v7 }
 0x63c   :  { %1720 = vmatpush1.bf16.msra.mxu0 %v6900_v11  ;;  %1761 = vmatpush1.bf16.msra.mxu1 %v6901_v13 }
 0x63d   :  { %1721 = vmatprep.subr.bf16.mxu0 %v6902_v14  ;;  %1762 = vmatprep.subr.bf16.mxu1 %v6903_v16 }
 0x640   :  { %1722 = vmatpush1.bf16.msra.mxu0 %v6904_v37  ;;  %1763 = vmatpush1.bf16.msra.mxu1 %v6905_v31 }
 0x641   :  { %1800 = vmatprep.subr.bf16.mxu0 %v6906_v2  ;;  %1841 = vmatprep.subr.bf16.mxu1 %v6907_v6 }
 0x6f6   :  { %v1636_v8 = vpop.f32.mrb[32].mxu0  ;;  %v1677_v12 = vpop.f32.mrb[32].mxu1 }
 0x6f7   :  { %v1637_v7 = vadd.f32 %v1636_v8, %v5300_v24  ;;  %v1678_v11 = vadd.f32 %v1677_v12, %v5302_v25  ;;  %v1638_v56 = vpop.f32.mrb[33].mxu0  ;;  %v1679_v13 = vpop.f32.mrb[33].mxu1 }
 0x6f8   :  { %v1639_v14 = vadd.f32 %v1638_v56, %v5304_v26  ;;  %v1680_v16 = vadd.f32 %v1679_v13, %v5306_v27  ;;  %v1640_v47 = vpop.f32.mrb[34].mxu0  ;;  %v1681_v37 = vpop.f32.mrb[34].mxu1 }
 0x6f9   :  { %v1684_v31 = vadd.f32 %v1637_v7, %v4965_v5  ;;  %v1641_v35 = vpop.f32.mrb[35].mxu0  ;;  %v1682_v2 = vpop.f32.mrb[35].mxu1  ;;  %v1686_v24 = vadd.f32 %v1678_v11, %v4978_v20 }
 0x6fa   :  { %v1685_v6 = vadd.f32 %v1639_v14, %v4969_v9  ;;  %v1687_v25 = vadd.f32 %v1680_v16, %v4984_v28  ;;  %v5389_v16 = vld [vmem:[#allocation10 + $0xac] ss:$16 sps:$4 sm:$0xff]  }
 0x6fb   :  { %v1688_v33 = vmul.f32 0.5, %v1684_v31  ;;  %6909 = vst [vmem:[#allocation62_spill] sm:$0xff] %v5389_v16 }
 0x6fc   :  { %v1692_v32 = vmul.f32 0.5, %v1685_v6  ;;  %v1697_v26 = vmul.f32 0.5, %v1687_v25  ;;  %v5395_v25 = vld [vmem:[#allocation10 + $0xa8] ss:$16 sps:$4 sm:$0xff]  }
 0x6fd   :  { %3749 = vtanh.f32 %v1688_v33  ;;  %6911 = vst [vmem:[#allocation64_spill] sm:$0xff] %v5395_v25 }
 0x6fe   :  { %3751 = vtanh.f32 %v1692_v32 }
 0x6ff   :  { %3753 = vtanh.f32 %v1686_v24  ;;  %v5392_v24 = vld [vmem:[#allocation10 + $0xa0] ss:$16 sps:$4 sm:$0xff]  }
 0x700   :  { %3755 = vtanh.f32 %v1697_v26  ;;  %6910 = vst [vmem:[#allocation63_spill] sm:$0xff] %v5392_v24  ;;  %v5398_v26 = vld [vmem:[#allocation10 + $0xc4] ss:$16 sps:$4 sm:$0xff]  }
 0x701   :  { %6912 = vst [vmem:[#allocation65_spill] sm:$0xff] %v5398_v26 }
 0x707   :  { %v3750_v56 = vpop.eup %3749 }
 0x708   :  { %v3752_v27 = vpop.eup %3751  ;;  %v1690_v47 = vmul.f32 0.5, %v3750_v56  ;;  %v5401_v56 = vld [vmem:[#allocation10 + $0xcc] ss:$16 sps:$4 sm:$0xff]  }
 0x709   :  { %v1694_v37 = vmul.f32 0.5, %v3752_v27  ;;  %v3754_v35 = vpop.eup %3753  ;;  %6913 = vst [vmem:[#allocation66_spill] sm:$0xff] %v5401_v56  ;;  %v5404_v27 = vld [vmem:[#allocation10 + $0xc0] ss:$16 sps:$4 sm:$0xff]  }
 0x70a   :  { %v1691_v8 = vadd.f32 0.5, %v1690_v47  ;;  %v3756_v32 = vpop.eup %3755  ;;  %6914 = vst [vmem:[#allocation67_spill] sm:$0xff] %v5404_v27  ;;  %v5407_v47 = vld [vmem:[#allocation10 + $0xc8] ss:$16 sps:$4 sm:$0xff]  }
 0x70b   :  { %v1695_v2 = vadd.f32 0.5, %v1694_v37  ;;  %v1699_v33 = vmul.f32 0.5, %v3756_v32  ;;  %6915 = vst [vmem:[#allocation68_spill] sm:$0xff] %v5407_v47  ;;  %v5410_v37 = vld [vmem:[#allocation10 + $0xe4] ss:$16 sps:$4 sm:$0xff]  }
 0x70c   :  { %v1702_v12 = vmul.f32 %v3754_v35, %v1691_v8  ;;  %6916 = vst [vmem:[#allocation69_spill] sm:$0xff] %v5410_v37  ;;  %v5413_v8 = vld [vmem:[#allocation10 + $0xec] ss:$16 sps:$4 sm:$0xff]   ;;  %v5416_v35 = vld [vmem:[#allocation10 + $0xe0] ss:$16 sps:$4 sm:$0xff]  }
 0x70d   :  { %v1701_v31 = vmul.f32 %v1695_v2, %v5191_v62  ;;  %v1700_v7 = vadd.f32 0.5, %v1699_v33  ;;  %v5385_v62 = vld [vmem:[#allocation10 + $0x88] ss:$16 sps:$4 sm:$0xff]   ;;  %6917 = vst [vmem:[#allocation70_spill] sm:$0xff] %v5413_v8  ;;  %6918 = vst [vmem:[#allocation71_spill] sm:$0xff] %v5416_v35 }
 0x70e   :  { %6908 = vst [vmem:[#allocation61_spill] sm:$0xff] %v5385_v62  ;;  %v5419_v2 = vld [vmem:[#allocation10 + $0xe8] ss:$16 sps:$4 sm:$0xff]   ;;  %v5430_v32 = vld [vmem:[#allocation11] ss:$16 sps:$4 sm:$0xff]  }
 0x70f   :  { %v5363_v6 = vadd.f32 %v1702_v12, %v1701_v31  ;;  %6919 = vst [vmem:[#allocation72_spill] sm:$0xff] %v5419_v2  ;;  %v5422_v12 = vld [vmem:[#allocation11 + $0x4] ss:$16 sps:$4 sm:$0xff]   ;;  %v5425_v31 = vld [vmem:[#allocation11 + $0xc] ss:$16 sps:$4 sm:$0xff]   ;;  %6922 = vst [vmem:[#allocation91_spill] sm:$0xff] %v5430_v32 }
 0x710   :  { %6920 = vst [vmem:[#allocation73_spill] sm:$0xff] %v5422_v12  ;;  %6921 = vst [vmem:[#allocation74_spill] sm:$0xff] %v5425_v31  ;;  %v5433_v33 = vld [vmem:[#allocation11 + $0x8] ss:$16 sps:$4 sm:$0xff]  }
 0x711   :  { %3757 = vtanh.f32 %v5363_v6  ;;  %6923 = vst [vmem:[#allocation75_spill] sm:$0xff] %v5433_v33 }
 0x71b   :  { %v3758_v11 = vpop.eup %3757 }
 0x71c   :  { %v1705_v13 = vmul.f32 %v3758_v11, %v1700_v7  ;;  %v5436_v7 = vld [vmem:[#allocation11 + $0x24] ss:$16 sps:$4 sm:$0xff]   ;;  %v5439_v11 = vld [vmem:[#allocation11 + $0x2c] ss:$16 sps:$4 sm:$0xff]  }
 0x71d   :  { %6924 = vst [vmem:[#allocation76_spill] sm:$0xff] %v5436_v7  ;;  %6925 = vst [vmem:[#allocation77_spill] sm:$0xff] %v5439_v11 }
 0x71e   :  { %v1706_v14 = vpack.c.bf16 %v1705_v13, %v1705_v13  ;;  %v5447_v13 = vld [vmem:[#allocation11 + $0x28] ss:$16 sps:$4 sm:$0xff]  }
 0x71f   :  { %6927 = vst [vmem:[#allocation79_spill] sm:$0xff] %v5447_v13 }
 0x720   :  { %1740 = vmatmul.mubr.bf16.vlgmr.msra.gmra.mrb[36].mxu0 %v1706_v14  ;;  %1781 = vmatmul.mubr.bf16.vlgmr.msra.gmra.mrb[36].mxu1 %v1706_v14  ;;  %v5450_v14 = vld [vmem:[#allocation11 + $0x44] ss:$16 sps:$4 sm:$0xff]  }
 0x721   :  { %1801 = vmatpush1.bf16.msra.mxu0 %v5194_v44  ;;  %1842 = vmatpush1.bf16.msra.mxu1 %v5197_v36  ;;  %6928 = vst [vmem:[#allocation80_spill] sm:$0xff] %v5450_v14 }
 0x722   :  { %1802 = vmatprep.subr.bf16.mxu0 %v5200_v49  ;;  %1843 = vmatprep.subr.bf16.mxu1 %v5203_v39 }
 0x723   :  { %1832 = vmatprep.mubr.bf16.mxu0 %v6731_v60  ;;  %1873 = vmatprep.mubr.bf16.mxu1 %v6731_v60 }
 0x725   :  { %1803 = vmatpush1.bf16.msra.mxu0 %v5208_v38  ;;  %1844 = vmatpush1.bf16.msra.mxu1 %v5211_v53 }
 0x726   :  { %1804 = vmatprep.subr.bf16.mxu0 %v5214_v52  ;;  %1845 = vmatprep.subr.bf16.mxu1 %v5217_v48 }
 0x729   :  { %1805 = vmatpush1.bf16.msra.mxu0 %v5220_v43  ;;  %1846 = vmatpush1.bf16.msra.mxu1 %v5223_v51 }
 0x72a   :  { %1806 = vmatprep.subr.bf16.mxu0 %v5226_v50  ;;  %1847 = vmatprep.subr.bf16.mxu1 %v5229_v1 }
 0x72d   :  { %1807 = vmatpush1.bf16.msra.mxu0 %v5232_v58  ;;  %1848 = vmatpush1.bf16.msra.mxu1 %v5235_v54 }
 0x72e   :  { %1808 = vmatprep.subr.bf16.mxu0 %v5238_v45  ;;  %1849 = vmatprep.subr.bf16.mxu1 %v5241_v40 }
 0x731   :  { %1809 = vmatpush1.bf16.msra.mxu0 %v5244_v41  ;;  %1850 = vmatpush1.bf16.msra.mxu1 %v5385_v62 }
 0x732   :  { %1810 = vmatprep.subr.bf16.mxu0 %v5248_v63  ;;  %1851 = vmatprep.subr.bf16.mxu1 %v5389_v16 }
 0x735   :  { %1811 = vmatpush1.bf16.msra.mxu0 %v5392_v24  ;;  %1852 = vmatpush1.bf16.msra.mxu1 %v5395_v25 }
 0x736   :  { %1812 = vmatprep.subr.bf16.mxu0 %v5398_v26  ;;  %1853 = vmatprep.subr.bf16.mxu1 %v5401_v56 }
 0x739   :  { %1813 = vmatpush1.bf16.msra.mxu0 %v5404_v27  ;;  %1854 = vmatpush1.bf16.msra.mxu1 %v5407_v47 }
 0x73a   :  { %1814 = vmatprep.subr.bf16.mxu0 %v5410_v37  ;;  %1855 = vmatprep.subr.bf16.mxu1 %v5413_v8  ;;  %v1791_v8 = vld [vmem:[#allocation2 + $0x38] sm:$0xff] }
 0x73b   :  { %v1794_v37 = vunpack.c.l.bf16 %v1791_v8  ;;  %v1795_v24 = vunpack.c.h.bf16 %v1791_v8 }
 0x73d   :  { %1815 = vmatpush1.bf16.msra.mxu0 %v5416_v35  ;;  %1856 = vmatpush1.bf16.msra.mxu1 %v5419_v2  ;;  %v1790_v2 = vld [vmem:[#allocation2 + $0x30] sm:$0xff]  ;;  %v1798_v26 = vadd.f32 %v1794_v37, %v6880_v10 }
 0x73e   :  { %1905 = vmatprep.subr.bf16.mxu0 %v5422_v12  ;;  %1946 = vmatprep.subr.bf16.mxu1 %v5425_v31  ;;  %v1792_v35 = vunpack.c.l.bf16 %v1790_v2 }
 0x740   :  { %1833 = vmatmul.mubr.bf16.vlgmr.msra.gmra.mrb[40].mxu0 %v5316_v17  ;;  %1874 = vmatmul.mubr.bf16.vlgmr.msra.gmra.mrb[40].mxu1 %v5316_v17  ;;  %v5444_v17 = vld [vmem:[#allocation11 + $0x20] ss:$16 sps:$4 sm:$0xff]  }
 0x741   :  { %1906 = vmatpush1.bf16.msra.mxu0 %v5430_v32  ;;  %1947 = vmatpush1.bf16.msra.mxu1 %v5433_v33  ;;  %6926 = vst [vmem:[#allocation78_spill] sm:$0xff] %v5444_v17  ;;  %v5459_v33 = vld [vmem:[#allocation11 + $0x48] ss:$16 sps:$4 sm:$0xff]  }
 0x742   :  { %1907 = vmatprep.subr.bf16.mxu0 %v5436_v7  ;;  %1948 = vmatprep.subr.bf16.mxu1 %v5439_v11  ;;  %v5453_v7 = vld [vmem:[#allocation11 + $0x4c] ss:$16 sps:$4 sm:$0xff]   ;;  %v5456_v11 = vld [vmem:[#allocation11 + $0x40] ss:$16 sps:$4 sm:$0xff]   ;;  %6931 = vst [vmem:[#allocation83_spill] sm:$0xff] %v5459_v33 }
 0x743   :  { %1937 = vmatprep.mubr.bf16.mxu0 %v6731_v60  ;;  %1978 = vmatprep.mubr.bf16.mxu1 %v6731_v60  ;;  %6929 = vst [vmem:[#allocation81_spill] sm:$0xff] %v5453_v7  ;;  %6930 = vst [vmem:[#allocation82_spill] sm:$0xff] %v5456_v11 }
 0x745   :  { %1908 = vmatpush1.bf16.msra.mxu0 %v5444_v17  ;;  %1949 = vmatpush1.bf16.msra.mxu1 %v5447_v13  ;;  %v5462_v17 = vld [vmem:[#allocation11 + $0x64] ss:$16 sps:$4 sm:$0xff]   ;;  %v5465_v13 = vld [vmem:[#allocation11 + $0x6c] ss:$16 sps:$4 sm:$0xff]  }
 0x746   :  { %1909 = vmatprep.subr.bf16.mxu0 %v5450_v14  ;;  %1950 = vmatprep.subr.bf16.mxu1 %v5453_v7  ;;  %6932 = vst [vmem:[#allocation84_spill] sm:$0xff] %v5462_v17  ;;  %6933 = vst [vmem:[#allocation85_spill] sm:$0xff] %v5465_v13  ;;  %v5468_v14 = vld [vmem:[#allocation11 + $0x60] ss:$16 sps:$4 sm:$0xff]   ;;  %v5471_v7 = vld [vmem:[#allocation11 + $0x68] ss:$16 sps:$4 sm:$0xff]  }
 0x747   :  { %6934 = vst [vmem:[#allocation86_spill] sm:$0xff] %v5468_v14  ;;  %6935 = vst [vmem:[#allocation87_spill] sm:$0xff] %v5471_v7 }
 0x749   :  { %1910 = vmatpush1.bf16.msra.mxu0 %v5456_v11  ;;  %1951 = vmatpush1.bf16.msra.mxu1 %v5459_v33  ;;  %v5474_v11 = vld [vmem:[#allocation11 + $0x84] ss:$16 sps:$4 sm:$0xff]   ;;  %v5477_v33 = vld [vmem:[#allocation11 + $0x8c] ss:$16 sps:$4 sm:$0xff]  }
 0x74a   :  { %1911 = vmatprep.subr.bf16.mxu0 %v5462_v17  ;;  %1952 = vmatprep.subr.bf16.mxu1 %v5465_v13  ;;  %6936 = vst [vmem:[#allocation88_spill] sm:$0xff] %v5474_v11  ;;  %6937 = vst [vmem:[#allocation89_spill] sm:$0xff] %v5477_v33  ;;  %v5480_v17 = vld [vmem:[#allocation11 + $0x80] ss:$16 sps:$4 sm:$0xff]   ;;  %v5483_v13 = vld [vmem:[#allocation11 + $0x88] ss:$16 sps:$4 sm:$0xff]  }
 0x74b   :  { %6938 = vst [vmem:[#allocation32_spill] sm:$0xff] %v5480_v17  ;;  %6939 = vst [vmem:[#allocation31_spill] sm:$0xff] %v5483_v13 }
 0x74d   :  { %1912 = vmatpush1.bf16.msra.mxu0 %v5468_v14  ;;  %1953 = vmatpush1.bf16.msra.mxu1 %v5471_v7  ;;  %v5486_v14 = vld [vmem:[#allocation11 + $0xa4] ss:$16 sps:$4 sm:$0xff]   ;;  %v5489_v7 = vld [vmem:[#allocation11 + $0xac] ss:$16 sps:$4 sm:$0xff]  }
 0x74e   :  { %1913 = vmatprep.subr.bf16.mxu0 %v5474_v11  ;;  %1954 = vmatprep.subr.bf16.mxu1 %v5477_v33  ;;  %6940 = vst [vmem:[#allocation35_spill] sm:$0xff] %v5486_v14  ;;  %6941 = vst [vmem:[#allocation33_spill] sm:$0xff] %v5489_v7  ;;  %v5492_v11 = vld [vmem:[#allocation11 + $0xa0] ss:$16 sps:$4 sm:$0xff]   ;;  %v5495_v33 = vld [vmem:[#allocation11 + $0xa8] ss:$16 sps:$4 sm:$0xff]  }
 0x74f   :  { %6942 = vst [vmem:[#allocation36_spill] sm:$0xff] %v5492_v11  ;;  %6943 = vst [vmem:[#allocation34_spill] sm:$0xff] %v5495_v33 }
 0x751   :  { %1914 = vmatpush1.bf16.msra.mxu0 %v5480_v17  ;;  %1955 = vmatpush1.bf16.msra.mxu1 %v5483_v13  ;;  %v5498_v17 = vld [vmem:[#allocation11 + $0xc4] ss:$16 sps:$4 sm:$0xff]   ;;  %v5501_v13 = vld [vmem:[#allocation11 + $0xcc] ss:$16 sps:$4 sm:$0xff]  }
 0x752   :  { %1915 = vmatprep.subr.bf16.mxu0 %v5486_v14  ;;  %1956 = vmatprep.subr.bf16.mxu1 %v5489_v7  ;;  %6944 = vst [vmem:[#allocation39_spill] sm:$0xff] %v5498_v17  ;;  %6945 = vst [vmem:[#allocation37_spill] sm:$0xff] %v5501_v13  ;;  %v5504_v14 = vld [vmem:[#allocation11 + $0xc0] ss:$16 sps:$4 sm:$0xff]   ;;  %v5507_v7 = vld [vmem:[#allocation11 + $0xc8] ss:$16 sps:$4 sm:$0xff]  }
 0x753   :  { %6946 = vst [vmem:[#allocation41_spill] sm:$0xff] %v5504_v14  ;;  %6947 = vst [vmem:[#allocation93_spill] sm:$0xff] %v5507_v7 }
 0x755   :  { %1916 = vmatpush1.bf16.msra.mxu0 %v5492_v11  ;;  %1957 = vmatpush1.bf16.msra.mxu1 %v5495_v33  ;;  %v5510_v11 = vld [vmem:[#allocation11 + $0xe4] ss:$16 sps:$4 sm:$0xff]   ;;  %v5513_v33 = vld [vmem:[#allocation11 + $0xec] ss:$16 sps:$4 sm:$0xff]  }
 0x756   :  { %1917 = vmatprep.subr.bf16.mxu0 %v5498_v17  ;;  %1958 = vmatprep.subr.bf16.mxu1 %v5501_v13  ;;  %6948 = vst [vmem:[#allocation94_spill] sm:$0xff] %v5510_v11  ;;  %6949 = vst [vmem:[#allocation95_spill] sm:$0xff] %v5513_v33  ;;  %v5516_v17 = vld [vmem:[#allocation11 + $0xe0] ss:$16 sps:$4 sm:$0xff]   ;;  %v5519_v13 = vld [vmem:[#allocation11 + $0xe8] ss:$16 sps:$4 sm:$0xff]  }
 0x757   :  { %6950 = vst [vmem:[#allocation96_spill] sm:$0xff] %v5516_v17  ;;  %6951 = vst [vmem:[#allocation97_spill] sm:$0xff] %v5519_v13 }
 0x759   :  { %1918 = vmatpush1.bf16.msra.mxu0 %v5504_v14  ;;  %1959 = vmatpush1.bf16.msra.mxu1 %v5507_v7 }
 0x75a   :  { %1919 = vmatprep.subr.bf16.mxu0 %v5510_v11  ;;  %1960 = vmatprep.subr.bf16.mxu1 %v5513_v33 }
 0x75d   :  { %1920 = vmatpush1.bf16.msra.mxu0 %v5516_v17  ;;  %1961 = vmatpush1.bf16.msra.mxu1 %v5519_v13  ;;  %v1793_v13 = vunpack.c.h.bf16 %v1790_v2 }
 0x75e   :  { %2010 = vmatprep.subr.bf16.mxu0 %v6877_v22  ;;  %2051 = vmatprep.subr.bf16.mxu1 %v6878_v23  ;;  %v1796_v22 = vadd.f32 %v1792_v35, %v6879_v0  ;;  %v1799_v0 = vadd.f32 %v1795_v24, %v4919_v4 }
 0x75f   :  { %v1797_v23 = vadd.f32 %v1793_v13, %v6833_v46 }
 0x7f3   :  { %v5524_v7 = vpop.f32.mrb[36].mxu0  ;;  %v5526_v14 = vpop.f32.mrb[36].mxu1 }
 0x7f4   :  { %v5528_v11 = vpop.f32.mrb[37].mxu0  ;;  %v5530_v32 = vpop.f32.mrb[37].mxu1 }
 0x7f5   :  { %v1745_v33 = vpop.f32.mrb[38].mxu0  ;;  %v1786_v31 = vpop.f32.mrb[38].mxu1 }
 0x7f6   :  { %v1746_v12 = vpop.f32.mrb[39].mxu0  ;;  %v1787_v17 = vpop.f32.mrb[39].mxu1 }
 0x813   :  { %v1834_v47 = vpop.f32.mrb[40].mxu0  ;;  %v1875_v27 = vpop.f32.mrb[40].mxu1 }
 0x814   :  { %v1882_v56 = vadd.f32 %v1834_v47, %v1796_v22  ;;  %v1836_v25 = vpop.f32.mrb[41].mxu0  ;;  %v1877_v33 = vpop.f32.mrb[41].mxu1  ;;  %v1884_v35 = vadd.f32 %v1875_v27, %v1798_v26 }
 0x815   :  { %v1883_v31 = vadd.f32 %v1836_v25, %v1797_v23  ;;  %v1838_v12 = vpop.f32.mrb[42].mxu0  ;;  %v1879_v17 = vpop.f32.mrb[42].mxu1  ;;  %v1885_v13 = vadd.f32 %v1877_v33, %v1799_v0 }
 0x816   :  { %v1886_v16 = vmul.f32 0.5, %v1882_v56  ;;  %v1839_v63 = vpop.f32.mrb[43].mxu0  ;;  %v1880_v62 = vpop.f32.mrb[43].mxu1  ;;  %v6967_v17 = vld [vmem:[#allocation56_spill] sm:$0xff] }
 0x817   :  { %v1890_v2 = vmul.f32 0.5, %v1883_v31  ;;  %v1895_v47 = vmul.f32 0.5, %v1885_v13  ;;  %v6966_v31 = vld [vmem:[#allocation53_spill] sm:$0xff]  ;;  %v6970_v13 = vld [vmem:[#allocation58_spill] sm:$0xff] }
 0x818   :  { %3759 = vtanh.f32 %v1886_v16 }
 0x819   :  { %3761 = vtanh.f32 %v1890_v2  ;;  %v6968_v2 = vld [vmem:[#allocation55_spill] sm:$0xff] }
 0x81a   :  { %3763 = vtanh.f32 %v1884_v35  ;;  %v6969_v35 = vld [vmem:[#allocation57_spill] sm:$0xff] }
 0x81b   :  { %3765 = vtanh.f32 %v1895_v47  ;;  %v6971_v47 = vld [vmem:[#allocation59_spill] sm:$0xff] }
 0x822   :  { %v3760_v22 = vpop.eup %3759 }
 0x823   :  { %v3762_v37 = vpop.eup %3761  ;;  %v1888_v10 = vmul.f32 0.5, %v3760_v22 }
 0x824   :  { %v1892_v8 = vmul.f32 0.5, %v3762_v37  ;;  %v3764_v23 = vpop.eup %3763 }
 0x825   :  { %v1889_v25 = vadd.f32 0.5, %v1888_v10  ;;  %v3766_v16 = vpop.eup %3765  ;;  %v6957_v10 = vld [vmem:[#allocation46_spill] sm:$0xff] }
 0x826   :  { %v1893_v12 = vadd.f32 0.5, %v1892_v8  ;;  %v1897_v24 = vmul.f32 0.5, %v3766_v16 }
 0x827   :  { %v1900_v56 = vmul.f32 %v3764_v23, %v1889_v25 }
 0x828   :  { %v1899_v63 = vmul.f32 %v1893_v12, %v5313_v15  ;;  %v1898_v26 = vadd.f32 0.5, %v1897_v24  ;;  %v6958_v15 = vld [vmem:[#allocation45_spill] sm:$0xff] }
 0x82a   :  { %v5537_v62 = vadd.f32 %v1900_v56, %v1899_v63 }
 0x82c   :  { %3767 = vtanh.f32 %v5537_v62 }
 0x836   :  { %v3768_v0 = vpop.eup %3767 }
 0x837   :  { %v1903_v27 = vmul.f32 %v3768_v0, %v1898_v26 }
 0x839   :  { %v5540_v33 = vpack.c.bf16 %v1903_v27, %v1903_v27 }
 0x83b   :  { %1938 = vmatmul.mubr.bf16.vlgmr.msra.gmra.mrb[44].mxu0 %v5540_v33  ;;  %1979 = vmatmul.mubr.bf16.vlgmr.msra.gmra.mrb[44].mxu1 %v5540_v33 }
 0x83c   :  { %2011 = vmatpush1.bf16.msra.mxu0 %v5084_v57  ;;  %2052 = vmatpush1.bf16.msra.mxu1 %v5087_v42  ;;  %v6952_v57 = vld [vmem:[#allocation38_spill] sm:$0xff] }
 0x83d   :  { %2012 = vmatprep.subr.bf16.mxu0 %v5090_v61  ;;  %2053 = vmatprep.subr.bf16.mxu1 %v5093_v55  ;;  %v6953_v42 = vld [vmem:[#allocation42_spill] sm:$0xff]  ;;  %v6954_v61 = vld [vmem:[#allocation40_spill] sm:$0xff] }
 0x83e   :  { %2042 = vmatprep.mubr.bf16.mxu0 %v6731_v60  ;;  %2083 = vmatprep.mubr.bf16.mxu1 %v6731_v60  ;;  %v6955_v55 = vld [vmem:[#allocation44_spill] sm:$0xff] }
 0x840   :  { %2013 = vmatpush1.bf16.msra.mxu0 %v5098_v3  ;;  %2054 = vmatpush1.bf16.msra.mxu1 %v6881_v59  ;;  %v6956_v3 = vld [vmem:[#allocation43_spill] sm:$0xff]  ;;  %v6959_v59 = vld [vmem:[#allocation48_spill] sm:$0xff] }
 0x841   :  { %2014 = vmatprep.subr.bf16.mxu0 %v6882_v18  ;;  %2055 = vmatprep.subr.bf16.mxu1 %v6883_v19  ;;  %v6960_v18 = vld [vmem:[#allocation47_spill] sm:$0xff]  ;;  %v6961_v19 = vld [vmem:[#allocation50_spill] sm:$0xff] }
 0x844   :  { %2015 = vmatpush1.bf16.msra.mxu0 %v6884_v21  ;;  %2056 = vmatpush1.bf16.msra.mxu1 %v6885_v29  ;;  %v6962_v21 = vld [vmem:[#allocation49_spill] sm:$0xff]  ;;  %v6963_v29 = vld [vmem:[#allocation52_spill] sm:$0xff] }
 0x845   :  { %2016 = vmatprep.subr.bf16.mxu0 %v6886_v34  ;;  %2057 = vmatprep.subr.bf16.mxu1 %v6887_v30  ;;  %v6964_v34 = vld [vmem:[#allocation51_spill] sm:$0xff]  ;;  %v6965_v30 = vld [vmem:[#allocation54_spill] sm:$0xff] }
 0x848   :  { %2017 = vmatpush1.bf16.msra.mxu0 %v6952_v57  ;;  %2058 = vmatpush1.bf16.msra.mxu1 %v6953_v42 }
 0x849   :  { %2018 = vmatprep.subr.bf16.mxu0 %v6954_v61  ;;  %2059 = vmatprep.subr.bf16.mxu1 %v6955_v55 }
 0x84c   :  { %2019 = vmatpush1.bf16.msra.mxu0 %v6956_v3  ;;  %2060 = vmatpush1.bf16.msra.mxu1 %v6957_v10 }
 0x84d   :  { %2020 = vmatprep.subr.bf16.mxu0 %v6958_v15  ;;  %2061 = vmatprep.subr.bf16.mxu1 %v6959_v59 }
 0x850   :  { %2021 = vmatpush1.bf16.msra.mxu0 %v6960_v18  ;;  %2062 = vmatpush1.bf16.msra.mxu1 %v6961_v19 }
 0x851   :  { %2022 = vmatprep.subr.bf16.mxu0 %v6962_v21  ;;  %2063 = vmatprep.subr.bf16.mxu1 %v6963_v29 }
 0x854   :  { %2023 = vmatpush1.bf16.msra.mxu0 %v6964_v34  ;;  %2064 = vmatpush1.bf16.msra.mxu1 %v6965_v30 }
 0x855   :  { %2024 = vmatprep.subr.bf16.mxu0 %v6966_v31  ;;  %2065 = vmatprep.subr.bf16.mxu1 %v6967_v17 }
 0x858   :  { %2025 = vmatpush1.bf16.msra.mxu0 %v6968_v2  ;;  %2066 = vmatpush1.bf16.msra.mxu1 %v6969_v35 }
 0x859   :  { %2103 = vmatprep.subr.bf16.mxu0 %v6970_v13  ;;  %2144 = vmatprep.subr.bf16.mxu1 %v6971_v47  ;;  %v6990_v13 = vld [vmem:[#allocation77_spill] sm:$0xff]  ;;  %v6991_v47 = vld [vmem:[#allocation78_spill] sm:$0xff] }
 0x90e   :  { %v1939_v22 = vpop.f32.mrb[44].mxu0  ;;  %v1980_v37 = vpop.f32.mrb[44].mxu1 }
 0x90f   :  { %v1940_v8 = vadd.f32 %v1939_v22, %v5524_v7  ;;  %v1981_v25 = vadd.f32 %v1980_v37, %v5526_v14  ;;  %v1941_v23 = vpop.f32.mrb[45].mxu0  ;;  %v1982_v12 = vpop.f32.mrb[45].mxu1  ;;  %v6992_v22 = vld [vmem:[#allocation79_spill] sm:$0xff]  ;;  %v6993_v37 = vld [vmem:[#allocation80_spill] sm:$0xff] }
 0x910   :  { %v1942_v56 = vadd.f32 %v1941_v23, %v5528_v11  ;;  %v1983_v63 = vadd.f32 %v1982_v12, %v5530_v32  ;;  %v1943_v16 = vpop.f32.mrb[46].mxu0  ;;  %v1984_v24 = vpop.f32.mrb[46].mxu1  ;;  %v6997_v23 = vld [vmem:[#allocation84_spill] sm:$0xff]  ;;  %v6998_v12 = vld [vmem:[#allocation85_spill] sm:$0xff] }
 0x911   :  { %v1987_v26 = vadd.f32 %v1940_v8, %v4965_v5  ;;  %v1944_v0 = vpop.f32.mrb[47].mxu0  ;;  %v1985_v27 = vpop.f32.mrb[47].mxu1  ;;  %v1989_v7 = vadd.f32 %v1981_v25, %v4978_v20  ;;  %v6994_v8 = vld [vmem:[#allocation81_spill] sm:$0xff]  ;;  %v6996_v25 = vld [vmem:[#allocation83_spill] sm:$0xff]  ;;  %v7001_v16 = vld [vmem:[#allocation88_spill] sm:$0xff] }
 0x912   :  { %v1988_v57 = vadd.f32 %v1942_v56, %v4969_v9  ;;  %v1990_v14 = vadd.f32 %v1983_v63, %v4984_v28  ;;  %v6999_v56 = vld [vmem:[#allocation86_spill] sm:$0xff]  ;;  %v7000_v63 = vld [vmem:[#allocation87_spill] sm:$0xff]  ;;  %v7002_v24 = vld [vmem:[#allocation89_spill] sm:$0xff] }
 0x913   :  { %v1991_v42 = vmul.f32 0.5, %v1987_v26  ;;  %v7003_v26 = vld [vmem:[#allocation32_spill] sm:$0xff]  ;;  %v7004_v0 = vld [vmem:[#allocation31_spill] sm:$0xff] }
 0x914   :  { %v1995_v61 = vmul.f32 0.5, %v1988_v57  ;;  %v2000_v11 = vmul.f32 0.5, %v1990_v14  ;;  %v7005_v27 = vld [vmem:[#allocation35_spill] sm:$0xff]  ;;  %v7006_v57 = vld [vmem:[#allocation33_spill] sm:$0xff] }
 0x915   :  { %3769 = vtanh.f32 %v1991_v42  ;;  %v7007_v42 = vld [vmem:[#allocation36_spill] sm:$0xff]  ;;  %v7010_v14 = vld [vmem:[#allocation37_spill] sm:$0xff] }
 0x916   :  { %3771 = vtanh.f32 %v1995_v61  ;;  %v7008_v61 = vld [vmem:[#allocation34_spill] sm:$0xff] }
 0x917   :  { %3773 = vtanh.f32 %v1989_v7  ;;  %v7009_v7 = vld [vmem:[#allocation39_spill] sm:$0xff] }
 0x918   :  { %3775 = vtanh.f32 %v2000_v11  ;;  %v7011_v11 = vld [vmem:[#allocation41_spill] sm:$0xff] }
 0x91f   :  { %v3770_v55 = vpop.eup %3769 }
 0x920   :  { %v3772_v32 = vpop.eup %3771  ;;  %v1993_v3 = vmul.f32 0.5, %v3770_v55  ;;  %v7012_v55 = vld [vmem:[#allocation93_spill] sm:$0xff] }
 0x921   :  { %v1997_v10 = vmul.f32 0.5, %v3772_v32  ;;  %v3774_v59 = vpop.eup %3773  ;;  %v7013_v32 = vld [vmem:[#allocation94_spill] sm:$0xff] }
 0x922   :  { %v1994_v15 = vadd.f32 0.5, %v1993_v3  ;;  %v3776_v34 = vpop.eup %3775  ;;  %v7014_v3 = vld [vmem:[#allocation95_spill] sm:$0xff] }
 0x923   :  { %v1998_v18 = vadd.f32 0.5, %v1997_v10  ;;  %v2002_v30 = vmul.f32 0.5, %v3776_v34  ;;  %v7015_v10 = vld [vmem:[#allocation96_spill] sm:$0xff] }
 0x924   :  { %v2005_v19 = vmul.f32 %v3774_v59, %v1994_v15  ;;  %v7016_v15 = vld [vmem:[#allocation97_spill] sm:$0xff] }
 0x925   :  { %v2004_v21 = vmul.f32 %v1998_v18, %v5363_v6  ;;  %v2003_v31 = vadd.f32 0.5, %v2002_v30  ;;  %v6989_v6 = vld [vmem:[#allocation76_spill] sm:$0xff] }
 0x926   :  { %v5658_v59 = vld [vmem:[#allocation13 + $0x4] ss:$16 sps:$4 sm:$0xff]   ;;  %v5661_v18 = vld [vmem:[#allocation13 + $0xc] ss:$16 sps:$4 sm:$0xff]  }
 0x927   :  { %v5587_v29 = vadd.f32 %v2005_v19, %v2004_v21  ;;  %7017 = vst [vmem:[#allocation38_spill] sm:$0xff] %v5658_v59  ;;  %7018 = vst [vmem:[#allocation42_spill] sm:$0xff] %v5661_v18 }
 0x929   :  { %3777 = vtanh.f32 %v5587_v29 }
 0x933   :  { %v3778_v17 = vpop.eup %3777 }
 0x934   :  { %v2008_v2 = vmul.f32 %v3778_v17, %v2003_v31 }
 0x936   :  { %v2009_v35 = vpack.c.bf16 %v2008_v2, %v2008_v2 }
 0x938   :  { %2043 = vmatmul.mubr.bf16.vlgmr.msra.gmra.mrb[48].mxu0 %v2009_v35  ;;  %2084 = vmatmul.mubr.bf16.vlgmr.msra.gmra.mrb[48].mxu1 %v2009_v35 }
 0x939   :  { %2104 = vmatpush1.bf16.msra.mxu0 %v5194_v44  ;;  %2145 = vmatpush1.bf16.msra.mxu1 %v5197_v36  ;;  %v6972_v44 = vld [vmem:[#allocation61_spill] sm:$0xff]  ;;  %v6973_v36 = vld [vmem:[#allocation60_spill] sm:$0xff] }
 0x93a   :  { %2105 = vmatprep.subr.bf16.mxu0 %v5200_v49  ;;  %2146 = vmatprep.subr.bf16.mxu1 %v5203_v39  ;;  %v6974_v49 = vld [vmem:[#allocation62_spill] sm:$0xff]  ;;  %v6975_v39 = vld [vmem:[#allocation63_spill] sm:$0xff] }
 0x93b   :  { %2135 = vmatprep.mubr.bf16.mxu0 %v6731_v60  ;;  %2176 = vmatprep.mubr.bf16.mxu1 %v6731_v60 }
 0x93d   :  { %2106 = vmatpush1.bf16.msra.mxu0 %v5208_v38  ;;  %2147 = vmatpush1.bf16.msra.mxu1 %v5211_v53  ;;  %v6976_v38 = vld [vmem:[#allocation64_spill] sm:$0xff]  ;;  %v6977_v53 = vld [vmem:[#allocation65_spill] sm:$0xff] }
 0x93e   :  { %2107 = vmatprep.subr.bf16.mxu0 %v5214_v52  ;;  %2148 = vmatprep.subr.bf16.mxu1 %v5217_v48  ;;  %v6978_v52 = vld [vmem:[#allocation66_spill] sm:$0xff]  ;;  %v6979_v48 = vld [vmem:[#allocation67_spill] sm:$0xff] }
 0x941   :  { %2108 = vmatpush1.bf16.msra.mxu0 %v5220_v43  ;;  %2149 = vmatpush1.bf16.msra.mxu1 %v5223_v51  ;;  %v6980_v43 = vld [vmem:[#allocation68_spill] sm:$0xff]  ;;  %v6981_v51 = vld [vmem:[#allocation69_spill] sm:$0xff] }
 0x942   :  { %2109 = vmatprep.subr.bf16.mxu0 %v5226_v50  ;;  %2150 = vmatprep.subr.bf16.mxu1 %v5229_v1  ;;  %v6982_v50 = vld [vmem:[#allocation70_spill] sm:$0xff]  ;;  %v6983_v1 = vld [vmem:[#allocation71_spill] sm:$0xff] }
 0x945   :  { %2110 = vmatpush1.bf16.msra.mxu0 %v5232_v58  ;;  %2151 = vmatpush1.bf16.msra.mxu1 %v5235_v54  ;;  %v6984_v58 = vld [vmem:[#allocation72_spill] sm:$0xff]  ;;  %v6985_v54 = vld [vmem:[#allocation73_spill] sm:$0xff] }
 0x946   :  { %2111 = vmatprep.subr.bf16.mxu0 %v5238_v45  ;;  %2152 = vmatprep.subr.bf16.mxu1 %v5241_v40  ;;  %v6986_v45 = vld [vmem:[#allocation74_spill] sm:$0xff]  ;;  %v6987_v40 = vld [vmem:[#allocation91_spill] sm:$0xff] }
 0x949   :  { %2112 = vmatpush1.bf16.msra.mxu0 %v5244_v41  ;;  %2153 = vmatpush1.bf16.msra.mxu1 %v6972_v44  ;;  %v6988_v41 = vld [vmem:[#allocation75_spill] sm:$0xff] }
 0x94a   :  { %2113 = vmatprep.subr.bf16.mxu0 %v6973_v36  ;;  %2154 = vmatprep.subr.bf16.mxu1 %v6974_v49  ;;  %v2093_v36 = vld [vmem:[#allocation2 + $0x40] sm:$0xff] }
 0x94d   :  { %2114 = vmatpush1.bf16.msra.mxu0 %v6975_v39  ;;  %2155 = vmatpush1.bf16.msra.mxu1 %v6976_v38 }
 0x94e   :  { %2115 = vmatprep.subr.bf16.mxu0 %v6977_v53  ;;  %2156 = vmatprep.subr.bf16.mxu1 %v6978_v52 }
 0x951   :  { %2116 = vmatpush1.bf16.msra.mxu0 %v6979_v48  ;;  %2157 = vmatpush1.bf16.msra.mxu1 %v6980_v43 }
 0x952   :  { %2117 = vmatprep.subr.bf16.mxu0 %v6981_v51  ;;  %2158 = vmatprep.subr.bf16.mxu1 %v6982_v50 }
 0x955   :  { %2118 = vmatpush1.bf16.msra.mxu0 %v6983_v1  ;;  %2159 = vmatpush1.bf16.msra.mxu1 %v6984_v58 }
 0x956   :  { %2208 = vmatprep.subr.bf16.mxu0 %v6985_v54  ;;  %2249 = vmatprep.subr.bf16.mxu1 %v6986_v45 }
 0x958   :  { %2136 = vmatmul.mubr.bf16.vlgmr.msra.gmra.mrb[52].mxu0 %v5540_v33  ;;  %2177 = vmatmul.mubr.bf16.vlgmr.msra.gmra.mrb[52].mxu1 %v5540_v33  ;;  %v6995_v33 = vld [vmem:[#allocation82_spill] sm:$0xff] }
 0x959   :  { %2209 = vmatpush1.bf16.msra.mxu0 %v6987_v40  ;;  %2250 = vmatpush1.bf16.msra.mxu1 %v6988_v41 }
 0x95a   :  { %2210 = vmatprep.subr.bf16.mxu0 %v6989_v6  ;;  %2251 = vmatprep.subr.bf16.mxu1 %v6990_v13 }
 0x95b   :  { %2240 = vmatprep.mubr.bf16.mxu0 %v6731_v60  ;;  %2281 = vmatprep.mubr.bf16.mxu1 %v6731_v60 }
 0x95d   :  { %2211 = vmatpush1.bf16.msra.mxu0 %v6991_v47  ;;  %2252 = vmatpush1.bf16.msra.mxu1 %v6992_v22 }
 0x95e   :  { %2212 = vmatprep.subr.bf16.mxu0 %v6993_v37  ;;  %2253 = vmatprep.subr.bf16.mxu1 %v6994_v8 }
 0x961   :  { %2213 = vmatpush1.bf16.msra.mxu0 %v6995_v33  ;;  %2254 = vmatpush1.bf16.msra.mxu1 %v6996_v25 }
 0x962   :  { %2214 = vmatprep.subr.bf16.mxu0 %v6997_v23  ;;  %2255 = vmatprep.subr.bf16.mxu1 %v6998_v12 }
 0x965   :  { %2215 = vmatpush1.bf16.msra.mxu0 %v6999_v56  ;;  %2256 = vmatpush1.bf16.msra.mxu1 %v7000_v63 }
 0x966   :  { %2216 = vmatprep.subr.bf16.mxu0 %v7001_v16  ;;  %2257 = vmatprep.subr.bf16.mxu1 %v7002_v24 }
 0x969   :  { %2217 = vmatpush1.bf16.msra.mxu0 %v7003_v26  ;;  %2258 = vmatpush1.bf16.msra.mxu1 %v7004_v0 }
 0x96a   :  { %2218 = vmatprep.subr.bf16.mxu0 %v7005_v27  ;;  %2259 = vmatprep.subr.bf16.mxu1 %v7006_v57 }
 0x96d   :  { %2219 = vmatpush1.bf16.msra.mxu0 %v7007_v42  ;;  %2260 = vmatpush1.bf16.msra.mxu1 %v7008_v61  ;;  %v7020_v61 = vld [vmem:[#allocation92_spill] sm:$0xff] }
 0x96e   :  { %2220 = vmatprep.subr.bf16.mxu0 %v7009_v7  ;;  %2261 = vmatprep.subr.bf16.mxu1 %v7010_v14 }
 0x971   :  { %2221 = vmatpush1.bf16.msra.mxu0 %v7011_v11  ;;  %2262 = vmatpush1.bf16.msra.mxu1 %v7012_v55 }
 0x972   :  { %2222 = vmatprep.subr.bf16.mxu0 %v7013_v32  ;;  %2263 = vmatprep.subr.bf16.mxu1 %v7014_v3  ;;  %v7019_v3 = vld [vmem:[#allocation90_spill] sm:$0xff] }
 0x975   :  { %2223 = vmatpush1.bf16.msra.mxu0 %v7015_v10  ;;  %2264 = vmatpush1.bf16.msra.mxu1 %v7016_v15  ;;  %v2095_v15 = vunpack.c.l.bf16 %v2093_v36  ;;  %v2094_v10 = vld [vmem:[#allocation2 + $0x48] sm:$0xff] }
 0x976   :  { %2313 = vmatprep.subr.bf16.mxu0 %v5658_v59  ;;  %2354 = vmatprep.subr.bf16.mxu1 %v5661_v18  ;;  %v2096_v59 = vunpack.c.h.bf16 %v2093_v36  ;;  %v2097_v55 = vunpack.c.l.bf16 %v2094_v10  ;;  %v2098_v27 = vunpack.c.h.bf16 %v2094_v10 }
 0x977   :  { %v2099_v32 = vadd.f32 %v2095_v15, %v7019_v3 }
 0x978   :  { %v2100_v18 = vadd.f32 %v2096_v59, %v6833_v46  ;;  %v2101_v42 = vadd.f32 %v2097_v55, %v7020_v61  ;;  %v2102_v3 = vadd.f32 %v2098_v27, %v4919_v4 }
 0xa0b   :  { %v5664_v19 = vpop.f32.mrb[48].mxu0  ;;  %v5666_v21 = vpop.f32.mrb[48].mxu1 }
 0xa0c   :  { %v5668_v34 = vpop.f32.mrb[49].mxu0  ;;  %v5670_v30 = vpop.f32.mrb[49].mxu1 }
 0xa0d   :  { %v2048_v31 = vpop.f32.mrb[50].mxu0  ;;  %v2089_v17 = vpop.f32.mrb[50].mxu1 }
 0xa0e   :  { %v2049_v2 = vpop.f32.mrb[51].mxu0  ;;  %v2090_v35 = vpop.f32.mrb[51].mxu1 }
 0xa2b   :  { %v2137_v11 = vpop.f32.mrb[52].mxu0  ;;  %v2178_v14 = vpop.f32.mrb[52].mxu1 }
 0xa2c   :  { %v2185_v7 = vadd.f32 %v2137_v11, %v2099_v32  ;;  %v2139_v57 = vpop.f32.mrb[53].mxu0  ;;  %v2180_v31 = vpop.f32.mrb[53].mxu1  ;;  %v2187_v15 = vadd.f32 %v2178_v14, %v2101_v42 }
 0xa2d   :  { %v2186_v17 = vadd.f32 %v2139_v57, %v2100_v18  ;;  %v2141_v2 = vpop.f32.mrb[54].mxu0  ;;  %v2182_v35 = vpop.f32.mrb[54].mxu1  ;;  %v2188_v59 = vadd.f32 %v2180_v31, %v2102_v3 }
 0xa2e   :  { %v2189_v0 = vmul.f32 0.5, %v2185_v7  ;;  %v2142_v26 = vpop.f32.mrb[55].mxu0  ;;  %v2183_v24 = vpop.f32.mrb[55].mxu1  ;;  %v5693_v35 = vld [vmem:[#allocation13 + $0x2c] ss:$16 sps:$4 sm:$0xff]  }
 0xa2f   :  { %v2193_v36 = vmul.f32 0.5, %v2186_v17  ;;  %v2198_v11 = vmul.f32 0.5, %v2188_v59  ;;  %v5690_v17 = vld [vmem:[#allocation13 + $0x24] ss:$16 sps:$4 sm:$0xff]  }
 0xa30   :  { %3779 = vtanh.f32 %v2189_v0  ;;  %v5704_v59 = vld [vmem:[#allocation13 + $0x44] ss:$16 sps:$4 sm:$0xff]  }
 0xa31   :  { %3781 = vtanh.f32 %v2193_v36  ;;  %v5698_v36 = vld [vmem:[#allocation13 + $0x20] ss:$16 sps:$4 sm:$0xff]   ;;  %7022 = vst [vmem:[#allocation44_spill] sm:$0xff] %v5704_v59 }
 0xa32   :  { %3783 = vtanh.f32 %v2187_v15  ;;  %v5701_v15 = vld [vmem:[#allocation13 + $0x28] ss:$16 sps:$4 sm:$0xff]  }
 0xa33   :  { %3785 = vtanh.f32 %v2198_v11  ;;  %7021 = vst [vmem:[#allocation40_spill] sm:$0xff] %v5701_v15  ;;  %v5707_v11 = vld [vmem:[#allocation13 + $0x4c] ss:$16 sps:$4 sm:$0xff]  }
 0xa34   :  { %7023 = vst [vmem:[#allocation43_spill] sm:$0xff] %v5707_v11 }
 0xa3a   :  { %v3780_v32 = vpop.eup %3779 }
 0xa3b   :  { %v3782_v55 = vpop.eup %3781  ;;  %v2191_v61 = vmul.f32 0.5, %v3780_v32  ;;  %v5710_v32 = vld [vmem:[#allocation13 + $0x40] ss:$16 sps:$4 sm:$0xff]  }
 0xa3c   :  { %v2195_v10 = vmul.f32 0.5, %v3782_v55  ;;  %v3784_v18 = vpop.eup %3783  ;;  %7024 = vst [vmem:[#allocation46_spill] sm:$0xff] %v5710_v32  ;;  %v5713_v55 = vld [vmem:[#allocation13 + $0x48] ss:$16 sps:$4 sm:$0xff]  }
 0xa3d   :  { %v2192_v57 = vadd.f32 0.5, %v2191_v61  ;;  %v3786_v0 = vpop.eup %3785  ;;  %v5684_v61 = vld [vmem:[#allocation13] ss:$16 sps:$4 sm:$0xff]   ;;  %7025 = vst [vmem:[#allocation45_spill] sm:$0xff] %v5713_v55 }
 0xa3e   :  { %v2196_v2 = vadd.f32 0.5, %v2195_v10  ;;  %v2200_v27 = vmul.f32 0.5, %v3786_v0  ;;  %v5716_v10 = vld [vmem:[#allocation13 + $0x64] ss:$16 sps:$4 sm:$0xff]   ;;  %v5734_v0 = vld [vmem:[#allocation13 + $0x80] ss:$16 sps:$4 sm:$0xff]  }
 0xa3f   :  { %v2203_v7 = vmul.f32 %v3784_v18, %v2192_v57  ;;  %7026 = vst [vmem:[#allocation48_spill] sm:$0xff] %v5716_v10  ;;  %v5719_v57 = vld [vmem:[#allocation13 + $0x6c] ss:$16 sps:$4 sm:$0xff]   ;;  %v5722_v18 = vld [vmem:[#allocation13 + $0x60] ss:$16 sps:$4 sm:$0xff]   ;;  %7032 = vst [vmem:[#allocation54_spill] sm:$0xff] %v5734_v0 }
 0xa40   :  { %v2202_v24 = vmul.f32 %v2196_v2, %v5537_v62  ;;  %v2201_v42 = vadd.f32 0.5, %v2200_v27  ;;  %v5687_v62 = vld [vmem:[#allocation13 + $0x8] ss:$16 sps:$4 sm:$0xff]   ;;  %7027 = vst [vmem:[#allocation47_spill] sm:$0xff] %v5719_v57  ;;  %7028 = vst [vmem:[#allocation50_spill] sm:$0xff] %v5722_v18 }
 0xa41   :  { %v5725_v2 = vld [vmem:[#allocation13 + $0x68] ss:$16 sps:$4 sm:$0xff]  }
 0xa42   :  { %v5677_v26 = vadd.f32 %v2203_v7, %v2202_v24  ;;  %7029 = vst [vmem:[#allocation49_spill] sm:$0xff] %v5725_v2  ;;  %v5728_v7 = vld [vmem:[#allocation13 + $0x84] ss:$16 sps:$4 sm:$0xff]   ;;  %v5731_v24 = vld [vmem:[#allocation13 + $0x8c] ss:$16 sps:$4 sm:$0xff]  }
 0xa43   :  { %7030 = vst [vmem:[#allocation52_spill] sm:$0xff] %v5728_v7  ;;  %7031 = vst [vmem:[#allocation51_spill] sm:$0xff] %v5731_v24  ;;  %v5737_v27 = vld [vmem:[#allocation13 + $0x88] ss:$16 sps:$4 sm:$0xff]  }
 0xa44   :  { %3787 = vtanh.f32 %v5677_v26  ;;  %7033 = vst [vmem:[#allocation53_spill] sm:$0xff] %v5737_v27 }
 0xa4e   :  { %v3788_v14 = vpop.eup %3787 }
 0xa4f   :  { %v2206_v3 = vmul.f32 %v3788_v14, %v2201_v42  ;;  %v5740_v42 = vld [vmem:[#allocation13 + $0xa4] ss:$16 sps:$4 sm:$0xff]   ;;  %v5743_v14 = vld [vmem:[#allocation13 + $0xac] ss:$16 sps:$4 sm:$0xff]  }
 0xa50   :  { %7034 = vst [vmem:[#allocation56_spill] sm:$0xff] %v5740_v42  ;;  %7035 = vst [vmem:[#allocation55_spill] sm:$0xff] %v5743_v14 }
 0xa51   :  { %v5680_v31 = vpack.c.bf16 %v2206_v3, %v2206_v3  ;;  %v5746_v3 = vld [vmem:[#allocation13 + $0xa0] ss:$16 sps:$4 sm:$0xff]  }
 0xa52   :  { %7036 = vst [vmem:[#allocation57_spill] sm:$0xff] %v5746_v3 }
 0xa53   :  { %2241 = vmatmul.mubr.bf16.vlgmr.msra.gmra.mrb[56].mxu0 %v5680_v31  ;;  %2282 = vmatmul.mubr.bf16.vlgmr.msra.gmra.mrb[56].mxu1 %v5680_v31 }
 0xa54   :  { %2314 = vmatpush1.bf16.msra.mxu0 %v5684_v61  ;;  %2355 = vmatpush1.bf16.msra.mxu1 %v5687_v62 }
 0xa55   :  { %2315 = vmatprep.subr.bf16.mxu0 %v5690_v17  ;;  %2356 = vmatprep.subr.bf16.mxu1 %v5693_v35 }
 0xa56   :  { %2345 = vmatprep.mubr.bf16.mxu0 %v6731_v60  ;;  %2386 = vmatprep.mubr.bf16.mxu1 %v6731_v60 }
 0xa58   :  { %2316 = vmatpush1.bf16.msra.mxu0 %v5698_v36  ;;  %2357 = vmatpush1.bf16.msra.mxu1 %v5701_v15 }
 0xa59   :  { %2317 = vmatprep.subr.bf16.mxu0 %v5704_v59  ;;  %2358 = vmatprep.subr.bf16.mxu1 %v5707_v11 }
 0xa5c   :  { %2318 = vmatpush1.bf16.msra.mxu0 %v5710_v32  ;;  %2359 = vmatpush1.bf16.msra.mxu1 %v5713_v55 }
 0xa5d   :  { %2319 = vmatprep.subr.bf16.mxu0 %v5716_v10  ;;  %2360 = vmatprep.subr.bf16.mxu1 %v5719_v57 }
 0xa60   :  { %2320 = vmatpush1.bf16.msra.mxu0 %v5722_v18  ;;  %2361 = vmatpush1.bf16.msra.mxu1 %v5725_v2 }
 0xa61   :  { %2321 = vmatprep.subr.bf16.mxu0 %v5728_v7  ;;  %2362 = vmatprep.subr.bf16.mxu1 %v5731_v24  ;;  %v5749_v24 = vld [vmem:[#allocation13 + $0xa8] ss:$16 sps:$4 sm:$0xff]  }
 0xa62   :  { %7037 = vst [vmem:[#allocation58_spill] sm:$0xff] %v5749_v24 }
 0xa64   :  { %2322 = vmatpush1.bf16.msra.mxu0 %v5734_v0  ;;  %2363 = vmatpush1.bf16.msra.mxu1 %v5737_v27  ;;  %v5752_v0 = vld [vmem:[#allocation13 + $0xc4] ss:$16 sps:$4 sm:$0xff]   ;;  %v5755_v27 = vld [vmem:[#allocation13 + $0xcc] ss:$16 sps:$4 sm:$0xff]  }
 0xa65   :  { %2323 = vmatprep.subr.bf16.mxu0 %v5740_v42  ;;  %2364 = vmatprep.subr.bf16.mxu1 %v5743_v14  ;;  %7038 = vst [vmem:[#allocation59_spill] sm:$0xff] %v5752_v0  ;;  %7039 = vst [vmem:[#allocation61_spill] sm:$0xff] %v5755_v27  ;;  %v5758_v42 = vld [vmem:[#allocation13 + $0xc0] ss:$16 sps:$4 sm:$0xff]   ;;  %v5761_v14 = vld [vmem:[#allocation13 + $0xc8] ss:$16 sps:$4 sm:$0xff]  }
 0xa66   :  { %7040 = vst [vmem:[#allocation60_spill] sm:$0xff] %v5758_v42  ;;  %7041 = vst [vmem:[#allocation62_spill] sm:$0xff] %v5761_v14 }
 0xa68   :  { %2324 = vmatpush1.bf16.msra.mxu0 %v5746_v3  ;;  %2365 = vmatpush1.bf16.msra.mxu1 %v5749_v24  ;;  %v5764_v3 = vld [vmem:[#allocation13 + $0xe4] ss:$16 sps:$4 sm:$0xff]   ;;  %v5767_v24 = vld [vmem:[#allocation13 + $0xec] ss:$16 sps:$4 sm:$0xff]  }
 0xa69   :  { %2325 = vmatprep.subr.bf16.mxu0 %v5752_v0  ;;  %2366 = vmatprep.subr.bf16.mxu1 %v5755_v27  ;;  %7042 = vst [vmem:[#allocation63_spill] sm:$0xff] %v5764_v3  ;;  %7043 = vst [vmem:[#allocation64_spill] sm:$0xff] %v5767_v24  ;;  %v5770_v0 = vld [vmem:[#allocation13 + $0xe0] ss:$16 sps:$4 sm:$0xff]   ;;  %v5773_v27 = vld [vmem:[#allocation13 + $0xe8] ss:$16 sps:$4 sm:$0xff]  }
 0xa6a   :  { %7044 = vst [vmem:[#allocation65_spill] sm:$0xff] %v5770_v0  ;;  %7045 = vst [vmem:[#allocation66_spill] sm:$0xff] %v5773_v27 }
 0xa6c   :  { %2326 = vmatpush1.bf16.msra.mxu0 %v5758_v42  ;;  %2367 = vmatpush1.bf16.msra.mxu1 %v5761_v14  ;;  %v5776_v42 = vld [vmem:[#allocation10 + $0x4] ss:$16 sps:$4 sm:$0xff]   ;;  %v5779_v14 = vld [vmem:[#allocation10 + $0xc] ss:$16 sps:$4 sm:$0xff]  }
 0xa6d   :  { %2327 = vmatprep.subr.bf16.mxu0 %v5764_v3  ;;  %2368 = vmatprep.subr.bf16.mxu1 %v5767_v24  ;;  %7046 = vst [vmem:[#allocation67_spill] sm:$0xff] %v5776_v42  ;;  %7047 = vst [vmem:[#allocation68_spill] sm:$0xff] %v5779_v14 }
 0xa70   :  { %2328 = vmatpush1.bf16.msra.mxu0 %v5770_v0  ;;  %2369 = vmatpush1.bf16.msra.mxu1 %v5773_v27 }
 0xa71   :  { %2406 = vmatprep.subr.bf16.mxu0 %v5776_v42  ;;  %2447 = vmatprep.subr.bf16.mxu1 %v5779_v14 }
 0xb26   :  { %v2242_v3 = vpop.f32.mrb[56].mxu0  ;;  %v2283_v7 = vpop.f32.mrb[56].mxu1 }
 0xb27   :  { %v2243_v24 = vadd.f32 %v2242_v3, %v5664_v19  ;;  %v2284_v2 = vadd.f32 %v2283_v7, %v5666_v21  ;;  %v2244_v18 = vpop.f32.mrb[57].mxu0  ;;  %v2285_v0 = vpop.f32.mrb[57].mxu1  ;;  %v5794_v3 = vld [vmem:[#allocation10] ss:$16 sps:$4 sm:$0xff]  }
 0xb28   :  { %v2245_v57 = vadd.f32 %v2244_v18, %v5668_v34  ;;  %v2286_v27 = vadd.f32 %v2285_v0, %v5670_v30  ;;  %v2246_v10 = vpop.f32.mrb[58].mxu0  ;;  %v2287_v55 = vpop.f32.mrb[58].mxu1 }
 0xb29   :  { %v2290_v42 = vadd.f32 %v2243_v24, %v4965_v5  ;;  %v2247_v32 = vpop.f32.mrb[59].mxu0  ;;  %v2288_v11 = vpop.f32.mrb[59].mxu1  ;;  %v2292_v19 = vadd.f32 %v2284_v2, %v4978_v20 }
 0xb2a   :  { %v2291_v14 = vadd.f32 %v2245_v57, %v4969_v9  ;;  %v2293_v21 = vadd.f32 %v2286_v27, %v4984_v28 }
 0xb2b   :  { %v2294_v59 = vmul.f32 0.5, %v2290_v42 }
 0xb2c   :  { %v2298_v15 = vmul.f32 0.5, %v2291_v14  ;;  %v2303_v34 = vmul.f32 0.5, %v2293_v21  ;;  %v5803_v21 = vld [vmem:[#allocation10 + $0x2c] ss:$16 sps:$4 sm:$0xff]  }
 0xb2d   :  { %3789 = vtanh.f32 %v2294_v59 }
 0xb2e   :  { %3791 = vtanh.f32 %v2298_v15 }
 0xb2f   :  { %3793 = vtanh.f32 %v2292_v19  ;;  %v5797_v19 = vld [vmem:[#allocation10 + $0x8] ss:$16 sps:$4 sm:$0xff]  }
 0xb30   :  { %3795 = vtanh.f32 %v2303_v34  ;;  %v5808_v34 = vld [vmem:[#allocation10 + $0x20] ss:$16 sps:$4 sm:$0xff]  }
 0xb37   :  { %v3790_v18 = vpop.eup %3789 }
 0xb38   :  { %v3792_v30 = vpop.eup %3791  ;;  %v2296_v10 = vmul.f32 0.5, %v3790_v18  ;;  %v5811_v18 = vld [vmem:[#allocation10 + $0x28] ss:$16 sps:$4 sm:$0xff]  }
 0xb39   :  { %v2300_v55 = vmul.f32 0.5, %v3792_v30  ;;  %v3794_v32 = vpop.eup %3793  ;;  %v5814_v30 = vld [vmem:[#allocation10 + $0x44] ss:$16 sps:$4 sm:$0xff]  }
 0xb3a   :  { %v2297_v7 = vadd.f32 0.5, %v2296_v10  ;;  %v3796_v15 = vpop.eup %3795  ;;  %v5817_v10 = vld [vmem:[#allocation10 + $0x4c] ss:$16 sps:$4 sm:$0xff]  }
 0xb3b   :  { %v2301_v11 = vadd.f32 0.5, %v2300_v55  ;;  %v2305_v59 = vmul.f32 0.5, %v3796_v15  ;;  %v5820_v55 = vld [vmem:[#allocation10 + $0x40] ss:$16 sps:$4 sm:$0xff]   ;;  %v5838_v15 = vld [vmem:[#allocation10 + $0x84] ss:$16 sps:$4 sm:$0xff]  }
 0xb3c   :  { %v2308_v24 = vmul.f32 %v3794_v32, %v2297_v7  ;;  %v5823_v7 = vld [vmem:[#allocation10 + $0x48] ss:$16 sps:$4 sm:$0xff]   ;;  %v5826_v32 = vld [vmem:[#allocation10 + $0x64] ss:$16 sps:$4 sm:$0xff]  }
 0xb3d   :  { %v2307_v57 = vmul.f32 %v2301_v11, %v5587_v29  ;;  %v2306_v2 = vadd.f32 0.5, %v2305_v59  ;;  %v5800_v29 = vld [vmem:[#allocation10 + $0x24] ss:$16 sps:$4 sm:$0xff]   ;;  %v5829_v11 = vld [vmem:[#allocation10 + $0x6c] ss:$16 sps:$4 sm:$0xff]  }
 0xb3e   :  { %v5841_v59 = vld [vmem:[#allocation10 + $0x8c] ss:$16 sps:$4 sm:$0xff]  }
 0xb3f   :  { %v5791_v0 = vadd.f32 %v2308_v24, %v2307_v57  ;;  %v5832_v24 = vld [vmem:[#allocation10 + $0x60] ss:$16 sps:$4 sm:$0xff]   ;;  %v5835_v57 = vld [vmem:[#allocation10 + $0x68] ss:$16 sps:$4 sm:$0xff]  }
 0xb41   :  { %3797 = vtanh.f32 %v5791_v0 }
 0xb4b   :  { %v3798_v27 = vpop.eup %3797 }
 0xb4c   :  { %v2311_v42 = vmul.f32 %v3798_v27, %v2306_v2  ;;  %v5844_v2 = vld [vmem:[#allocation10 + $0x80] ss:$16 sps:$4 sm:$0xff]   ;;  %v5848_v27 = vld [vmem:[#allocation10 + $0xa4] ss:$16 sps:$4 sm:$0xff]  }
 0xb4d   :  { %7048 = vst [vmem:[#allocation69_spill] sm:$0xff] %v5848_v27 }
 0xb4e   :  { %v2312_v14 = vpack.c.bf16 %v2311_v42, %v2311_v42 }
 0xb50   :  { %2346 = vmatmul.mubr.bf16.vlgmr.msra.gmra.mrb[60].mxu0 %v2312_v14  ;;  %2387 = vmatmul.mubr.bf16.vlgmr.msra.gmra.mrb[60].mxu1 %v2312_v14 }
 0xb51   :  { %2407 = vmatpush1.bf16.msra.mxu0 %v5794_v3  ;;  %2448 = vmatpush1.bf16.msra.mxu1 %v5797_v19 }
 0xb52   :  { %2408 = vmatprep.subr.bf16.mxu0 %v5800_v29  ;;  %2449 = vmatprep.subr.bf16.mxu1 %v5803_v21 }
 0xb53   :  { %2438 = vmatprep.mubr.bf16.mxu0 %v6731_v60  ;;  %2479 = vmatprep.mubr.bf16.mxu1 %v6731_v60 }
 0xb55   :  { %2409 = vmatpush1.bf16.msra.mxu0 %v5808_v34  ;;  %2450 = vmatpush1.bf16.msra.mxu1 %v5811_v18 }
 0xb56   :  { %2410 = vmatprep.subr.bf16.mxu0 %v5814_v30  ;;  %2451 = vmatprep.subr.bf16.mxu1 %v5817_v10 }
 0xb59   :  { %2411 = vmatpush1.bf16.msra.mxu0 %v5820_v55  ;;  %2452 = vmatpush1.bf16.msra.mxu1 %v5823_v7 }
 0xb5a   :  { %2412 = vmatprep.subr.bf16.mxu0 %v5826_v32  ;;  %2453 = vmatprep.subr.bf16.mxu1 %v5829_v11 }
 0xb5d   :  { %2413 = vmatpush1.bf16.msra.mxu0 %v5832_v24  ;;  %2454 = vmatpush1.bf16.msra.mxu1 %v5835_v57 }
 0xb5e   :  { %2414 = vmatprep.subr.bf16.mxu0 %v5838_v15  ;;  %2455 = vmatprep.subr.bf16.mxu1 %v5841_v59 }
 0xb61   :  { %2415 = vmatpush1.bf16.msra.mxu0 %v5844_v2  ;;  %2456 = vmatpush1.bf16.msra.mxu1 %v6972_v44  ;;  %v7049_v44 = vld [vmem:[#allocation89_spill] sm:$0xff] }
 0xb62   :  { %2416 = vmatprep.subr.bf16.mxu0 %v5848_v27  ;;  %2457 = vmatprep.subr.bf16.mxu1 %v6974_v49  ;;  %v7050_v49 = vld [vmem:[#allocation32_spill] sm:$0xff] }
 0xb65   :  { %2417 = vmatpush1.bf16.msra.mxu0 %v6975_v39  ;;  %2458 = vmatpush1.bf16.msra.mxu1 %v6976_v38  ;;  %v7051_v39 = vld [vmem:[#allocation31_spill] sm:$0xff] }
 0xb66   :  { %2418 = vmatprep.subr.bf16.mxu0 %v6977_v53  ;;  %2459 = vmatprep.subr.bf16.mxu1 %v6978_v52  ;;  %v7052_v38 = vld [vmem:[#allocation35_spill] sm:$0xff]  ;;  %v7053_v53 = vld [vmem:[#allocation33_spill] sm:$0xff]  ;;  %v7054_v52 = vld [vmem:[#allocation36_spill] sm:$0xff] }
 0xb69   :  { %2419 = vmatpush1.bf16.msra.mxu0 %v6979_v48  ;;  %2460 = vmatpush1.bf16.msra.mxu1 %v6980_v43  ;;  %v7055_v48 = vld [vmem:[#allocation34_spill] sm:$0xff]  ;;  %v7056_v43 = vld [vmem:[#allocation39_spill] sm:$0xff] }
 0xb6a   :  { %2420 = vmatprep.subr.bf16.mxu0 %v6981_v51  ;;  %2461 = vmatprep.subr.bf16.mxu1 %v6982_v50  ;;  %v7057_v51 = vld [vmem:[#allocation37_spill] sm:$0xff] }
 0xb6b   :  { %v7058_v50 = vld [vmem:[#allocation41_spill] sm:$0xff] }
 0xb6d   :  { %2421 = vmatpush1.bf16.msra.mxu0 %v6983_v1  ;;  %2462 = vmatpush1.bf16.msra.mxu1 %v6984_v58  ;;  %v7059_v1 = vld [vmem:[#allocation93_spill] sm:$0xff]  ;;  %v7060_v58 = vld [vmem:[#allocation94_spill] sm:$0xff] }
 0xb6e   :  { %2511 = vmatprep.subr.bf16.mxu0 %v6985_v54  ;;  %2552 = vmatprep.subr.bf16.mxu1 %v6986_v45  ;;  %v7061_v54 = vld [vmem:[#allocation95_spill] sm:$0xff]  ;;  %v7062_v45 = vld [vmem:[#allocation96_spill] sm:$0xff] }
 0xb70   :  { %2439 = vmatmul.mubr.bf16.vlgmr.msra.gmra.mrb[64].mxu0 %v5680_v31  ;;  %2480 = vmatmul.mubr.bf16.vlgmr.msra.gmra.mrb[64].mxu1 %v5680_v31  ;;  %v7066_v31 = vld [vmem:[#allocation90_spill] sm:$0xff] }
 0xb71   :  { %2512 = vmatpush1.bf16.msra.mxu0 %v6987_v40  ;;  %2553 = vmatpush1.bf16.msra.mxu1 %v6988_v41  ;;  %v7063_v40 = vld [vmem:[#allocation97_spill] sm:$0xff]  ;;  %v7064_v41 = vld [vmem:[#allocation38_spill] sm:$0xff] }
 0xb72   :  { %2513 = vmatprep.subr.bf16.mxu0 %v6989_v6  ;;  %2554 = vmatprep.subr.bf16.mxu1 %v6990_v13  ;;  %v7065_v6 = vld [vmem:[#allocation42_spill] sm:$0xff] }
 0xb73   :  { %2543 = vmatprep.mubr.bf16.mxu0 %v6731_v60  ;;  %2584 = vmatprep.mubr.bf16.mxu1 %v6731_v60 }
 0xb75   :  { %2514 = vmatpush1.bf16.msra.mxu0 %v6991_v47  ;;  %2555 = vmatpush1.bf16.msra.mxu1 %v6992_v22 }
 0xb76   :  { %2515 = vmatprep.subr.bf16.mxu0 %v6993_v37  ;;  %2556 = vmatprep.subr.bf16.mxu1 %v6994_v8 }
 0xb79   :  { %2516 = vmatpush1.bf16.msra.mxu0 %v6995_v33  ;;  %2557 = vmatpush1.bf16.msra.mxu1 %v6996_v25 }
 0xb7a   :  { %2517 = vmatprep.subr.bf16.mxu0 %v6997_v23  ;;  %2558 = vmatprep.subr.bf16.mxu1 %v6998_v12  ;;  %v2396_v12 = vld [vmem:[#allocation2 + $0x50] sm:$0xff] }
 0xb7d   :  { %2518 = vmatpush1.bf16.msra.mxu0 %v6999_v56  ;;  %2559 = vmatpush1.bf16.msra.mxu1 %v7000_v63  ;;  %v2398_v56 = vunpack.c.l.bf16 %v2396_v12  ;;  %v2397_v63 = vld [vmem:[#allocation2 + $0x58] sm:$0xff] }
 0xb7e   :  { %2519 = vmatprep.subr.bf16.mxu0 %v7001_v16  ;;  %2560 = vmatprep.subr.bf16.mxu1 %v7049_v44  ;;  %v2399_v16 = vunpack.c.h.bf16 %v2396_v12  ;;  %v2400_v14 = vunpack.c.l.bf16 %v2397_v63 }
 0xb7f   :  { %v2402_v42 = vadd.f32 %v2398_v56, %v7066_v31 }
 0xb80   :  { %v2403_v44 = vadd.f32 %v2399_v16, %v6833_v46 }
 0xb81   :  { %2520 = vmatpush1.bf16.msra.mxu0 %v7050_v49  ;;  %2561 = vmatpush1.bf16.msra.mxu1 %v7051_v39 }
 0xb82   :  { %2521 = vmatprep.subr.bf16.mxu0 %v7052_v38  ;;  %2562 = vmatprep.subr.bf16.mxu1 %v7053_v53  ;;  %v7067_v53 = vld [vmem:[#allocation92_spill] sm:$0xff] }
 0xb85   :  { %2522 = vmatpush1.bf16.msra.mxu0 %v7054_v52  ;;  %2563 = vmatpush1.bf16.msra.mxu1 %v7055_v48  ;;  %v2404_v52 = vadd.f32 %v2400_v14, %v7067_v53 }
 0xb86   :  { %2523 = vmatprep.subr.bf16.mxu0 %v7056_v43  ;;  %2564 = vmatprep.subr.bf16.mxu1 %v7057_v51  ;;  %v2401_v43 = vunpack.c.h.bf16 %v2397_v63 }
 0xb89   :  { %2524 = vmatpush1.bf16.msra.mxu0 %v7058_v50  ;;  %2565 = vmatpush1.bf16.msra.mxu1 %v7059_v1 }
 0xb8a   :  { %2525 = vmatprep.subr.bf16.mxu0 %v7060_v58  ;;  %2566 = vmatprep.subr.bf16.mxu1 %v7061_v54 }
 0xb8d   :  { %2526 = vmatpush1.bf16.msra.mxu0 %v7062_v45  ;;  %2567 = vmatpush1.bf16.msra.mxu1 %v7063_v40 }
 0xb8e   :  { %2616 = vmatprep.subr.bf16.mxu0 %v7064_v41  ;;  %2657 = vmatprep.subr.bf16.mxu1 %v7065_v6 }
 0xc23   :  { %v5900_v13 = vpop.f32.mrb[60].mxu0  ;;  %v5902_v47 = vpop.f32.mrb[60].mxu1 }
 0xc24   :  { %v5904_v22 = vpop.f32.mrb[61].mxu0  ;;  %v5906_v37 = vpop.f32.mrb[61].mxu1 }
 0xc25   :  { %v2351_v8 = vpop.f32.mrb[62].mxu0  ;;  %v2392_v33 = vpop.f32.mrb[62].mxu1 }
 0xc26   :  { %v2352_v25 = vpop.f32.mrb[63].mxu0  ;;  %v2393_v23 = vpop.f32.mrb[63].mxu1 }
 0xc27   :  { %v2405_v25 = vadd.f32 %v2401_v43, %v4919_v4 }
 0xc43   :  { %v2440_v49 = vpop.f32.mrb[64].mxu0  ;;  %v2481_v39 = vpop.f32.mrb[64].mxu1 }
 0xc44   :  { %v2488_v38 = vadd.f32 %v2440_v49, %v2402_v42  ;;  %v2442_v48 = vpop.f32.mrb[65].mxu0  ;;  %v2483_v51 = vpop.f32.mrb[65].mxu1  ;;  %v2490_v33 = vadd.f32 %v2481_v39, %v2404_v52 }
 0xc45   :  { %v2489_v50 = vadd.f32 %v2442_v48, %v2403_v44  ;;  %v2444_v1 = vpop.f32.mrb[66].mxu0  ;;  %v2485_v58 = vpop.f32.mrb[66].mxu1  ;;  %v2491_v23 = vadd.f32 %v2483_v51, %v2405_v25  ;;  %v7074_v25 = vld [vmem:[#allocation47_spill] sm:$0xff] }
 0xc46   :  { %v2492_v54 = vmul.f32 0.5, %v2488_v38  ;;  %v2445_v45 = vpop.f32.mrb[67].mxu0  ;;  %v2486_v40 = vpop.f32.mrb[67].mxu1 }
 0xc47   :  { %v2496_v8 = vmul.f32 0.5, %v2489_v50  ;;  %v2501_v12 = vmul.f32 0.5, %v2491_v23  ;;  %v7070_v45 = vld [vmem:[#allocation43_spill] sm:$0xff]  ;;  %v7071_v40 = vld [vmem:[#allocation46_spill] sm:$0xff] }
 0xc48   :  { %3799 = vtanh.f32 %v2492_v54  ;;  %v7069_v54 = vld [vmem:[#allocation44_spill] sm:$0xff]  ;;  %v7075_v23 = vld [vmem:[#allocation50_spill] sm:$0xff] }
 0xc49   :  { %3801 = vtanh.f32 %v2496_v8  ;;  %v7072_v8 = vld [vmem:[#allocation45_spill] sm:$0xff] }
 0xc4a   :  { %3803 = vtanh.f32 %v2490_v33  ;;  %v7073_v33 = vld [vmem:[#allocation48_spill] sm:$0xff] }
 0xc4b   :  { %3805 = vtanh.f32 %v2501_v12  ;;  %v7076_v12 = vld [vmem:[#allocation49_spill] sm:$0xff] }
 0xc52   :  { %v3800_v56 = vpop.eup %3799 }
 0xc53   :  { %v3802_v16 = vpop.eup %3801  ;;  %v2494_v42 = vmul.f32 0.5, %v3800_v56  ;;  %v7077_v56 = vld [vmem:[#allocation52_spill] sm:$0xff] }
 0xc54   :  { %v2498_v63 = vmul.f32 0.5, %v3802_v16  ;;  %v3804_v44 = vpop.eup %3803  ;;  %v7078_v16 = vld [vmem:[#allocation51_spill] sm:$0xff] }
 0xc55   :  { %v2495_v14 = vadd.f32 0.5, %v2494_v42  ;;  %v3806_v39 = vpop.eup %3805  ;;  %v7079_v42 = vld [vmem:[#allocation54_spill] sm:$0xff] }
 0xc56   :  { %v2499_v49 = vadd.f32 0.5, %v2498_v63  ;;  %v2503_v52 = vmul.f32 0.5, %v3806_v39  ;;  %v7080_v63 = vld [vmem:[#allocation53_spill] sm:$0xff] }
 0xc57   :  { %v2506_v38 = vmul.f32 %v3804_v44, %v2495_v14  ;;  %v7081_v14 = vld [vmem:[#allocation56_spill] sm:$0xff]  ;;  %v7082_v44 = vld [vmem:[#allocation55_spill] sm:$0xff]  ;;  %v7086_v39 = vld [vmem:[#allocation61_spill] sm:$0xff] }
 0xc58   :  { %v2505_v48 = vmul.f32 %v2499_v49, %v5677_v26  ;;  %v2504_v43 = vadd.f32 0.5, %v2503_v52  ;;  %v7068_v26 = vld [vmem:[#allocation40_spill] sm:$0xff]  ;;  %v7083_v49 = vld [vmem:[#allocation57_spill] sm:$0xff] }
 0xc59   :  { %v7087_v52 = vld [vmem:[#allocation60_spill] sm:$0xff] }
 0xc5a   :  { %v5913_v50 = vadd.f32 %v2506_v38, %v2505_v48  ;;  %v7084_v38 = vld [vmem:[#allocation58_spill] sm:$0xff]  ;;  %v7085_v48 = vld [vmem:[#allocation59_spill] sm:$0xff] }
 0xc5c   :  { %3807 = vtanh.f32 %v5913_v50 }
 0xc66   :  { %v3808_v51 = vpop.eup %3807 }
 0xc67   :  { %v2509_v1 = vmul.f32 %v3808_v51, %v2504_v43  ;;  %v7088_v43 = vld [vmem:[#allocation62_spill] sm:$0xff]  ;;  %v7089_v51 = vld [vmem:[#allocation63_spill] sm:$0xff] }
 0xc69   :  { %v5916_v58 = vpack.c.bf16 %v2509_v1, %v2509_v1  ;;  %v7090_v1 = vld [vmem:[#allocation64_spill] sm:$0xff] }
 0xc6b   :  { %2544 = vmatmul.mubr.bf16.vlgmr.msra.gmra.mrb[68].mxu0 %v5916_v58  ;;  %2585 = vmatmul.mubr.bf16.vlgmr.msra.gmra.mrb[68].mxu1 %v5916_v58 }
 0xc6c   :  { %2617 = vmatpush1.bf16.msra.mxu0 %v5684_v61  ;;  %2658 = vmatpush1.bf16.msra.mxu1 %v5687_v62 }
 0xc6d   :  { %2618 = vmatprep.subr.bf16.mxu0 %v5690_v17  ;;  %2659 = vmatprep.subr.bf16.mxu1 %v5693_v35 }
 0xc6e   :  { %2648 = vmatprep.mubr.bf16.mxu0 %v6731_v60  ;;  %2689 = vmatprep.mubr.bf16.mxu1 %v6731_v60 }
 0xc70   :  { %2619 = vmatpush1.bf16.msra.mxu0 %v5698_v36  ;;  %2660 = vmatpush1.bf16.msra.mxu1 %v7068_v26 }
 0xc71   :  { %2620 = vmatprep.subr.bf16.mxu0 %v7069_v54  ;;  %2661 = vmatprep.subr.bf16.mxu1 %v7070_v45 }
 0xc74   :  { %2621 = vmatpush1.bf16.msra.mxu0 %v7071_v40  ;;  %2662 = vmatpush1.bf16.msra.mxu1 %v7072_v8 }
 0xc75   :  { %2622 = vmatprep.subr.bf16.mxu0 %v7073_v33  ;;  %2663 = vmatprep.subr.bf16.mxu1 %v7074_v25 }
 0xc78   :  { %2623 = vmatpush1.bf16.msra.mxu0 %v7075_v23  ;;  %2664 = vmatpush1.bf16.msra.mxu1 %v7076_v12 }
 0xc79   :  { %2624 = vmatprep.subr.bf16.mxu0 %v7077_v56  ;;  %2665 = vmatprep.subr.bf16.mxu1 %v7078_v16 }
 0xc7c   :  { %2625 = vmatpush1.bf16.msra.mxu0 %v7079_v42  ;;  %2666 = vmatpush1.bf16.msra.mxu1 %v7080_v63  ;;  %v7091_v63 = vld [vmem:[#allocation65_spill] sm:$0xff] }
 0xc7d   :  { %2626 = vmatprep.subr.bf16.mxu0 %v7081_v14  ;;  %2667 = vmatprep.subr.bf16.mxu1 %v7082_v44  ;;  %v7092_v14 = vld [vmem:[#allocation66_spill] sm:$0xff]  ;;  %v7093_v44 = vld [vmem:[#allocation67_spill] sm:$0xff] }
 0xc80   :  { %2627 = vmatpush1.bf16.msra.mxu0 %v7083_v49  ;;  %2668 = vmatpush1.bf16.msra.mxu1 %v7084_v38  ;;  %v7094_v49 = vld [vmem:[#allocation68_spill] sm:$0xff] }
 0xc81   :  { %2628 = vmatprep.subr.bf16.mxu0 %v7085_v48  ;;  %2669 = vmatprep.subr.bf16.mxu1 %v7086_v39 }
 0xc84   :  { %2629 = vmatpush1.bf16.msra.mxu0 %v7087_v52  ;;  %2670 = vmatpush1.bf16.msra.mxu1 %v7088_v43 }
 0xc85   :  { %2630 = vmatprep.subr.bf16.mxu0 %v7089_v51  ;;  %2671 = vmatprep.subr.bf16.mxu1 %v7090_v1 }
 0xc88   :  { %2631 = vmatpush1.bf16.msra.mxu0 %v7091_v63  ;;  %2672 = vmatpush1.bf16.msra.mxu1 %v7092_v14 }
 0xc89   :  { %2709 = vmatprep.subr.bf16.mxu0 %v7093_v44  ;;  %2750 = vmatprep.subr.bf16.mxu1 %v7094_v49 }
 0xd3e   :  { %v2545_v38 = vpop.f32.mrb[68].mxu0  ;;  %v2586_v48 = vpop.f32.mrb[68].mxu1 }
 0xd3f   :  { %v2546_v39 = vadd.f32 %v2545_v38, %v5900_v13  ;;  %v2587_v52 = vadd.f32 %v2586_v48, %v5902_v47  ;;  %v2547_v42 = vpop.f32.mrb[69].mxu0  ;;  %v2588_v43 = vpop.f32.mrb[69].mxu1 }
 0xd40   :  { %v2548_v51 = vadd.f32 %v2547_v42, %v5904_v22  ;;  %v2589_v1 = vadd.f32 %v2588_v43, %v5906_v37  ;;  %v2549_v16 = vpop.f32.mrb[70].mxu0  ;;  %v2590_v63 = vpop.f32.mrb[70].mxu1 }
 0xd41   :  { %v2593_v14 = vadd.f32 %v2546_v39, %v4965_v5  ;;  %v2550_v56 = vpop.f32.mrb[71].mxu0  ;;  %v2591_v44 = vpop.f32.mrb[71].mxu1  ;;  %v2595_v13 = vadd.f32 %v2587_v52, %v4978_v20 }
 0xd42   :  { %v2594_v49 = vadd.f32 %v2548_v51, %v4969_v9  ;;  %v2596_v47 = vadd.f32 %v2589_v1, %v4984_v28  ;;  %v5989_v1 = vld [vmem:[#allocation10 + $0xac] ss:$16 sps:$4 sm:$0xff]  }
 0xd43   :  { %v2597_v12 = vmul.f32 0.5, %v2593_v14  ;;  %7096 = vst [vmem:[#allocation71_spill] sm:$0xff] %v5989_v1 }
 0xd44   :  { %v2601_v23 = vmul.f32 0.5, %v2594_v49  ;;  %v2606_v22 = vmul.f32 0.5, %v2596_v47  ;;  %v5995_v47 = vld [vmem:[#allocation10 + $0xa8] ss:$16 sps:$4 sm:$0xff]  }
 0xd45   :  { %3809 = vtanh.f32 %v2597_v12  ;;  %7098 = vst [vmem:[#allocation73_spill] sm:$0xff] %v5995_v47 }
 0xd46   :  { %3811 = vtanh.f32 %v2601_v23 }
 0xd47   :  { %3813 = vtanh.f32 %v2595_v13  ;;  %v5992_v13 = vld [vmem:[#allocation10 + $0xa0] ss:$16 sps:$4 sm:$0xff]  }
 0xd48   :  { %3815 = vtanh.f32 %v2606_v22  ;;  %7097 = vst [vmem:[#allocation72_spill] sm:$0xff] %v5992_v13  ;;  %v5998_v22 = vld [vmem:[#allocation10 + $0xc4] ss:$16 sps:$4 sm:$0xff]  }
 0xd49   :  { %7099 = vst [vmem:[#allocation74_spill] sm:$0xff] %v5998_v22 }
 0xd4f   :  { %v3810_v42 = vpop.eup %3809 }
 0xd50   :  { %v3812_v37 = vpop.eup %3811  ;;  %v2599_v16 = vmul.f32 0.5, %v3810_v42  ;;  %v6001_v42 = vld [vmem:[#allocation10 + $0xcc] ss:$16 sps:$4 sm:$0xff]  }
 0xd51   :  { %v2603_v63 = vmul.f32 0.5, %v3812_v37  ;;  %v3814_v56 = vpop.eup %3813  ;;  %7100 = vst [vmem:[#allocation91_spill] sm:$0xff] %v6001_v42  ;;  %v6004_v37 = vld [vmem:[#allocation10 + $0xc0] ss:$16 sps:$4 sm:$0xff]  }
 0xd52   :  { %v2600_v38 = vadd.f32 0.5, %v2599_v16  ;;  %v3816_v23 = vpop.eup %3815  ;;  %7101 = vst [vmem:[#allocation75_spill] sm:$0xff] %v6004_v37  ;;  %v6007_v16 = vld [vmem:[#allocation10 + $0xc8] ss:$16 sps:$4 sm:$0xff]  }
 0xd53   :  { %v2604_v44 = vadd.f32 0.5, %v2603_v63  ;;  %v2608_v12 = vmul.f32 0.5, %v3816_v23  ;;  %7102 = vst [vmem:[#allocation76_spill] sm:$0xff] %v6007_v16  ;;  %v6010_v63 = vld [vmem:[#allocation10 + $0xe4] ss:$16 sps:$4 sm:$0xff]  }
 0xd54   :  { %v2611_v48 = vmul.f32 %v3814_v56, %v2600_v38  ;;  %7103 = vst [vmem:[#allocation77_spill] sm:$0xff] %v6010_v63  ;;  %v6013_v38 = vld [vmem:[#allocation10 + $0xec] ss:$16 sps:$4 sm:$0xff]   ;;  %v6016_v56 = vld [vmem:[#allocation10 + $0xe0] ss:$16 sps:$4 sm:$0xff]  }
 0xd55   :  { %v2610_v14 = vmul.f32 %v2604_v44, %v5791_v0  ;;  %v2609_v39 = vadd.f32 0.5, %v2608_v12  ;;  %v5985_v0 = vld [vmem:[#allocation10 + $0x88] ss:$16 sps:$4 sm:$0xff]   ;;  %7104 = vst [vmem:[#allocation78_spill] sm:$0xff] %v6013_v38  ;;  %7105 = vst [vmem:[#allocation79_spill] sm:$0xff] %v6016_v56 }
 0xd56   :  { %7095 = vst [vmem:[#allocation70_spill] sm:$0xff] %v5985_v0  ;;  %v6019_v44 = vld [vmem:[#allocation10 + $0xe8] ss:$16 sps:$4 sm:$0xff]   ;;  %v6030_v23 = vld [vmem:[#allocation11] ss:$16 sps:$4 sm:$0xff]  }
 0xd57   :  { %v5963_v49 = vadd.f32 %v2611_v48, %v2610_v14  ;;  %7106 = vst [vmem:[#allocation80_spill] sm:$0xff] %v6019_v44  ;;  %v6022_v48 = vld [vmem:[#allocation11 + $0x4] ss:$16 sps:$4 sm:$0xff]   ;;  %v6025_v14 = vld [vmem:[#allocation11 + $0xc] ss:$16 sps:$4 sm:$0xff]   ;;  %7109 = vst [vmem:[#allocation83_spill] sm:$0xff] %v6030_v23 }
 0xd58   :  { %7107 = vst [vmem:[#allocation81_spill] sm:$0xff] %v6022_v48  ;;  %7108 = vst [vmem:[#allocation82_spill] sm:$0xff] %v6025_v14  ;;  %v6033_v12 = vld [vmem:[#allocation11 + $0x8] ss:$16 sps:$4 sm:$0xff]  }
 0xd59   :  { %3817 = vtanh.f32 %v5963_v49  ;;  %7110 = vst [vmem:[#allocation84_spill] sm:$0xff] %v6033_v12 }
 0xd63   :  { %v3818_v52 = vpop.eup %3817 }
 0xd64   :  { %v2614_v43 = vmul.f32 %v3818_v52, %v2609_v39  ;;  %v6036_v39 = vld [vmem:[#allocation11 + $0x24] ss:$16 sps:$4 sm:$0xff]   ;;  %v6039_v52 = vld [vmem:[#allocation11 + $0x2c] ss:$16 sps:$4 sm:$0xff]  }
 0xd65   :  { %7111 = vst [vmem:[#allocation85_spill] sm:$0xff] %v6036_v39  ;;  %7112 = vst [vmem:[#allocation86_spill] sm:$0xff] %v6039_v52 }
 0xd66   :  { %v2615_v51 = vpack.c.bf16 %v2614_v43, %v2614_v43  ;;  %v6047_v43 = vld [vmem:[#allocation11 + $0x28] ss:$16 sps:$4 sm:$0xff]  }
 0xd67   :  { %7114 = vst [vmem:[#allocation88_spill] sm:$0xff] %v6047_v43 }
 0xd68   :  { %2649 = vmatmul.mubr.bf16.vlgmr.msra.gmra.mrb[72].mxu0 %v2615_v51  ;;  %2690 = vmatmul.mubr.bf16.vlgmr.msra.gmra.mrb[72].mxu1 %v2615_v51  ;;  %v6050_v51 = vld [vmem:[#allocation11 + $0x44] ss:$16 sps:$4 sm:$0xff]  }
 0xd69   :  { %2710 = vmatpush1.bf16.msra.mxu0 %v5794_v3  ;;  %2751 = vmatpush1.bf16.msra.mxu1 %v5797_v19  ;;  %7115 = vst [vmem:[#allocation89_spill] sm:$0xff] %v6050_v51 }
 0xd6a   :  { %2711 = vmatprep.subr.bf16.mxu0 %v5800_v29  ;;  %2752 = vmatprep.subr.bf16.mxu1 %v5803_v21 }
 0xd6b   :  { %2741 = vmatprep.mubr.bf16.mxu0 %v6731_v60  ;;  %2782 = vmatprep.mubr.bf16.mxu1 %v6731_v60 }
 0xd6d   :  { %2712 = vmatpush1.bf16.msra.mxu0 %v5808_v34  ;;  %2753 = vmatpush1.bf16.msra.mxu1 %v5811_v18 }
 0xd6e   :  { %2713 = vmatprep.subr.bf16.mxu0 %v5814_v30  ;;  %2754 = vmatprep.subr.bf16.mxu1 %v5817_v10 }
 0xd71   :  { %2714 = vmatpush1.bf16.msra.mxu0 %v5820_v55  ;;  %2755 = vmatpush1.bf16.msra.mxu1 %v5823_v7 }
 0xd72   :  { %2715 = vmatprep.subr.bf16.mxu0 %v5826_v32  ;;  %2756 = vmatprep.subr.bf16.mxu1 %v5829_v11 }
 0xd75   :  { %2716 = vmatpush1.bf16.msra.mxu0 %v5832_v24  ;;  %2757 = vmatpush1.bf16.msra.mxu1 %v5835_v57 }
 0xd76   :  { %2717 = vmatprep.subr.bf16.mxu0 %v5838_v15  ;;  %2758 = vmatprep.subr.bf16.mxu1 %v5841_v59 }
 0xd79   :  { %2718 = vmatpush1.bf16.msra.mxu0 %v5844_v2  ;;  %2759 = vmatpush1.bf16.msra.mxu1 %v5985_v0 }
 0xd7a   :  { %2719 = vmatprep.subr.bf16.mxu0 %v5848_v27  ;;  %2760 = vmatprep.subr.bf16.mxu1 %v5989_v1 }
 0xd7d   :  { %2720 = vmatpush1.bf16.msra.mxu0 %v5992_v13  ;;  %2761 = vmatpush1.bf16.msra.mxu1 %v5995_v47 }
 0xd7e   :  { %2721 = vmatprep.subr.bf16.mxu0 %v5998_v22  ;;  %2762 = vmatprep.subr.bf16.mxu1 %v6001_v42 }
 0xd81   :  { %2722 = vmatpush1.bf16.msra.mxu0 %v6004_v37  ;;  %2763 = vmatpush1.bf16.msra.mxu1 %v6007_v16 }
 0xd82   :  { %2723 = vmatprep.subr.bf16.mxu0 %v6010_v63  ;;  %2764 = vmatprep.subr.bf16.mxu1 %v6013_v38  ;;  %v2700_v38 = vld [vmem:[#allocation2 + $0x68] sm:$0xff] }
 0xd83   :  { %v2703_v63 = vunpack.c.l.bf16 %v2700_v38  ;;  %v2704_v13 = vunpack.c.h.bf16 %v2700_v38 }
 0xd85   :  { %2724 = vmatpush1.bf16.msra.mxu0 %v6016_v56  ;;  %2765 = vmatpush1.bf16.msra.mxu1 %v6019_v44  ;;  %v2699_v44 = vld [vmem:[#allocation2 + $0x60] sm:$0xff]  ;;  %v2707_v22 = vadd.f32 %v2703_v63, %v7067_v53 }
 0xd86   :  { %2814 = vmatprep.subr.bf16.mxu0 %v6022_v48  ;;  %2855 = vmatprep.subr.bf16.mxu1 %v6025_v14  ;;  %v2701_v56 = vunpack.c.l.bf16 %v2699_v44 }
 0xd88   :  { %2742 = vmatmul.mubr.bf16.vlgmr.msra.gmra.mrb[76].mxu0 %v5916_v58  ;;  %2783 = vmatmul.mubr.bf16.vlgmr.msra.gmra.mrb[76].mxu1 %v5916_v58  ;;  %v6044_v58 = vld [vmem:[#allocation11 + $0x20] ss:$16 sps:$4 sm:$0xff]  }
 0xd89   :  { %2815 = vmatpush1.bf16.msra.mxu0 %v6030_v23  ;;  %2856 = vmatpush1.bf16.msra.mxu1 %v6033_v12  ;;  %7113 = vst [vmem:[#allocation87_spill] sm:$0xff] %v6044_v58  ;;  %v6059_v12 = vld [vmem:[#allocation11 + $0x48] ss:$16 sps:$4 sm:$0xff]  }
 0xd8a   :  { %2816 = vmatprep.subr.bf16.mxu0 %v6036_v39  ;;  %2857 = vmatprep.subr.bf16.mxu1 %v6039_v52  ;;  %v6053_v39 = vld [vmem:[#allocation11 + $0x4c] ss:$16 sps:$4 sm:$0xff]   ;;  %v6056_v52 = vld [vmem:[#allocation11 + $0x40] ss:$16 sps:$4 sm:$0xff]   ;;  %7118 = vst [vmem:[#allocation35_spill] sm:$0xff] %v6059_v12 }
 0xd8b   :  { %2846 = vmatprep.mubr.bf16.mxu0 %v6731_v60  ;;  %2887 = vmatprep.mubr.bf16.mxu1 %v6731_v60  ;;  %7116 = vst [vmem:[#allocation32_spill] sm:$0xff] %v6053_v39  ;;  %7117 = vst [vmem:[#allocation31_spill] sm:$0xff] %v6056_v52 }
 0xd8d   :  { %2817 = vmatpush1.bf16.msra.mxu0 %v6044_v58  ;;  %2858 = vmatpush1.bf16.msra.mxu1 %v6047_v43  ;;  %v6062_v58 = vld [vmem:[#allocation11 + $0x64] ss:$16 sps:$4 sm:$0xff]   ;;  %v6065_v43 = vld [vmem:[#allocation11 + $0x6c] ss:$16 sps:$4 sm:$0xff]  }
 0xd8e   :  { %2818 = vmatprep.subr.bf16.mxu0 %v6050_v51  ;;  %2859 = vmatprep.subr.bf16.mxu1 %v6053_v39  ;;  %7119 = vst [vmem:[#allocation33_spill] sm:$0xff] %v6062_v58  ;;  %7120 = vst [vmem:[#allocation36_spill] sm:$0xff] %v6065_v43  ;;  %v6068_v51 = vld [vmem:[#allocation11 + $0x60] ss:$16 sps:$4 sm:$0xff]   ;;  %v6071_v39 = vld [vmem:[#allocation11 + $0x68] ss:$16 sps:$4 sm:$0xff]  }
 0xd8f   :  { %7121 = vst [vmem:[#allocation34_spill] sm:$0xff] %v6068_v51  ;;  %7122 = vst [vmem:[#allocation39_spill] sm:$0xff] %v6071_v39 }
 0xd91   :  { %2819 = vmatpush1.bf16.msra.mxu0 %v6056_v52  ;;  %2860 = vmatpush1.bf16.msra.mxu1 %v6059_v12  ;;  %v6074_v52 = vld [vmem:[#allocation11 + $0x84] ss:$16 sps:$4 sm:$0xff]   ;;  %v6077_v12 = vld [vmem:[#allocation11 + $0x8c] ss:$16 sps:$4 sm:$0xff]  }
 0xd92   :  { %2820 = vmatprep.subr.bf16.mxu0 %v6062_v58  ;;  %2861 = vmatprep.subr.bf16.mxu1 %v6065_v43  ;;  %7123 = vst [vmem:[#allocation37_spill] sm:$0xff] %v6074_v52  ;;  %7124 = vst [vmem:[#allocation41_spill] sm:$0xff] %v6077_v12  ;;  %v6080_v58 = vld [vmem:[#allocation11 + $0x80] ss:$16 sps:$4 sm:$0xff]   ;;  %v6083_v43 = vld [vmem:[#allocation11 + $0x88] ss:$16 sps:$4 sm:$0xff]  }
 0xd93   :  { %7125 = vst [vmem:[#allocation93_spill] sm:$0xff] %v6080_v58  ;;  %7126 = vst [vmem:[#allocation94_spill] sm:$0xff] %v6083_v43 }
 0xd95   :  { %2821 = vmatpush1.bf16.msra.mxu0 %v6068_v51  ;;  %2862 = vmatpush1.bf16.msra.mxu1 %v6071_v39  ;;  %v6086_v51 = vld [vmem:[#allocation11 + $0xa4] ss:$16 sps:$4 sm:$0xff]   ;;  %v6089_v39 = vld [vmem:[#allocation11 + $0xac] ss:$16 sps:$4 sm:$0xff]  }
 0xd96   :  { %2822 = vmatprep.subr.bf16.mxu0 %v6074_v52  ;;  %2863 = vmatprep.subr.bf16.mxu1 %v6077_v12  ;;  %7127 = vst [vmem:[#allocation95_spill] sm:$0xff] %v6086_v51  ;;  %7128 = vst [vmem:[#allocation96_spill] sm:$0xff] %v6089_v39  ;;  %v6092_v52 = vld [vmem:[#allocation11 + $0xa0] ss:$16 sps:$4 sm:$0xff]   ;;  %v6095_v12 = vld [vmem:[#allocation11 + $0xa8] ss:$16 sps:$4 sm:$0xff]  }
 0xd97   :  { %7129 = vst [vmem:[#allocation97_spill] sm:$0xff] %v6092_v52  ;;  %7130 = vst [vmem:[#allocation38_spill] sm:$0xff] %v6095_v12 }
 0xd99   :  { %2823 = vmatpush1.bf16.msra.mxu0 %v6080_v58  ;;  %2864 = vmatpush1.bf16.msra.mxu1 %v6083_v43  ;;  %v6098_v58 = vld [vmem:[#allocation11 + $0xc4] ss:$16 sps:$4 sm:$0xff]   ;;  %v6101_v43 = vld [vmem:[#allocation11 + $0xcc] ss:$16 sps:$4 sm:$0xff]  }
 0xd9a   :  { %2824 = vmatprep.subr.bf16.mxu0 %v6086_v51  ;;  %2865 = vmatprep.subr.bf16.mxu1 %v6089_v39  ;;  %7131 = vst [vmem:[#allocation42_spill] sm:$0xff] %v6098_v58  ;;  %7132 = vst [vmem:[#allocation40_spill] sm:$0xff] %v6101_v43  ;;  %v6104_v51 = vld [vmem:[#allocation11 + $0xc0] ss:$16 sps:$4 sm:$0xff]   ;;  %v6107_v39 = vld [vmem:[#allocation11 + $0xc8] ss:$16 sps:$4 sm:$0xff]  }
 0xd9b   :  { %7133 = vst [vmem:[#allocation44_spill] sm:$0xff] %v6104_v51  ;;  %7134 = vst [vmem:[#allocation43_spill] sm:$0xff] %v6107_v39 }
 0xd9d   :  { %2825 = vmatpush1.bf16.msra.mxu0 %v6092_v52  ;;  %2866 = vmatpush1.bf16.msra.mxu1 %v6095_v12  ;;  %v6110_v52 = vld [vmem:[#allocation11 + $0xe4] ss:$16 sps:$4 sm:$0xff]   ;;  %v6113_v12 = vld [vmem:[#allocation11 + $0xec] ss:$16 sps:$4 sm:$0xff]  }
 0xd9e   :  { %2826 = vmatprep.subr.bf16.mxu0 %v6098_v58  ;;  %2867 = vmatprep.subr.bf16.mxu1 %v6101_v43  ;;  %7135 = vst [vmem:[#allocation46_spill] sm:$0xff] %v6110_v52  ;;  %7136 = vst [vmem:[#allocation45_spill] sm:$0xff] %v6113_v12  ;;  %v6116_v58 = vld [vmem:[#allocation11 + $0xe0] ss:$16 sps:$4 sm:$0xff]   ;;  %v6119_v43 = vld [vmem:[#allocation11 + $0xe8] ss:$16 sps:$4 sm:$0xff]  }
 0xd9f   :  { %7137 = vst [vmem:[#allocation48_spill] sm:$0xff] %v6116_v58  ;;  %7138 = vst [vmem:[#allocation47_spill] sm:$0xff] %v6119_v43 }
 0xda1   :  { %2827 = vmatpush1.bf16.msra.mxu0 %v6104_v51  ;;  %2868 = vmatpush1.bf16.msra.mxu1 %v6107_v39 }
 0xda2   :  { %2828 = vmatprep.subr.bf16.mxu0 %v6110_v52  ;;  %2869 = vmatprep.subr.bf16.mxu1 %v6113_v12 }
 0xda5   :  { %2829 = vmatpush1.bf16.msra.mxu0 %v6116_v58  ;;  %2870 = vmatpush1.bf16.msra.mxu1 %v6119_v43  ;;  %v2702_v43 = vunpack.c.h.bf16 %v2699_v44 }
 0xda6   :  { %2919 = vmatprep.subr.bf16.mxu0 %v7064_v41  ;;  %2960 = vmatprep.subr.bf16.mxu1 %v7065_v6  ;;  %v2705_v41 = vadd.f32 %v2701_v56, %v7066_v31  ;;  %v2708_v31 = vadd.f32 %v2704_v13, %v4919_v4 }
 0xda7   :  { %v2706_v6 = vadd.f32 %v2702_v43, %v6833_v46 }
 0xe3b   :  { %v6124_v39 = vpop.f32.mrb[72].mxu0  ;;  %v6126_v51 = vpop.f32.mrb[72].mxu1 }
 0xe3c   :  { %v6128_v52 = vpop.f32.mrb[73].mxu0  ;;  %v6130_v23 = vpop.f32.mrb[73].mxu1 }
 0xe3d   :  { %v2654_v12 = vpop.f32.mrb[74].mxu0  ;;  %v2695_v14 = vpop.f32.mrb[74].mxu1 }
 0xe3e   :  { %v2655_v48 = vpop.f32.mrb[75].mxu0  ;;  %v2696_v58 = vpop.f32.mrb[75].mxu1 }
 0xe5b   :  { %v2743_v16 = vpop.f32.mrb[76].mxu0  ;;  %v2784_v37 = vpop.f32.mrb[76].mxu1 }
 0xe5c   :  { %v2791_v42 = vadd.f32 %v2743_v16, %v2705_v41  ;;  %v2745_v47 = vpop.f32.mrb[77].mxu0  ;;  %v2786_v12 = vpop.f32.mrb[77].mxu1  ;;  %v2793_v56 = vadd.f32 %v2784_v37, %v2707_v22 }
 0xe5d   :  { %v2792_v14 = vadd.f32 %v2745_v47, %v2706_v6  ;;  %v2747_v48 = vpop.f32.mrb[78].mxu0  ;;  %v2788_v58 = vpop.f32.mrb[78].mxu1  ;;  %v2794_v43 = vadd.f32 %v2786_v12, %v2708_v31 }
 0xe5e   :  { %v2795_v1 = vmul.f32 0.5, %v2791_v42  ;;  %v2748_v27 = vpop.f32.mrb[79].mxu0  ;;  %v2789_v0 = vpop.f32.mrb[79].mxu1  ;;  %v7154_v58 = vld [vmem:[#allocation64_spill] sm:$0xff] }
 0xe5f   :  { %v2799_v44 = vmul.f32 0.5, %v2792_v14  ;;  %v2804_v16 = vmul.f32 0.5, %v2794_v43  ;;  %v7153_v14 = vld [vmem:[#allocation63_spill] sm:$0xff] }
 0xe60   :  { %3819 = vtanh.f32 %v2795_v1  ;;  %v7157_v43 = vld [vmem:[#allocation67_spill] sm:$0xff] }
 0xe61   :  { %3821 = vtanh.f32 %v2799_v44  ;;  %v7155_v44 = vld [vmem:[#allocation65_spill] sm:$0xff] }
 0xe62   :  { %3823 = vtanh.f32 %v2793_v56  ;;  %v7156_v56 = vld [vmem:[#allocation66_spill] sm:$0xff] }
 0xe63   :  { %3825 = vtanh.f32 %v2804_v16  ;;  %v7158_v16 = vld [vmem:[#allocation68_spill] sm:$0xff] }
 0xe6a   :  { %v3820_v41 = vpop.eup %3819 }
 0xe6b   :  { %v3822_v63 = vpop.eup %3821  ;;  %v2797_v53 = vmul.f32 0.5, %v3820_v41 }
 0xe6c   :  { %v2801_v38 = vmul.f32 0.5, %v3822_v63  ;;  %v3824_v6 = vpop.eup %3823 }
 0xe6d   :  { %v2798_v47 = vadd.f32 0.5, %v2797_v53  ;;  %v3826_v1 = vpop.eup %3825  ;;  %v7144_v53 = vld [vmem:[#allocation53_spill] sm:$0xff] }
 0xe6e   :  { %v2802_v48 = vadd.f32 0.5, %v2801_v38  ;;  %v2806_v13 = vmul.f32 0.5, %v3826_v1 }
 0xe6f   :  { %v2809_v42 = vmul.f32 %v3824_v6, %v2798_v47 }
 0xe70   :  { %v2808_v27 = vmul.f32 %v2802_v48, %v5913_v50  ;;  %v2807_v22 = vadd.f32 0.5, %v2806_v13  ;;  %v7145_v50 = vld [vmem:[#allocation56_spill] sm:$0xff] }
 0xe72   :  { %v6137_v0 = vadd.f32 %v2809_v42, %v2808_v27 }
 0xe74   :  { %3827 = vtanh.f32 %v6137_v0 }
 0xe7e   :  { %v3828_v31 = vpop.eup %3827 }
 0xe7f   :  { %v2812_v37 = vmul.f32 %v3828_v31, %v2807_v22 }
 0xe81   :  { %v6140_v12 = vpack.c.bf16 %v2812_v37, %v2812_v37 }
 0xe83   :  { %2847 = vmatmul.mubr.bf16.vlgmr.msra.gmra.mrb[80].mxu0 %v6140_v12  ;;  %2888 = vmatmul.mubr.bf16.vlgmr.msra.gmra.mrb[80].mxu1 %v6140_v12 }
 0xe84   :  { %2920 = vmatpush1.bf16.msra.mxu0 %v5684_v61  ;;  %2961 = vmatpush1.bf16.msra.mxu1 %v5687_v62  ;;  %v7139_v61 = vld [vmem:[#allocation50_spill] sm:$0xff]  ;;  %v7140_v62 = vld [vmem:[#allocation49_spill] sm:$0xff] }
 0xe85   :  { %2921 = vmatprep.subr.bf16.mxu0 %v5690_v17  ;;  %2962 = vmatprep.subr.bf16.mxu1 %v5693_v35  ;;  %v7141_v17 = vld [vmem:[#allocation52_spill] sm:$0xff]  ;;  %v7142_v35 = vld [vmem:[#allocation51_spill] sm:$0xff] }
 0xe86   :  { %2951 = vmatprep.mubr.bf16.mxu0 %v6731_v60  ;;  %2992 = vmatprep.mubr.bf16.mxu1 %v6731_v60 }
 0xe88   :  { %2922 = vmatpush1.bf16.msra.mxu0 %v5698_v36  ;;  %2963 = vmatpush1.bf16.msra.mxu1 %v7068_v26  ;;  %v7143_v36 = vld [vmem:[#allocation54_spill] sm:$0xff]  ;;  %v7146_v26 = vld [vmem:[#allocation55_spill] sm:$0xff] }
 0xe89   :  { %2923 = vmatprep.subr.bf16.mxu0 %v7069_v54  ;;  %2964 = vmatprep.subr.bf16.mxu1 %v7070_v45  ;;  %v7147_v54 = vld [vmem:[#allocation57_spill] sm:$0xff]  ;;  %v7148_v45 = vld [vmem:[#allocation58_spill] sm:$0xff] }
 0xe8c   :  { %2924 = vmatpush1.bf16.msra.mxu0 %v7071_v40  ;;  %2965 = vmatpush1.bf16.msra.mxu1 %v7072_v8  ;;  %v7149_v40 = vld [vmem:[#allocation59_spill] sm:$0xff]  ;;  %v7150_v8 = vld [vmem:[#allocation61_spill] sm:$0xff] }
 0xe8d   :  { %2925 = vmatprep.subr.bf16.mxu0 %v7073_v33  ;;  %2966 = vmatprep.subr.bf16.mxu1 %v7074_v25  ;;  %v7151_v33 = vld [vmem:[#allocation60_spill] sm:$0xff]  ;;  %v7152_v25 = vld [vmem:[#allocation62_spill] sm:$0xff] }
 0xe90   :  { %2926 = vmatpush1.bf16.msra.mxu0 %v7139_v61  ;;  %2967 = vmatpush1.bf16.msra.mxu1 %v7140_v62 }
 0xe91   :  { %2927 = vmatprep.subr.bf16.mxu0 %v7141_v17  ;;  %2968 = vmatprep.subr.bf16.mxu1 %v7142_v35 }
 0xe94   :  { %2928 = vmatpush1.bf16.msra.mxu0 %v7143_v36  ;;  %2969 = vmatpush1.bf16.msra.mxu1 %v7144_v53 }
 0xe95   :  { %2929 = vmatprep.subr.bf16.mxu0 %v7145_v50  ;;  %2970 = vmatprep.subr.bf16.mxu1 %v7146_v26 }
 0xe98   :  { %2930 = vmatpush1.bf16.msra.mxu0 %v7147_v54  ;;  %2971 = vmatpush1.bf16.msra.mxu1 %v7148_v45 }
 0xe99   :  { %2931 = vmatprep.subr.bf16.mxu0 %v7149_v40  ;;  %2972 = vmatprep.subr.bf16.mxu1 %v7150_v8 }
 0xe9c   :  { %2932 = vmatpush1.bf16.msra.mxu0 %v7151_v33  ;;  %2973 = vmatpush1.bf16.msra.mxu1 %v7152_v25 }
 0xe9d   :  { %2933 = vmatprep.subr.bf16.mxu0 %v7153_v14  ;;  %2974 = vmatprep.subr.bf16.mxu1 %v7154_v58 }
 0xea0   :  { %2934 = vmatpush1.bf16.msra.mxu0 %v7155_v44  ;;  %2975 = vmatpush1.bf16.msra.mxu1 %v7156_v56 }
 0xea1   :  { %3012 = vmatprep.subr.bf16.mxu0 %v7157_v43  ;;  %3053 = vmatprep.subr.bf16.mxu1 %v7158_v16  ;;  %v7177_v43 = vld [vmem:[#allocation86_spill] sm:$0xff]  ;;  %v7178_v16 = vld [vmem:[#allocation87_spill] sm:$0xff] }
 0xf56   :  { %v2848_v41 = vpop.f32.mrb[80].mxu0  ;;  %v2889_v63 = vpop.f32.mrb[80].mxu1 }
 0xf57   :  { %v2849_v38 = vadd.f32 %v2848_v41, %v6124_v39  ;;  %v2890_v47 = vadd.f32 %v2889_v63, %v6126_v51  ;;  %v2850_v6 = vpop.f32.mrb[81].mxu0  ;;  %v2891_v48 = vpop.f32.mrb[81].mxu1  ;;  %v7179_v41 = vld [vmem:[#allocation88_spill] sm:$0xff]  ;;  %v7180_v63 = vld [vmem:[#allocation89_spill] sm:$0xff] }
 0xf58   :  { %v2851_v42 = vadd.f32 %v2850_v6, %v6128_v52  ;;  %v2892_v27 = vadd.f32 %v2891_v48, %v6130_v23  ;;  %v2852_v1 = vpop.f32.mrb[82].mxu0  ;;  %v2893_v13 = vpop.f32.mrb[82].mxu1  ;;  %v7184_v6 = vld [vmem:[#allocation33_spill] sm:$0xff]  ;;  %v7185_v48 = vld [vmem:[#allocation36_spill] sm:$0xff] }
 0xf59   :  { %v2896_v22 = vadd.f32 %v2849_v38, %v4965_v5  ;;  %v2853_v31 = vpop.f32.mrb[83].mxu0  ;;  %v2894_v37 = vpop.f32.mrb[83].mxu1  ;;  %v2898_v39 = vadd.f32 %v2890_v47, %v4978_v20  ;;  %v7181_v38 = vld [vmem:[#allocation32_spill] sm:$0xff]  ;;  %v7183_v47 = vld [vmem:[#allocation35_spill] sm:$0xff]  ;;  %v7189_v1 = vld [vmem:[#allocation41_spill] sm:$0xff] }
 0xf5a   :  { %v2897_v61 = vadd.f32 %v2851_v42, %v4969_v9  ;;  %v2899_v51 = vadd.f32 %v2892_v27, %v4984_v28  ;;  %v7186_v42 = vld [vmem:[#allocation34_spill] sm:$0xff]  ;;  %v7187_v27 = vld [vmem:[#allocation39_spill] sm:$0xff]  ;;  %v7190_v13 = vld [vmem:[#allocation93_spill] sm:$0xff] }
 0xf5b   :  { %v2900_v62 = vmul.f32 0.5, %v2896_v22  ;;  %v7191_v22 = vld [vmem:[#allocation94_spill] sm:$0xff]  ;;  %v7192_v31 = vld [vmem:[#allocation95_spill] sm:$0xff]  ;;  %v7193_v37 = vld [vmem:[#allocation96_spill] sm:$0xff] }
 0xf5c   :  { %v2904_v17 = vmul.f32 0.5, %v2897_v61  ;;  %v2909_v52 = vmul.f32 0.5, %v2899_v51  ;;  %v7194_v61 = vld [vmem:[#allocation97_spill] sm:$0xff]  ;;  %v7198_v51 = vld [vmem:[#allocation44_spill] sm:$0xff] }
 0xf5d   :  { %3829 = vtanh.f32 %v2900_v62  ;;  %v7195_v62 = vld [vmem:[#allocation38_spill] sm:$0xff] }
 0xf5e   :  { %3831 = vtanh.f32 %v2904_v17  ;;  %v7196_v17 = vld [vmem:[#allocation42_spill] sm:$0xff] }
 0xf5f   :  { %3833 = vtanh.f32 %v2898_v39  ;;  %v7197_v39 = vld [vmem:[#allocation40_spill] sm:$0xff] }
 0xf60   :  { %3835 = vtanh.f32 %v2909_v52  ;;  %v7199_v52 = vld [vmem:[#allocation43_spill] sm:$0xff] }
 0xf67   :  { %v3830_v35 = vpop.eup %3829 }
 0xf68   :  { %v3832_v23 = vpop.eup %3831  ;;  %v2902_v36 = vmul.f32 0.5, %v3830_v35  ;;  %v7200_v35 = vld [vmem:[#allocation46_spill] sm:$0xff] }
 0xf69   :  { %v2906_v53 = vmul.f32 0.5, %v3832_v23  ;;  %v3834_v26 = vpop.eup %3833  ;;  %v7201_v23 = vld [vmem:[#allocation45_spill] sm:$0xff] }
 0xf6a   :  { %v2903_v50 = vadd.f32 0.5, %v2902_v36  ;;  %v3836_v33 = vpop.eup %3835  ;;  %v7202_v36 = vld [vmem:[#allocation48_spill] sm:$0xff] }
 0xf6b   :  { %v2907_v54 = vadd.f32 0.5, %v2906_v53  ;;  %v2911_v25 = vmul.f32 0.5, %v3836_v33  ;;  %v7203_v53 = vld [vmem:[#allocation47_spill] sm:$0xff] }
 0xf6c   :  { %v2914_v45 = vmul.f32 %v3834_v26, %v2903_v50 }
 0xf6d   :  { %v2913_v40 = vmul.f32 %v2907_v54, %v5963_v49  ;;  %v2912_v14 = vadd.f32 0.5, %v2911_v25  ;;  %v7176_v49 = vld [vmem:[#allocation85_spill] sm:$0xff] }
 0xf6f   :  { %v6187_v8 = vadd.f32 %v2914_v45, %v2913_v40 }
 0xf71   :  { %3837 = vtanh.f32 %v6187_v8 }
 0xf7b   :  { %v3838_v58 = vpop.eup %3837 }
 0xf7c   :  { %v2917_v44 = vmul.f32 %v3838_v58, %v2912_v14  ;;  %v3002_v58 = vld [vmem:[#allocation2 + $0x70] sm:$0xff] }
 0xf7e   :  { %v2918_v56 = vpack.c.bf16 %v2917_v44, %v2917_v44  ;;  %v3004_v44 = vunpack.c.l.bf16 %v3002_v58 }
 0xf80   :  { %2952 = vmatmul.mubr.bf16.vlgmr.msra.gmra.mrb[84].mxu0 %v2918_v56  ;;  %2993 = vmatmul.mubr.bf16.vlgmr.msra.gmra.mrb[84].mxu1 %v2918_v56  ;;  %v3003_v56 = vld [vmem:[#allocation2 + $0x78] sm:$0xff] }
 0xf81   :  { %3013 = vmatpush1.bf16.msra.mxu0 %v5794_v3  ;;  %3054 = vmatpush1.bf16.msra.mxu1 %v5797_v19  ;;  %v7159_v3 = vld [vmem:[#allocation70_spill] sm:$0xff]  ;;  %v7160_v19 = vld [vmem:[#allocation69_spill] sm:$0xff] }
 0xf82   :  { %3014 = vmatprep.subr.bf16.mxu0 %v5800_v29  ;;  %3055 = vmatprep.subr.bf16.mxu1 %v5803_v21  ;;  %v7161_v29 = vld [vmem:[#allocation71_spill] sm:$0xff]  ;;  %v7162_v21 = vld [vmem:[#allocation72_spill] sm:$0xff] }
 0xf83   :  { %3044 = vmatprep.mubr.bf16.mxu0 %v6731_v60  ;;  %3085 = vmatprep.mubr.bf16.mxu1 %v6731_v60 }
 0xf85   :  { %3015 = vmatpush1.bf16.msra.mxu0 %v5808_v34  ;;  %3056 = vmatpush1.bf16.msra.mxu1 %v5811_v18  ;;  %v7163_v34 = vld [vmem:[#allocation73_spill] sm:$0xff]  ;;  %v7164_v18 = vld [vmem:[#allocation74_spill] sm:$0xff] }
 0xf86   :  { %3016 = vmatprep.subr.bf16.mxu0 %v5814_v30  ;;  %3057 = vmatprep.subr.bf16.mxu1 %v5817_v10  ;;  %v7165_v30 = vld [vmem:[#allocation91_spill] sm:$0xff] }
 0xf87   :  { %v7166_v10 = vld [vmem:[#allocation75_spill] sm:$0xff] }
 0xf89   :  { %3017 = vmatpush1.bf16.msra.mxu0 %v5820_v55  ;;  %3058 = vmatpush1.bf16.msra.mxu1 %v5823_v7  ;;  %v7167_v55 = vld [vmem:[#allocation76_spill] sm:$0xff]  ;;  %v7168_v7 = vld [vmem:[#allocation77_spill] sm:$0xff] }
 0xf8a   :  { %3018 = vmatprep.subr.bf16.mxu0 %v5826_v32  ;;  %3059 = vmatprep.subr.bf16.mxu1 %v5829_v11  ;;  %v7169_v32 = vld [vmem:[#allocation78_spill] sm:$0xff]  ;;  %v7170_v11 = vld [vmem:[#allocation79_spill] sm:$0xff] }
 0xf8d   :  { %3019 = vmatpush1.bf16.msra.mxu0 %v5832_v24  ;;  %3060 = vmatpush1.bf16.msra.mxu1 %v5835_v57  ;;  %v7171_v24 = vld [vmem:[#allocation80_spill] sm:$0xff]  ;;  %v7172_v57 = vld [vmem:[#allocation81_spill] sm:$0xff] }
 0xf8e   :  { %3020 = vmatprep.subr.bf16.mxu0 %v5838_v15  ;;  %3061 = vmatprep.subr.bf16.mxu1 %v5841_v59  ;;  %v7173_v15 = vld [vmem:[#allocation82_spill] sm:$0xff]  ;;  %v7174_v59 = vld [vmem:[#allocation83_spill] sm:$0xff] }
 0xf91   :  { %3021 = vmatpush1.bf16.msra.mxu0 %v5844_v2  ;;  %3062 = vmatpush1.bf16.msra.mxu1 %v7159_v3  ;;  %v7175_v2 = vld [vmem:[#allocation84_spill] sm:$0xff]  ;;  %v3005_v3 = vunpack.c.h.bf16 %v3002_v58 }
 0xf92   :  { %3022 = vmatprep.subr.bf16.mxu0 %v7160_v19  ;;  %3063 = vmatprep.subr.bf16.mxu1 %v7161_v29  ;;  %v7204_v19 = vld [vmem:[#allocation90_spill] sm:$0xff] }
 0xf93   :  { %v3008_v29 = vadd.f32 %v3004_v44, %v7204_v19 }
 0xf95   :  { %3023 = vmatpush1.bf16.msra.mxu0 %v7162_v21  ;;  %3064 = vmatpush1.bf16.msra.mxu1 %v7163_v34  ;;  %v3006_v21 = vunpack.c.l.bf16 %v3003_v56  ;;  %v3009_v34 = vadd.f32 %v3005_v3, %v6833_v46 }
 0xf96   :  { %3024 = vmatprep.subr.bf16.mxu0 %v7164_v18  ;;  %3065 = vmatprep.subr.bf16.mxu1 %v7165_v30 }
 0xf99   :  { %3025 = vmatpush1.bf16.msra.mxu0 %v7166_v10  ;;  %3066 = vmatpush1.bf16.msra.mxu1 %v7167_v55  ;;  %v7205_v55 = vld [vmem:[#allocation92_spill] sm:$0xff] }
 0xf9a   :  { %3026 = vmatprep.subr.bf16.mxu0 %v7168_v7  ;;  %3067 = vmatprep.subr.bf16.mxu1 %v7169_v32  ;;  %v3010_v7 = vadd.f32 %v3006_v21, %v7205_v55 }
 0xf9d   :  { %3027 = vmatpush1.bf16.msra.mxu0 %v7170_v11  ;;  %3068 = vmatpush1.bf16.msra.mxu1 %v7171_v24  ;;  %v3007_v11 = vunpack.c.h.bf16 %v3003_v56 }
 0xf9e   :  { %3117 = vmatprep.subr.bf16.mxu0 %v7172_v57  ;;  %3158 = vmatprep.subr.bf16.mxu1 %v7173_v15 }
 0xfa0   :  { %3045 = vmatmul.mubr.bf16.vlgmr.msra.gmra.mrb[88].mxu0 %v6140_v12  ;;  %3086 = vmatmul.mubr.bf16.vlgmr.msra.gmra.mrb[88].mxu1 %v6140_v12  ;;  %v7182_v12 = vld [vmem:[#allocation31_spill] sm:$0xff] }
 0xfa1   :  { %3118 = vmatpush1.bf16.msra.mxu0 %v7174_v59  ;;  %3159 = vmatpush1.bf16.msra.mxu1 %v7175_v2 }
 0xfa2   :  { %3119 = vmatprep.subr.bf16.mxu0 %v7176_v49  ;;  %3160 = vmatprep.subr.bf16.mxu1 %v7177_v43 }
 0xfa3   :  { %3149 = vmatprep.mubr.bf16.mxu0 %v6731_v60  ;;  %3190 = vmatprep.mubr.bf16.mxu1 %v6731_v60  ;;  %v7188_v60 = vld [vmem:[#allocation37_spill] sm:$0xff] }
 0xfa5   :  { %3120 = vmatpush1.bf16.msra.mxu0 %v7178_v16  ;;  %3161 = vmatpush1.bf16.msra.mxu1 %v7179_v41 }
 0xfa6   :  { %3121 = vmatprep.subr.bf16.mxu0 %v7180_v63  ;;  %3162 = vmatprep.subr.bf16.mxu1 %v7181_v38  ;;  %v3011_v63 = vadd.f32 %v3007_v11, %v4919_v4 }
 0xfa9   :  { %3122 = vmatpush1.bf16.msra.mxu0 %v7182_v12  ;;  %3163 = vmatpush1.bf16.msra.mxu1 %v7183_v47 }
 0xfaa   :  { %3123 = vmatprep.subr.bf16.mxu0 %v7184_v6  ;;  %3164 = vmatprep.subr.bf16.mxu1 %v7185_v48 }
 0xfad   :  { %3124 = vmatpush1.bf16.msra.mxu0 %v7186_v42  ;;  %3165 = vmatpush1.bf16.msra.mxu1 %v7187_v27 }
 0xfae   :  { %3125 = vmatprep.subr.bf16.mxu0 %v7188_v60  ;;  %3166 = vmatprep.subr.bf16.mxu1 %v7189_v1 }
 0xfb1   :  { %3126 = vmatpush1.bf16.msra.mxu0 %v7190_v13  ;;  %3167 = vmatpush1.bf16.msra.mxu1 %v7191_v22 }
 0xfb2   :  { %3127 = vmatprep.subr.bf16.mxu0 %v7192_v31  ;;  %3168 = vmatprep.subr.bf16.mxu1 %v7193_v37 }
 0xfb5   :  { %3128 = vmatpush1.bf16.msra.mxu0 %v7194_v61  ;;  %3169 = vmatpush1.bf16.msra.mxu1 %v7195_v62 }
 0xfb6   :  { %3129 = vmatprep.subr.bf16.mxu0 %v7196_v17  ;;  %3170 = vmatprep.subr.bf16.mxu1 %v7197_v39  ;;  %v3691_v39 = vld [vmem:[#allocation16] sm:$0xff]  }
 0xfb9   :  { %3130 = vmatpush1.bf16.msra.mxu0 %v7198_v51  ;;  %3171 = vmatpush1.bf16.msra.mxu1 %v7199_v52  ;;  %v4370_v51 = vmov 0.0   ;;  %v3692_v52 = vld [vmem:[#allocation16 + $0x8] sm:$0xff]  }
 0xfba   :  { %3131 = vmatprep.subr.bf16.mxu0 %v7200_v35  ;;  %3172 = vmatprep.subr.bf16.mxu1 %v7201_v23  ;;  %v3694_v35 = vld [vmem:[#allocation16 + $0x18] sm:$0xff]   ;;  %v3695_v23 = vld [vmem:[#allocation16 + $0x20] sm:$0xff]  }
 0xfbd   :  { %3132 = vmatpush1.bf16.msra.mxu0 %v7202_v36  ;;  %3173 = vmatpush1.bf16.msra.mxu1 %v7203_v53  ;;  %v3696_v36 = vld [vmem:[#allocation16 + $0x28] sm:$0xff]   ;;  %v3697_v53 = vld [vmem:[#allocation16 + $0x30] sm:$0xff]  }
 0xfbe   :  { %3505 = vmatprep.subr.bf16.mxu0 %v4370_v51 }
0x1053   :  { %v6258_v50 = vpop.f32.mrb[84].mxu0  ;;  %v6260_v26 = vpop.f32.mrb[84].mxu1 }
0x1054   :  { %v6262_v54 = vpop.f32.mrb[85].mxu0  ;;  %v6264_v45 = vpop.f32.mrb[85].mxu1 }
0x1055   :  { %v2957_v40 = vpop.f32.mrb[86].mxu0  ;;  %v2998_v33 = vpop.f32.mrb[86].mxu1 }
0x1056   :  { %v2958_v25 = vpop.f32.mrb[87].mxu0  ;;  %v2999_v14 = vpop.f32.mrb[87].mxu1  ;;  %v3698_v40 = vld [vmem:[#allocation16 + $0x38] sm:$0xff]  }
0x1073   :  { %v3046_v18 = vpop.f32.mrb[88].mxu0  ;;  %v3087_v30 = vpop.f32.mrb[88].mxu1 }
0x1074   :  { %v3094_v10 = vadd.f32 %v3046_v18, %v3008_v29  ;;  %v3048_v32 = vpop.f32.mrb[89].mxu0  ;;  %v3089_v24 = vpop.f32.mrb[89].mxu1  ;;  %v3096_v41 = vadd.f32 %v3087_v30, %v3010_v7 }
0x1075   :  { %v3095_v57 = vadd.f32 %v3048_v32, %v3009_v34  ;;  %v3050_v15 = vpop.f32.mrb[90].mxu0  ;;  %v3091_v59 = vpop.f32.mrb[90].mxu1  ;;  %v3097_v46 = vadd.f32 %v3089_v24, %v3011_v63 }
0x1076   :  { %v3098_v2 = vmul.f32 0.5, %v3094_v10  ;;  %v3051_v49 = vpop.f32.mrb[91].mxu0  ;;  %v3092_v43 = vpop.f32.mrb[91].mxu1 }
0x1077   :  { %v3102_v16 = vmul.f32 0.5, %v3095_v57  ;;  %v3107_v38 = vmul.f32 0.5, %v3097_v46 }
0x1078   :  { %3839 = vtanh.f32 %v3098_v2 }
0x1079   :  { %3841 = vtanh.f32 %v3102_v16 }
0x107a   :  { %3843 = vtanh.f32 %v3096_v41 }
0x107b   :  { %3845 = vtanh.f32 %v3107_v38 }
0x1082   :  { %v3840_v12 = vpop.eup %3839 }
0x1083   :  { %v3842_v47 = vpop.eup %3841  ;;  %v3100_v6 = vmul.f32 0.5, %v3840_v12 }
0x1084   :  { %v3104_v48 = vmul.f32 0.5, %v3842_v47  ;;  %v3844_v27 = vpop.eup %3843 }
0x1085   :  { %v3101_v42 = vadd.f32 0.5, %v3100_v6  ;;  %v3846_v31 = vpop.eup %3845 }
0x1086   :  { %v3105_v60 = vadd.f32 0.5, %v3104_v48  ;;  %v3109_v4 = vmul.f32 0.5, %v3846_v31 }
0x1087   :  { %v3112_v1 = vmul.f32 %v3844_v27, %v3101_v42 }
0x1088   :  { %v3111_v13 = vmul.f32 %v3105_v60, %v6137_v0  ;;  %v3110_v37 = vadd.f32 0.5, %v3109_v4  ;;  %v3693_v0 = vld [vmem:[#allocation16 + $0x10] sm:$0xff]  }
0x108a   :  { %v3113_v22 = vadd.f32 %v3112_v1, %v3111_v13 }
0x108c   :  { %3847 = vtanh.f32 %v3113_v22  ;;  %3224 = vst [vmem:[#allocation22] sm:$0xff] %v3113_v22 }
0x1096   :  { %v3848_v61 = vpop.eup %3847 }
0x1097   :  { %v3115_v62 = vmul.f32 %v3848_v61, %v3110_v37 }
0x1099   :  { %3221 = vst [vmem:[#allocation20] sm:$0xff] %v3115_v62  ;;  %v3116_v17 = vpack.c.bf16 %v3115_v62, %v3115_v62 }
0x109b   :  { %3150 = vmatmul.mubr.bf16.vlgmr.msra.gmra.mrb[92].mxu0 %v3116_v17  ;;  %3191 = vmatmul.mubr.bf16.vlgmr.msra.gmra.mrb[92].mxu1 %v3116_v17 }
0x109c   :  { %3506 = vmatpush3.bf16.msra.mxu0 %v3691_v39  ;;  %3521 = vmatprep.mubr.msk.bf16.mxu0 %vm4371_vm0, %v4370_v51 }
0x109d   :  { %3507 = vmatprep.subr.bf16.mxu0 %v4370_v51 }
0x10a0   :  { %3508 = vmatpush3.bf16.msra.mxu0 %v3692_v52 }
0x10a1   :  { %3509 = vmatprep.subr.bf16.mxu0 %v4370_v51 }
0x10a4   :  { %3510 = vmatpush3.bf16.msra.mxu0 %v3693_v0 }
0x10a5   :  { %3511 = vmatprep.subr.bf16.mxu0 %v4370_v51 }
0x10a8   :  { %3512 = vmatpush3.bf16.msra.mxu0 %v3694_v35 }
0x10a9   :  { %3513 = vmatprep.subr.bf16.mxu0 %v4370_v51 }
0x10ac   :  { %3514 = vmatpush3.bf16.msra.mxu0 %v3695_v23 }
0x10ad   :  { %3515 = vmatprep.subr.bf16.mxu0 %v4370_v51 }
0x10b0   :  { %3516 = vmatpush3.bf16.msra.mxu0 %v3696_v36 }
0x10b1   :  { %3517 = vmatprep.subr.bf16.mxu0 %v4370_v51 }
0x10b4   :  { %3518 = vmatpush3.bf16.msra.mxu0 %v3697_v53 }
0x10b5   :  { %3519 = vmatprep.subr.bf16.mxu0 %v4370_v51 }
0x10b8   :  { %3520 = vmatpush3.bf16.msra.mxu0 %v3698_v40 }
0x116e   :  { %v3151_v33 = vpop.f32.mrb[92].mxu0  ;;  %v3192_v25 = vpop.f32.mrb[92].mxu1 }
0x116f   :  { %v3152_v14 = vadd.f32 %v3151_v33, %v6258_v50  ;;  %v3193_v58 = vadd.f32 %v3192_v25, %v6260_v26  ;;  %v3153_v44 = vpop.f32.mrb[93].mxu0  ;;  %v3194_v56 = vpop.f32.mrb[93].mxu1 }
0x1170   :  { %v3154_v3 = vadd.f32 %v3153_v44, %v6262_v54  ;;  %v3195_v19 = vadd.f32 %v3194_v56, %v6264_v45  ;;  %v3155_v29 = vpop.f32.mrb[94].mxu0  ;;  %v3196_v21 = vpop.f32.mrb[94].mxu1 }
0x1171   :  { %v3199_v34 = vadd.f32 %v3152_v14, %v4965_v5  ;;  %v3156_v18 = vpop.f32.mrb[95].mxu0  ;;  %v3197_v30 = vpop.f32.mrb[95].mxu1  ;;  %v3201_v50 = vadd.f32 %v3193_v58, %v4978_v20 }
0x1172   :  { %v3200_v10 = vadd.f32 %v3154_v3, %v4969_v9  ;;  %v3202_v26 = vadd.f32 %v3195_v19, %v4984_v28 }
0x1173   :  { %v3203_v55 = vmul.f32 0.5, %v3199_v34 }
0x1174   :  { %v3207_v7 = vmul.f32 0.5, %v3200_v10  ;;  %v3212_v54 = vmul.f32 0.5, %v3202_v26 }
0x1175   :  { %3849 = vtanh.f32 %v3203_v55 }
0x1176   :  { %3851 = vtanh.f32 %v3207_v7 }
0x1177   :  { %3853 = vtanh.f32 %v3201_v50 }
0x1178   :  { %3855 = vtanh.f32 %v3212_v54 }
0x117f   :  { %v3850_v32 = vpop.eup %3849 }
0x1180   :  { %v3852_v45 = vpop.eup %3851  ;;  %v3205_v11 = vmul.f32 0.5, %v3850_v32 }
0x1181   :  { %v3209_v24 = vmul.f32 0.5, %v3852_v45  ;;  %v3854_v57 = vpop.eup %3853 }
0x1182   :  { %v3206_v5 = vadd.f32 0.5, %v3205_v11  ;;  %v3856_v20 = vpop.eup %3855 }
0x1183   :  { %v3210_v15 = vadd.f32 0.5, %v3209_v24  ;;  %v3214_v49 = vmul.f32 0.5, %v3856_v20 }
0x1184   :  { %v3217_v59 = vmul.f32 %v3854_v57, %v3206_v5 }
0x1185   :  { %v3216_v9 = vmul.f32 %v3210_v15, %v6187_v8  ;;  %v3215_v43 = vadd.f32 0.5, %v3214_v49 }
0x1187   :  { %v3218_v2 = vadd.f32 %v3217_v59, %v3216_v9 }
0x1189   :  { %3857 = vtanh.f32 %v3218_v2  ;;  %3226 = vst [vmem:[#allocation22 + $0x8] sm:$0xff] %v3218_v2 }
0x1193   :  { %v3858_v16 = vpop.eup %3857 }
0x1194   :  { %v3220_v28 = vmul.f32 %v3858_v16, %v3215_v43 }
0x1196   :  { %3223 = vst [vmem:[#allocation20 + $0x8] sm:$0xff] %v3220_v28  ;;  %v3227_v41 = vpack.c.bf16 %v3220_v28, %v3220_v28 }
0x1198   :  { %3522 = vmatmul.mubr.bf16.vlgmr.msra.gmra.mrb[96].mxu0 %v3227_v41 }
0x1199   :  { %4282 = shalt.err (!%p4279_p0)
}
0x119a   :  { %s4283_s5 = scalar_lea.hbm %s6333_s11, 256 }
0x119b   :  { %p4284_p1 = scmp.ne.s32.totalorder %s6333_s11, %s4283_s5  ;;  %p4287_p2 = scmp.lt.u32.totalorder %s4283_s5, %s6333_s11 }
0x119d   :  { %p4289_p3 = pnand %p4287_p2, %p4284_p1 }
0x119f   :  { %4292 = shalt.err (!%p4289_p3)
}
0x11a0   :  { %3361 = dma.vmem_to_hbm [thread:$0]  %s3356_s15, 256, %s6333_s11, [#allocation21], %s4354_s13, %s4354_s13, %s4355_s14  }
0x11a1   :  { %s4373_s30 = smov [#allocation22]  }
0x11a2   :  { %s3367_s21 = sshll.u32 %s4373_s30, 4  ;;  %s3368_s21 = int_to_ptr.vmem [resolvable:$true] %s3367_s21 }
0x11a3   :  { %s4293_s24 = scalar_lea.vmem %s3368_s21, 256  ;;  %p4298_p5 = scmp.lt.s32.totalorder %s3368_s21, %s3368_s21 }
0x11a4   :  { %p4294_p4 = scmp.ne.s32.totalorder %s3368_s21, %s4293_s24  ;;  %p4299_p6 = scmp.lt.s32.totalorder %s4293_s24, %s4293_s24 }
0x11a6   :  { %p4300_p7 = por %p4299_p6, %p4298_p5 }
0x11a8   :  { %p4301_p8 = pnand %p4300_p7, %p4294_p4 }
0x11aa   :  { %4304 = shalt.err (!%p4301_p8)
}
0x11ab   :  { %s4305_s0 = scalar_lea.hbm %s6334_s12, 256 }
0x11ac   :  { %p4306_p9 = scmp.ne.s32.totalorder %s6334_s12, %s4305_s0  ;;  %p4309_p10 = scmp.lt.u32.totalorder %s4305_s0, %s6334_s12 }
0x11ae   :  { %p4311_p11 = pnand %p4309_p10, %p4306_p9 }
0x11b0   :  { %4314 = shalt.err (!%p4311_p11)
}
0x11b1   :  { %3373 = dma.vmem_to_hbm [thread:$0]  %s3368_s21, 256, %s6334_s12, [#allocation21], %s4354_s13, %s4354_s13, %s4355_s14   ;;  %v3487_v8 = vld [vmem:[#allocation17] ss:$0 sm:$0xff] }
0x11b2   :  { %s4374_s8 = smov [#allocation19]  }
0x11b3   :  { %s3346_s16 = sshll.u32 %s4374_s8, 4  ;;  %s3347_s16 = int_to_ptr.vmem [resolvable:$true] %s3346_s16 }
0x11b4   :  { %s4315_s7 = scalar_lea.vmem %s3347_s16, 128  ;;  %p4320_p13 = scmp.lt.s32.totalorder %s3347_s16, %s3347_s16 }
0x11b5   :  { %p4316_p12 = scmp.ne.s32.totalorder %s3347_s16, %s4315_s7  ;;  %p4321_p0 = scmp.lt.s32.totalorder %s4315_s7, %s4315_s7 }
0x11b7   :  { %p4322_p1 = por %p4321_p0, %p4320_p13 }
0x11b9   :  { %p4323_p2 = pnand %p4322_p1, %p4316_p12 }
0x126b   :  { %v3333_v63 = vpop.f32.mrb[96].mxu0 }
0x126c   :  { %v3334_v46 = vadd.f32 %v3487_v8, %v3333_v63  ;;  %v3523_v38 = vpop.f32.mrb[97].mxu0 }
0x126d   :  { %v3336_v12 = vpop.f32.mrb[98].mxu0 }
0x126e   :  { %3339 = vst [vmem:[#allocation19] sm:$0xff] %v3334_v46  ;;  %v3524_v47 = vpop.f32.mrb[99].mxu0 }
0x126f   :  { %4326 = shalt.err (!%p4323_p2)
}
0x1270   :  { %s4327_s12 = scalar_lea.hbm %s6332_s10, 128 }
0x1271   :  { %p4328_p3 = scmp.ne.s32.totalorder %s6332_s10, %s4327_s12  ;;  %p4331_p4 = scmp.lt.u32.totalorder %s4327_s12, %s6332_s10 }
0x1273   :  { %p4333_p5 = pnand %p4331_p4, %p4328_p3 }
0x1275   :  { %4336 = shalt.err (!%p4333_p5)
}
0x1276   :  { %3349 = dma.vmem_to_hbm [thread:$0]  %s3347_s16, 128, %s6332_s10, [#allocation4]  }
0x1277   :  { %4349 = dma.done.wait [#allocation4], 128  }
0x1278   :  { %4350 = vsyncadd [#allocation4], 4294967168 }
0x1279   :  { %4351 = dma.done.wait [#allocation21], 512  }
0x127a   :  { %4352 = vsyncadd [#allocation21], 4294966784 }
0x127b   :  { %3383 = vsyncpa [#allocation3], 1 }
0x127c   :  { %3384 = vsyncpa [#allocation6], 1 }
0x127d   :  { %3385 = vsyncpa [#allocation9], 1 }
0x127e   :  { %3386 = vsyncpa [#allocation12], 1 }
0x127f   :  { %3387 = vsyncpa [#allocation15], 1 }
0x1280   :  { %3388 = vsyncpa [#allocation18], 1 }
0x1281   :  { %3389 = vsyncpa [#allocation4], 1 }
0x1282   :  { %3390 = vsyncpa [#allocation21], 1 }

</bundles_post_ra>
